<compile_context>
chip_gen: v5e
topology: v5e:2x2
jax: 0.10.0
libtpu: 0.0.40
codegen_flags: <defaults>
</compile_context>

<pallas_src>
import functools

import jax
import jax.numpy as jnp
from jax.experimental import pallas as pl
from jax.experimental.pallas import tpu as pltpu

OBJECTS = 4      # Counter(objects=4)
NBINS = 16       # PiecewiseLin(16): 17 weights per module, 16 modules
NTAB = NBINS + 1


def counter_kernel(ba_ref, bb_ref, aa_ref, ab_ref, att_ref, w_ref,
                   out_ref, ds_ref, *, objects):
    o = objects
    oo = o * o
    nb = out_ref.shape[-1]
    f32 = jnp.float32

    def w(k, j):
        return w_ref[k * NTAB + j]                      # scalar read from SMEM

    def plin_multi(x, ks):
        """PiecewiseLin f_k(x) for every table k in ks, sharing the ramps.

        f_k(x) = w[k,0] + sum_{j=1..16} w[k,j]*clip(16*x-(j-1), 0, 1)
               = csum[k, floor(16x)] + frac(16x)*w[k, floor(16x)+1]  for x in [0,1]
        i.e. exactly the PyTorch PiecewiseLin; fp jitter outside [0,1]
        saturates harmlessly."""
        y = float(NBINS) * x
        accs = [jnp.full_like(x, w(k, 0)) for k in ks]
        for j in range(1, NTAB):
            ramp = jnp.clip(y - float(j - 1), 0.0, 1.0)
            accs = [acc + w(k, j) * ramp for acc, k in zip(accs, ks)]
        return accs

    # ---- pairwise geometry, packed as (o*o, nb) = (16, nb) -------------------
    # Row r of every pairwise array is the object pair (p, q) = (r // o, r % o);
    # the *_a inputs carry object p, the *_b inputs carry object q.
    x1a, y1a, x2a, y2a = ba_ref[0], ba_ref[1], ba_ref[2], ba_ref[3]
    x1b, y1b, x2b, y2b = bb_ref[0], bb_ref[1], bb_ref[2], bb_ref[3]
    area_a = jnp.maximum(x2a - x1a, 0.0) * jnp.maximum(y2a - y1a, 0.0)
    area_b = jnp.maximum(x2b - x1b, 0.0) * jnp.maximum(y2b - y1b, 0.0)
    ix = jnp.maximum(jnp.minimum(x2a, x2b) - jnp.maximum(x1a, x1b), 0.0)
    iy = jnp.maximum(jnp.minimum(y2a, y2b) - jnp.maximum(y1a, y1b), 0.0)
    inter = ix * iy
    iou = inter / (area_a + area_b - inter + 1e-12)
    distance = 1.0 - iou                                            # (16, nb)

    att_a = jax.nn.sigmoid(aa_ref[...])                             # (16, nb)
    att_b = jax.nn.sigmoid(ab_ref[...])
    att = jax.nn.sigmoid(att_ref[...])                              # (o, nb)
    relevancy = att_a * att_b                                       # (16, nb)
    att_diff = jnp.abs(att_a - att_b)                               # (16, nb)

    # ---- score / dedup_score / dist_conf tables ------------------------------
    f0r, f3r = plin_multi(relevancy, [0, 3])
    f1d, f4d, f6d = plin_multi(distance, [1, 4, 6])
    # reduce dist_conf immediately so it does not stay live through dedup
    dist_conf_mean = jnp.sum(jnp.abs(f6d - 0.5), axis=0, keepdims=True) * (1.0 / oo)
    score = f0r * f1d                                               # (16, nb)
    dedup_score = f3r * f4d                                         # (16, nb)

    # ---- deduplicate: sim[q,s] = f2(1-|att[q]-att[s]|)*prod_p f2(1-|ds[p,q]-ds[p,s]|)
    # Stage dedup_score in VMEM scratch so the per-p (q,s) pair expansions are
    # plain row loads / sublane broadcasts; fuse all 5 f2 table evaluations
    # into a single ramp pass over one stacked (5*16, nb) array.
    ds_ref[...] = dedup_score
    f2_in = [1.0 - att_diff]
    for p in range(o):
        grp = ds_ref[pl.ds(o * p, o), :]                            # ds[p, :]  (o, nb)
        b_p = jnp.concatenate([grp] * o, axis=0)                    # row r -> ds[p, r % o]
        a_p = jnp.concatenate(
            [jnp.broadcast_to(ds_ref[pl.ds(o * p + q, 1), :], (o, nb))
             for q in range(o)], axis=0)                            # row r -> ds[p, r // o]
        f2_in.append(1.0 - jnp.abs(a_p - b_p))
    y_all = float(NBINS) * jnp.concatenate(f2_in, axis=0)           # (5*oo, nb)
    f2_all = jnp.full_like(y_all, w(2, 0))
    for j in range(1, NTAB):
        f2_all = f2_all + w(2, j) * jnp.clip(y_all - float(j - 1), 0.0, 1.0)
    sim = f2_all[0:oo]
    for p in range(o):
        sim = sim * f2_all[(p + 1) * oo:(p + 2) * oo]               # (16, nb)

    # row_sims[q] = sum_s sim[q, s]; exact reciprocal (tiny (1, nb) arrays)
    inv_parts = [1.0 / jnp.sum(sim[o * q:o * (q + 1)], axis=0, keepdims=True)
                 for q in range(o)]
    invrow = jnp.concatenate(inv_parts, axis=0)                     # (o, nb)

    # total score = sum_{p,q} score[p,q] * invrow[p] * invrow[q]
    tot = jnp.zeros((1, nb), f32)
    for p in range(o):
        t_p = jnp.sum(score[o * p:o * (p + 1)] * invrow, axis=0, keepdims=True)
        tot = tot + inv_parts[p] * t_p

    # correction = sum_q f0(att[q]^2) * invrow[q]
    (f0_att2,) = plin_multi(att * att, [0])                         # (o, nb)
    corr = jnp.sum(f0_att2 * invrow, axis=0, keepdims=True)         # (1, nb)

    total = jnp.sqrt(tot + corr + 1e-20)                            # (1, nb)

    # ---- to_one_hot: fractional count -> (objects + 1) features --------------
    s = jnp.clip(total, 0.0, float(o))
    i_f = jnp.floor(s)
    frac = s - i_f
    i_lo = jnp.minimum(i_f.astype(jnp.int32), o)
    i_hi = jnp.minimum(i_lo + 1, o)
    rows = jax.lax.broadcasted_iota(jnp.int32, (o + 1, nb), 0)
    one_hot = ((1.0 - frac) * (rows == i_lo).astype(f32)
               + frac * (rows == i_hi).astype(f32))                 # (o+1, nb)

    # ---- confidence -----------------------------------------------------------
    (f5_att,) = plin_multi(att, [5])                                # (o, nb)
    att_conf_mean = jnp.sum(jnp.abs(f5_att - 0.5), axis=0, keepdims=True) * (1.0 / o)
    (conf,) = plin_multi(att_conf_mean + dist_conf_mean, [7])       # (1, nb)

    out_ref[...] = (one_hot * conf).astype(out_ref.dtype)


def counter_forward(boxes, attention, weights, objects=OBJECTS, n_blk=None):
    """boxes: (n, 4, m), attention: (n, m), weights: (16, 17) PiecewiseLin params."""
    n, four, m = boxes.shape
    assert four == 4 and m >= objects
    oo = objects * objects

    # PiecewiseLin parameter transform (tiny glue): |w| then normalize.
    # The clipped-ramp form only needs w_norm (no cumsum table).
    w_abs = jnp.abs(weights.astype(jnp.float32))
    w_norm = w_abs / jnp.sum(w_abs, axis=1, keepdims=True)
    w_flat = w_norm.reshape(-1)                      # (272,) 1-D SMEM

    # filter_most_important: keep top-`objects` proposals by attention weight.
    # TODO(synk): top-k selection / gathers stay in plain JAX (pure selection,
    # order-invariant downstream); the numeric hot path is inside the kernel.
    att_top, idx = jax.lax.top_k(attention.astype(jnp.float32), objects)
    idx_b = jnp.broadcast_to(idx[:, None, :], (n, 4, objects))
    boxes_top = jnp.take_along_axis(boxes.astype(jnp.float32), idx_b, axis=2)

    # Pair expansion (a-side = row r//o, b-side = row r%o) via static gathers
    # so the kernel works on packed (o*o, n_blk) rows without sublane reshapes.
    idx_a = jnp.arange(oo, dtype=jnp.int32) // objects
    idx_q = jnp.arange(oo, dtype=jnp.int32) % objects
    boxes_a = jnp.transpose(boxes_top[:, :, idx_a], (1, 2, 0))   # (4, oo, n)
    boxes_b = jnp.transpose(boxes_top[:, :, idx_q], (1, 2, 0))   # (4, oo, n)
    att_a = jnp.transpose(att_top[:, idx_a], (1, 0))             # (oo, n)
    att_b = jnp.transpose(att_top[:, idx_q], (1, 0))             # (oo, n)
    att_t = jnp.transpose(att_top, (1, 0))                       # (objects, n)

    lane = 128
    if n_blk is None:
        # >=4 grid steps for large n (pipelining + v7x megacore); cap at 256 so
        # the packed (16, n_blk) working set stays inside the 64-vreg file.
        n_blk = max(lane, min(256, lane * pl.cdiv(pl.cdiv(n, 4), lane)))
    n_blk = max(lane, (n_blk // lane) * lane)
    n_pad = pl.cdiv(n, n_blk) * n_blk
    if n_pad != n:
        pad = n_pad - n   # zero padding keeps all downstream math finite
        boxes_a = jnp.pad(boxes_a, ((0, 0), (0, 0), (0, pad)))
        boxes_b = jnp.pad(boxes_b, ((0, 0), (0, 0), (0, pad)))
        att_a = jnp.pad(att_a, ((0, 0), (0, pad)))
        att_b = jnp.pad(att_b, ((0, 0), (0, pad)))
        att_t = jnp.pad(att_t, ((0, 0), (0, pad)))

    kernel = functools.partial(counter_kernel, objects=objects)
    out_t = pl.pallas_call(
        kernel,
        out_shape=jax.ShapeDtypeStruct((objects + 1, n_pad), jnp.float32),
        grid_spec=pltpu.PrefetchScalarGridSpec(
            num_scalar_prefetch=0,
            grid=(n_pad // n_blk,),
            in_specs=[
                pl.BlockSpec((4, oo, n_blk), lambda i: (0, 0, i)),        # boxes, a-side
                pl.BlockSpec((4, oo, n_blk), lambda i: (0, 0, i)),        # boxes, b-side
                pl.BlockSpec((oo, n_blk), lambda i: (0, i)),              # attention, a-side
                pl.BlockSpec((oo, n_blk), lambda i: (0, i)),              # attention, b-side
                pl.BlockSpec((objects, n_blk), lambda i: (0, i)),         # attention (per object)
                pl.BlockSpec(memory_space=pltpu.MemorySpace.SMEM),        # w_norm (272,)
            ],
            out_specs=pl.BlockSpec((objects + 1, n_blk), lambda i: (0, i)),
            scratch_shapes=[pltpu.VMEM((oo, n_blk), jnp.float32)],        # dedup_score stage
        ),
        compiler_params=pltpu.CompilerParams(
            dimension_semantics=("parallel",),          # megacore sharding on v7x
            vmem_limit_bytes=32 * 1024 * 1024,          # safe on v5e/v6e/v7x
        ),
    )(boxes_a, boxes_b, att_a, att_b, att_t, w_flat)

    # back to the PyTorch (n, objects+1) layout
    return out_t[:, :n].T


if __name__ == "__main__":
    key = jax.random.PRNGKey(0)
    k1, k2, k3, k4 = jax.random.split(key, 4)
    n, m, objects = 2, 8, OBJECTS

    # boxes: (n, 4, m) with channels [x1, y1, x2, y2]
    tl = jax.random.uniform(k1, (n, 2, m), minval=0.0, maxval=0.5)
    wh = jax.random.uniform(k2, (n, 2, m), minval=0.1, maxval=0.5)
    boxes = jnp.concatenate([tl, tl + wh], axis=1).astype(jnp.float32)

    attention = jax.random.normal(k3, (n, m), dtype=jnp.float32)

    # 16 PiecewiseLin modules, 17 weights each (weight[:, 0] = 0 like __init__).
    weights = jax.random.uniform(k4, (16, NBINS + 1), minval=0.1, maxval=1.0)
    weights = weights.at[:, 0].set(0.0)

    out = counter_forward(boxes, attention, weights, objects=objects)
    out = jax.block_until_ready(out)

    assert out.shape == (n, objects + 1), out.shape
    assert bool(jnp.all(jnp.isfinite(out)))
    print("KERNEL_OK")
</pallas_src>

<mosaic_0001>
module attributes {stable_mosaic.version = 11 : i64} {
  func.func @counter_kernel(%arg0: i32, %arg1: memref<4x16x128xf32, #tpu.memory_space<vmem>>, %arg2: memref<4x16x128xf32, #tpu.memory_space<vmem>>, %arg3: memref<16x128xf32, #tpu.memory_space<vmem>>, %arg4: memref<16x128xf32, #tpu.memory_space<vmem>>, %arg5: memref<4x128xf32, #tpu.memory_space<vmem>>, %arg6: memref<272xf32, #tpu.memory_space<smem>>, %arg7: memref<5x128xf32, #tpu.memory_space<vmem>>, %arg8: memref<16x128xf32, #tpu.memory_space<vmem>>) attributes {dimension_semantics = [#tpu.dimension_semantics<parallel>], iteration_bounds = array<i64: 1>, scalar_prefetch = 0 : i64, scratch_operands = 1 : i64, tpu.core_type = #tpu.core_type<tc>, window_params = [{transform_indices = @transform_0, window_bounds = array<i64: 4, 16, 128>}, {transform_indices = @transform_1, window_bounds = array<i64: 4, 16, 128>}, {transform_indices = @transform_2, window_bounds = array<i64: 16, 128>}, {transform_indices = @transform_3, window_bounds = array<i64: 16, 128>}, {transform_indices = @transform_4, window_bounds = array<i64: 4, 128>}, {transform_indices = @transform_5, window_bounds = array<i64: 272>}, {transform_indices = @transform_6, window_bounds = array<i64: 5, 128>}]} {
    %c0 = arith.constant 0 : index
    %c0_0 = arith.constant 0 : index
    %c0_1 = arith.constant 0 : index
    %0 = vector.load %arg1[%c0, %c0_0, %c0_1] : memref<4x16x128xf32, #tpu.memory_space<vmem>>, vector<1x16x128xf32>
    %1 = vector.shape_cast %0 : vector<1x16x128xf32> to vector<16x128xf32>
    %c1 = arith.constant 1 : index
    %c0_2 = arith.constant 0 : index
    %c0_3 = arith.constant 0 : index
    %2 = vector.load %arg1[%c1, %c0_2, %c0_3] : memref<4x16x128xf32, #tpu.memory_space<vmem>>, vector<1x16x128xf32>
    %3 = vector.shape_cast %2 : vector<1x16x128xf32> to vector<16x128xf32>
    %c2 = arith.constant 2 : index
    %c0_4 = arith.constant 0 : index
    %c0_5 = arith.constant 0 : index
    %4 = vector.load %arg1[%c2, %c0_4, %c0_5] : memref<4x16x128xf32, #tpu.memory_space<vmem>>, vector<1x16x128xf32>
    %5 = vector.shape_cast %4 : vector<1x16x128xf32> to vector<16x128xf32>
    %c3 = arith.constant 3 : index
    %c0_6 = arith.constant 0 : index
    %c0_7 = arith.constant 0 : index
    %6 = vector.load %arg1[%c3, %c0_6, %c0_7] : memref<4x16x128xf32, #tpu.memory_space<vmem>>, vector<1x16x128xf32>
    %7 = vector.shape_cast %6 : vector<1x16x128xf32> to vector<16x128xf32>
    %c0_8 = arith.constant 0 : index
    %c0_9 = arith.constant 0 : index
    %c0_10 = arith.constant 0 : index
    %8 = vector.load %arg2[%c0_8, %c0_9, %c0_10] : memref<4x16x128xf32, #tpu.memory_space<vmem>>, vector<1x16x128xf32>
    %9 = vector.shape_cast %8 : vector<1x16x128xf32> to vector<16x128xf32>
    %c1_11 = arith.constant 1 : index
    %c0_12 = arith.constant 0 : index
    %c0_13 = arith.constant 0 : index
    %10 = vector.load %arg2[%c1_11, %c0_12, %c0_13] : memref<4x16x128xf32, #tpu.memory_space<vmem>>, vector<1x16x128xf32>
    %11 = vector.shape_cast %10 : vector<1x16x128xf32> to vector<16x128xf32>
    %c2_14 = arith.constant 2 : index
    %c0_15 = arith.constant 0 : index
    %c0_16 = arith.constant 0 : index
    %12 = vector.load %arg2[%c2_14, %c0_15, %c0_16] : memref<4x16x128xf32, #tpu.memory_space<vmem>>, vector<1x16x128xf32>
    %13 = vector.shape_cast %12 : vector<1x16x128xf32> to vector<16x128xf32>
    %c3_17 = arith.constant 3 : index
    %c0_18 = arith.constant 0 : index
    %c0_19 = arith.constant 0 : index
    %14 = vector.load %arg2[%c3_17, %c0_18, %c0_19] : memref<4x16x128xf32, #tpu.memory_space<vmem>>, vector<1x16x128xf32>
    %15 = vector.shape_cast %14 : vector<1x16x128xf32> to vector<16x128xf32>
    %16 = arith.subf %5, %1 : vector<16x128xf32>
    %cst = arith.constant 0.000000e+00 : f32
    %17 = vector.broadcast %cst : f32 to vector<16x128xf32>
    %18 = arith.maximumf %16, %17 : vector<16x128xf32>
    %19 = arith.subf %7, %3 : vector<16x128xf32>
    %cst_20 = arith.constant 0.000000e+00 : f32
    %20 = vector.broadcast %cst_20 : f32 to vector<16x128xf32>
    %21 = arith.maximumf %19, %20 : vector<16x128xf32>
    %22 = arith.mulf %18, %21 : vector<16x128xf32>
    %23 = arith.subf %13, %9 : vector<16x128xf32>
    %cst_21 = arith.constant 0.000000e+00 : f32
    %24 = vector.broadcast %cst_21 : f32 to vector<16x128xf32>
    %25 = arith.maximumf %23, %24 : vector<16x128xf32>
    %26 = arith.subf %15, %11 : vector<16x128xf32>
    %cst_22 = arith.constant 0.000000e+00 : f32
    %27 = vector.broadcast %cst_22 : f32 to vector<16x128xf32>
    %28 = arith.maximumf %26, %27 : vector<16x128xf32>
    %29 = arith.mulf %25, %28 : vector<16x128xf32>
    %30 = arith.minimumf %5, %13 : vector<16x128xf32>
    %31 = arith.maximumf %1, %9 : vector<16x128xf32>
    %32 = arith.subf %30, %31 : vector<16x128xf32>
    %cst_23 = arith.constant 0.000000e+00 : f32
    %33 = vector.broadcast %cst_23 : f32 to vector<16x128xf32>
    %34 = arith.maximumf %32, %33 : vector<16x128xf32>
    %35 = arith.minimumf %7, %15 : vector<16x128xf32>
    %36 = arith.maximumf %3, %11 : vector<16x128xf32>
    %37 = arith.subf %35, %36 : vector<16x128xf32>
    %cst_24 = arith.constant 0.000000e+00 : f32
    %38 = vector.broadcast %cst_24 : f32 to vector<16x128xf32>
    %39 = arith.maximumf %37, %38 : vector<16x128xf32>
    %40 = arith.mulf %34, %39 : vector<16x128xf32>
    %41 = arith.addf %22, %29 : vector<16x128xf32>
    %42 = arith.subf %41, %40 : vector<16x128xf32>
    %cst_25 = arith.constant 9.99999996E-13 : f32
    %43 = vector.broadcast %cst_25 : f32 to vector<16x128xf32>
    %44 = arith.addf %42, %43 : vector<16x128xf32>
    %45 = arith.divf %40, %44 : vector<16x128xf32>
    %cst_26 = arith.constant 1.000000e+00 : f32
    %46 = vector.broadcast %cst_26 : f32 to vector<16x128xf32>
    %47 = arith.subf %46, %45 : vector<16x128xf32>
    %c0_27 = arith.constant 0 : index
    %c0_28 = arith.constant 0 : index
    %48 = vector.load %arg3[%c0_27, %c0_28] : memref<16x128xf32, #tpu.memory_space<vmem>>, vector<16x128xf32>
    %49 = arith.negf %48 : vector<16x128xf32>
    %50 = math.exp %49 : vector<16x128xf32>
    %cst_29 = arith.constant 1.000000e+00 : f32
    %51 = vector.broadcast %cst_29 : f32 to vector<16x128xf32>
    %52 = arith.addf %51, %50 : vector<16x128xf32>
    %53 = arith.divf %51, %52 : vector<16x128xf32>
    %c0_30 = arith.constant 0 : index
    %c0_31 = arith.constant 0 : index
    %54 = vector.load %arg4[%c0_30, %c0_31] : memref<16x128xf32, #tpu.memory_space<vmem>>, vector<16x128xf32>
    %55 = arith.negf %54 : vector<16x128xf32>
    %56 = math.exp %55 : vector<16x128xf32>
    %cst_32 = arith.constant 1.000000e+00 : f32
    %57 = vector.broadcast %cst_32 : f32 to vector<16x128xf32>
    %58 = arith.addf %57, %56 : vector<16x128xf32>
    %59 = arith.divf %57, %58 : vector<16x128xf32>
    %c0_33 = arith.constant 0 : index
    %c0_34 = arith.constant 0 : index
    %60 = vector.load %arg5[%c0_33, %c0_34] : memref<4x128xf32, #tpu.memory_space<vmem>>, vector<4x128xf32>
    %61 = arith.negf %60 : vector<4x128xf32>
    %62 = math.exp %61 : vector<4x128xf32>
    %cst_35 = arith.constant 1.000000e+00 : f32
    %63 = vector.broadcast %cst_35 : f32 to vector<4x128xf32>
    %64 = arith.addf %63, %62 : vector<4x128xf32>
    %65 = arith.divf %63, %64 : vector<4x128xf32>
    %66 = arith.mulf %53, %59 : vector<16x128xf32>
    %67 = arith.subf %53, %59 : vector<16x128xf32>
    %68 = math.absf %67 : vector<16x128xf32>
    %cst_36 = arith.constant 1.600000e+01 : f32
    %69 = vector.broadcast %cst_36 : f32 to vector<16x128xf32>
    %70 = arith.mulf %69, %66 : vector<16x128xf32>
    %c0_37 = arith.constant 0 : index
    %71 = memref.load %arg6[%c0_37] : memref<272xf32, #tpu.memory_space<smem>>
    %72 = vector.broadcast %71 : f32 to vector<16x128xf32>
    %c51 = arith.constant 51 : index
    %73 = memref.load %arg6[%c51] : memref<272xf32, #tpu.memory_space<smem>>
    %74 = vector.broadcast %73 : f32 to vector<16x128xf32>
    %cst_38 = arith.constant 0.000000e+00 : f32
    %75 = vector.broadcast %cst_38 : f32 to vector<16x128xf32>
    %76 = arith.subf %70, %75 : vector<16x128xf32>
    %cst_39 = arith.constant 0.000000e+00 : f32
    %cst_40 = arith.constant 1.000000e+00 : f32
    %77 = vector.broadcast %cst_39 : f32 to vector<16x128xf32>
    %78 = arith.maximumf %77, %76 : vector<16x128xf32>
    %79 = vector.broadcast %cst_40 : f32 to vector<16x128xf32>
    %80 = arith.minimumf %79, %78 : vector<16x128xf32>
    %c1_41 = arith.constant 1 : index
    %81 = memref.load %arg6[%c1_41] : memref<272xf32, #tpu.memory_space<smem>>
    %82 = vector.broadcast %81 : f32 to vector<16x128xf32>
    %83 = arith.mulf %82, %80 : vector<16x128xf32>
    %84 = arith.addf %72, %83 : vector<16x128xf32>
    %c52 = arith.constant 52 : index
    %85 = memref.load %arg6[%c52] : memref<272xf32, #tpu.memory_space<smem>>
    %86 = vector.broadcast %85 : f32 to vector<16x128xf32>
    %87 = arith.mulf %86, %80 : vector<16x128xf32>
    %88 = arith.addf %74, %87 : vector<16x128xf32>
    %cst_42 = arith.constant 1.000000e+00 : f32
    %89 = vector.broadcast %cst_42 : f32 to vector<16x128xf32>
    %90 = arith.subf %70, %89 : vector<16x128xf32>
    %cst_43 = arith.constant 0.000000e+00 : f32
    %cst_44 = arith.constant 1.000000e+00 : f32
    %91 = vector.broadcast %cst_43 : f32 to vector<16x128xf32>
    %92 = arith.maximumf %91, %90 : vector<16x128xf32>
    %93 = vector.broadcast %cst_44 : f32 to vector<16x128xf32>
    %94 = arith.minimumf %93, %92 : vector<16x128xf32>
    %c2_45 = arith.constant 2 : index
    %95 = memref.load %arg6[%c2_45] : memref<272xf32, #tpu.memory_space<smem>>
    %96 = vector.broadcast %95 : f32 to vector<16x128xf32>
    %97 = arith.mulf %96, %94 : vector<16x128xf32>
    %98 = arith.addf %84, %97 : vector<16x128xf32>
    %c53 = arith.constant 53 : index
    %99 = memref.load %arg6[%c53] : memref<272xf32, #tpu.memory_space<smem>>
    %100 = vector.broadcast %99 : f32 to vector<16x128xf32>
    %101 = arith.mulf %100, %94 : vector<16x128xf32>
    %102 = arith.addf %88, %101 : vector<16x128xf32>
    %cst_46 = arith.constant 2.000000e+00 : f32
    %103 = vector.broadcast %cst_46 : f32 to vector<16x128xf32>
    %104 = arith.subf %70, %103 : vector<16x128xf32>
    %cst_47 = arith.constant 0.000000e+00 : f32
    %cst_48 = arith.constant 1.000000e+00 : f32
    %105 = vector.broadcast %cst_47 : f32 to vector<16x128xf32>
    %106 = arith.maximumf %105, %104 : vector<16x128xf32>
    %107 = vector.broadcast %cst_48 : f32 to vector<16x128xf32>
    %108 = arith.minimumf %107, %106 : vector<16x128xf32>
    %c3_49 = arith.constant 3 : index
    %109 = memref.load %arg6[%c3_49] : memref<272xf32, #tpu.memory_space<smem>>
    %110 = vector.broadcast %109 : f32 to vector<16x128xf32>
    %111 = arith.mulf %110, %108 : vector<16x128xf32>
    %112 = arith.addf %98, %111 : vector<16x128xf32>
    %c54 = arith.constant 54 : index
    %113 = memref.load %arg6[%c54] : memref<272xf32, #tpu.memory_space<smem>>
    %114 = vector.broadcast %113 : f32 to vector<16x128xf32>
    %115 = arith.mulf %114, %108 : vector<16x128xf32>
    %116 = arith.addf %102, %115 : vector<16x128xf32>
    %cst_50 = arith.constant 3.000000e+00 : f32
    %117 = vector.broadcast %cst_50 : f32 to vector<16x128xf32>
    %118 = arith.subf %70, %117 : vector<16x128xf32>
    %cst_51 = arith.constant 0.000000e+00 : f32
    %cst_52 = arith.constant 1.000000e+00 : f32
    %119 = vector.broadcast %cst_51 : f32 to vector<16x128xf32>
    %120 = arith.maximumf %119, %118 : vector<16x128xf32>
    %121 = vector.broadcast %cst_52 : f32 to vector<16x128xf32>
    %122 = arith.minimumf %121, %120 : vector<16x128xf32>
    %c4 = arith.constant 4 : index
    %123 = memref.load %arg6[%c4] : memref<272xf32, #tpu.memory_space<smem>>
    %124 = vector.broadcast %123 : f32 to vector<16x128xf32>
    %125 = arith.mulf %124, %122 : vector<16x128xf32>
    %126 = arith.addf %112, %125 : vector<16x128xf32>
    %c55 = arith.constant 55 : index
    %127 = memref.load %arg6[%c55] : memref<272xf32, #tpu.memory_space<smem>>
    %128 = vector.broadcast %127 : f32 to vector<16x128xf32>
    %129 = arith.mulf %128, %122 : vector<16x128xf32>
    %130 = arith.addf %116, %129 : vector<16x128xf32>
    %cst_53 = arith.constant 4.000000e+00 : f32
    %131 = vector.broadcast %cst_53 : f32 to vector<16x128xf32>
    %132 = arith.subf %70, %131 : vector<16x128xf32>
    %cst_54 = arith.constant 0.000000e+00 : f32
    %cst_55 = arith.constant 1.000000e+00 : f32
    %133 = vector.broadcast %cst_54 : f32 to vector<16x128xf32>
    %134 = arith.maximumf %133, %132 : vector<16x128xf32>
    %135 = vector.broadcast %cst_55 : f32 to vector<16x128xf32>
    %136 = arith.minimumf %135, %134 : vector<16x128xf32>
    %c5 = arith.constant 5 : index
    %137 = memref.load %arg6[%c5] : memref<272xf32, #tpu.memory_space<smem>>
    %138 = vector.broadcast %137 : f32 to vector<16x128xf32>
    %139 = arith.mulf %138, %136 : vector<16x128xf32>
    %140 = arith.addf %126, %139 : vector<16x128xf32>
    %c56 = arith.constant 56 : index
    %141 = memref.load %arg6[%c56] : memref<272xf32, #tpu.memory_space<smem>>
    %142 = vector.broadcast %141 : f32 to vector<16x128xf32>
    %143 = arith.mulf %142, %136 : vector<16x128xf32>
    %144 = arith.addf %130, %143 : vector<16x128xf32>
    %cst_56 = arith.constant 5.000000e+00 : f32
    %145 = vector.broadcast %cst_56 : f32 to vector<16x128xf32>
    %146 = arith.subf %70, %145 : vector<16x128xf32>
    %cst_57 = arith.constant 0.000000e+00 : f32
    %cst_58 = arith.constant 1.000000e+00 : f32
    %147 = vector.broadcast %cst_57 : f32 to vector<16x128xf32>
    %148 = arith.maximumf %147, %146 : vector<16x128xf32>
    %149 = vector.broadcast %cst_58 : f32 to vector<16x128xf32>
    %150 = arith.minimumf %149, %148 : vector<16x128xf32>
    %c6 = arith.constant 6 : index
    %151 = memref.load %arg6[%c6] : memref<272xf32, #tpu.memory_space<smem>>
    %152 = vector.broadcast %151 : f32 to vector<16x128xf32>
    %153 = arith.mulf %152, %150 : vector<16x128xf32>
    %154 = arith.addf %140, %153 : vector<16x128xf32>
    %c57 = arith.constant 57 : index
    %155 = memref.load %arg6[%c57] : memref<272xf32, #tpu.memory_space<smem>>
    %156 = vector.broadcast %155 : f32 to vector<16x128xf32>
    %157 = arith.mulf %156, %150 : vector<16x128xf32>
    %158 = arith.addf %144, %157 : vector<16x128xf32>
    %cst_59 = arith.constant 6.000000e+00 : f32
    %159 = vector.broadcast %cst_59 : f32 to vector<16x128xf32>
    %160 = arith.subf %70, %159 : vector<16x128xf32>
    %cst_60 = arith.constant 0.000000e+00 : f32
    %cst_61 = arith.constant 1.000000e+00 : f32
    %161 = vector.broadcast %cst_60 : f32 to vector<16x128xf32>
    %162 = arith.maximumf %161, %160 : vector<16x128xf32>
    %163 = vector.broadcast %cst_61 : f32 to vector<16x128xf32>
    %164 = arith.minimumf %163, %162 : vector<16x128xf32>
    %c7 = arith.constant 7 : index
    %165 = memref.load %arg6[%c7] : memref<272xf32, #tpu.memory_space<smem>>
    %166 = vector.broadcast %165 : f32 to vector<16x128xf32>
    %167 = arith.mulf %166, %164 : vector<16x128xf32>
    %168 = arith.addf %154, %167 : vector<16x128xf32>
    %c58 = arith.constant 58 : index
    %169 = memref.load %arg6[%c58] : memref<272xf32, #tpu.memory_space<smem>>
    %170 = vector.broadcast %169 : f32 to vector<16x128xf32>
    %171 = arith.mulf %170, %164 : vector<16x128xf32>
    %172 = arith.addf %158, %171 : vector<16x128xf32>
    %cst_62 = arith.constant 7.000000e+00 : f32
    %173 = vector.broadcast %cst_62 : f32 to vector<16x128xf32>
    %174 = arith.subf %70, %173 : vector<16x128xf32>
    %cst_63 = arith.constant 0.000000e+00 : f32
    %cst_64 = arith.constant 1.000000e+00 : f32
    %175 = vector.broadcast %cst_63 : f32 to vector<16x128xf32>
    %176 = arith.maximumf %175, %174 : vector<16x128xf32>
    %177 = vector.broadcast %cst_64 : f32 to vector<16x128xf32>
    %178 = arith.minimumf %177, %176 : vector<16x128xf32>
    %c8 = arith.constant 8 : index
    %179 = memref.load %arg6[%c8] : memref<272xf32, #tpu.memory_space<smem>>
    %180 = vector.broadcast %179 : f32 to vector<16x128xf32>
    %181 = arith.mulf %180, %178 : vector<16x128xf32>
    %182 = arith.addf %168, %181 : vector<16x128xf32>
    %c59 = arith.constant 59 : index
    %183 = memref.load %arg6[%c59] : memref<272xf32, #tpu.memory_space<smem>>
    %184 = vector.broadcast %183 : f32 to vector<16x128xf32>
    %185 = arith.mulf %184, %178 : vector<16x128xf32>
    %186 = arith.addf %172, %185 : vector<16x128xf32>
    %cst_65 = arith.constant 8.000000e+00 : f32
    %187 = vector.broadcast %cst_65 : f32 to vector<16x128xf32>
    %188 = arith.subf %70, %187 : vector<16x128xf32>
    %cst_66 = arith.constant 0.000000e+00 : f32
    %cst_67 = arith.constant 1.000000e+00 : f32
    %189 = vector.broadcast %cst_66 : f32 to vector<16x128xf32>
    %190 = arith.maximumf %189, %188 : vector<16x128xf32>
    %191 = vector.broadcast %cst_67 : f32 to vector<16x128xf32>
    %192 = arith.minimumf %191, %190 : vector<16x128xf32>
    %c9 = arith.constant 9 : index
    %193 = memref.load %arg6[%c9] : memref<272xf32, #tpu.memory_space<smem>>
    %194 = vector.broadcast %193 : f32 to vector<16x128xf32>
    %195 = arith.mulf %194, %192 : vector<16x128xf32>
    %196 = arith.addf %182, %195 : vector<16x128xf32>
    %c60 = arith.constant 60 : index
    %197 = memref.load %arg6[%c60] : memref<272xf32, #tpu.memory_space<smem>>
    %198 = vector.broadcast %197 : f32 to vector<16x128xf32>
    %199 = arith.mulf %198, %192 : vector<16x128xf32>
    %200 = arith.addf %186, %199 : vector<16x128xf32>
    %cst_68 = arith.constant 9.000000e+00 : f32
    %201 = vector.broadcast %cst_68 : f32 to vector<16x128xf32>
    %202 = arith.subf %70, %201 : vector<16x128xf32>
    %cst_69 = arith.constant 0.000000e+00 : f32
    %cst_70 = arith.constant 1.000000e+00 : f32
    %203 = vector.broadcast %cst_69 : f32 to vector<16x128xf32>
    %204 = arith.maximumf %203, %202 : vector<16x128xf32>
    %205 = vector.broadcast %cst_70 : f32 to vector<16x128xf32>
    %206 = arith.minimumf %205, %204 : vector<16x128xf32>
    %c10 = arith.constant 10 : index
    %207 = memref.load %arg6[%c10] : memref<272xf32, #tpu.memory_space<smem>>
    %208 = vector.broadcast %207 : f32 to vector<16x128xf32>
    %209 = arith.mulf %208, %206 : vector<16x128xf32>
    %210 = arith.addf %196, %209 : vector<16x128xf32>
    %c61 = arith.constant 61 : index
    %211 = memref.load %arg6[%c61] : memref<272xf32, #tpu.memory_space<smem>>
    %212 = vector.broadcast %211 : f32 to vector<16x128xf32>
    %213 = arith.mulf %212, %206 : vector<16x128xf32>
    %214 = arith.addf %200, %213 : vector<16x128xf32>
    %cst_71 = arith.constant 1.000000e+01 : f32
    %215 = vector.broadcast %cst_71 : f32 to vector<16x128xf32>
    %216 = arith.subf %70, %215 : vector<16x128xf32>
    %cst_72 = arith.constant 0.000000e+00 : f32
    %cst_73 = arith.constant 1.000000e+00 : f32
    %217 = vector.broadcast %cst_72 : f32 to vector<16x128xf32>
    %218 = arith.maximumf %217, %216 : vector<16x128xf32>
    %219 = vector.broadcast %cst_73 : f32 to vector<16x128xf32>
    %220 = arith.minimumf %219, %218 : vector<16x128xf32>
    %c11 = arith.constant 11 : index
    %221 = memref.load %arg6[%c11] : memref<272xf32, #tpu.memory_space<smem>>
    %222 = vector.broadcast %221 : f32 to vector<16x128xf32>
    %223 = arith.mulf %222, %220 : vector<16x128xf32>
    %224 = arith.addf %210, %223 : vector<16x128xf32>
    %c62 = arith.constant 62 : index
    %225 = memref.load %arg6[%c62] : memref<272xf32, #tpu.memory_space<smem>>
    %226 = vector.broadcast %225 : f32 to vector<16x128xf32>
    %227 = arith.mulf %226, %220 : vector<16x128xf32>
    %228 = arith.addf %214, %227 : vector<16x128xf32>
    %cst_74 = arith.constant 1.100000e+01 : f32
    %229 = vector.broadcast %cst_74 : f32 to vector<16x128xf32>
    %230 = arith.subf %70, %229 : vector<16x128xf32>
    %cst_75 = arith.constant 0.000000e+00 : f32
    %cst_76 = arith.constant 1.000000e+00 : f32
    %231 = vector.broadcast %cst_75 : f32 to vector<16x128xf32>
    %232 = arith.maximumf %231, %230 : vector<16x128xf32>
    %233 = vector.broadcast %cst_76 : f32 to vector<16x128xf32>
    %234 = arith.minimumf %233, %232 : vector<16x128xf32>
    %c12 = arith.constant 12 : index
    %235 = memref.load %arg6[%c12] : memref<272xf32, #tpu.memory_space<smem>>
    %236 = vector.broadcast %235 : f32 to vector<16x128xf32>
    %237 = arith.mulf %236, %234 : vector<16x128xf32>
    %238 = arith.addf %224, %237 : vector<16x128xf32>
    %c63 = arith.constant 63 : index
    %239 = memref.load %arg6[%c63] : memref<272xf32, #tpu.memory_space<smem>>
    %240 = vector.broadcast %239 : f32 to vector<16x128xf32>
    %241 = arith.mulf %240, %234 : vector<16x128xf32>
    %242 = arith.addf %228, %241 : vector<16x128xf32>
    %cst_77 = arith.constant 1.200000e+01 : f32
    %243 = vector.broadcast %cst_77 : f32 to vector<16x128xf32>
    %244 = arith.subf %70, %243 : vector<16x128xf32>
    %cst_78 = arith.constant 0.000000e+00 : f32
    %cst_79 = arith.constant 1.000000e+00 : f32
    %245 = vector.broadcast %cst_78 : f32 to vector<16x128xf32>
    %246 = arith.maximumf %245, %244 : vector<16x128xf32>
    %247 = vector.broadcast %cst_79 : f32 to vector<16x128xf32>
    %248 = arith.minimumf %247, %246 : vector<16x128xf32>
    %c13 = arith.constant 13 : index
    %249 = memref.load %arg6[%c13] : memref<272xf32, #tpu.memory_space<smem>>
    %250 = vector.broadcast %249 : f32 to vector<16x128xf32>
    %251 = arith.mulf %250, %248 : vector<16x128xf32>
    %252 = arith.addf %238, %251 : vector<16x128xf32>
    %c64 = arith.constant 64 : index
    %253 = memref.load %arg6[%c64] : memref<272xf32, #tpu.memory_space<smem>>
    %254 = vector.broadcast %253 : f32 to vector<16x128xf32>
    %255 = arith.mulf %254, %248 : vector<16x128xf32>
    %256 = arith.addf %242, %255 : vector<16x128xf32>
    %cst_80 = arith.constant 1.300000e+01 : f32
    %257 = vector.broadcast %cst_80 : f32 to vector<16x128xf32>
    %258 = arith.subf %70, %257 : vector<16x128xf32>
    %cst_81 = arith.constant 0.000000e+00 : f32
    %cst_82 = arith.constant 1.000000e+00 : f32
    %259 = vector.broadcast %cst_81 : f32 to vector<16x128xf32>
    %260 = arith.maximumf %259, %258 : vector<16x128xf32>
    %261 = vector.broadcast %cst_82 : f32 to vector<16x128xf32>
    %262 = arith.minimumf %261, %260 : vector<16x128xf32>
    %c14 = arith.constant 14 : index
    %263 = memref.load %arg6[%c14] : memref<272xf32, #tpu.memory_space<smem>>
    %264 = vector.broadcast %263 : f32 to vector<16x128xf32>
    %265 = arith.mulf %264, %262 : vector<16x128xf32>
    %266 = arith.addf %252, %265 : vector<16x128xf32>
    %c65 = arith.constant 65 : index
    %267 = memref.load %arg6[%c65] : memref<272xf32, #tpu.memory_space<smem>>
    %268 = vector.broadcast %267 : f32 to vector<16x128xf32>
    %269 = arith.mulf %268, %262 : vector<16x128xf32>
    %270 = arith.addf %256, %269 : vector<16x128xf32>
    %cst_83 = arith.constant 1.400000e+01 : f32
    %271 = vector.broadcast %cst_83 : f32 to vector<16x128xf32>
    %272 = arith.subf %70, %271 : vector<16x128xf32>
    %cst_84 = arith.constant 0.000000e+00 : f32
    %cst_85 = arith.constant 1.000000e+00 : f32
    %273 = vector.broadcast %cst_84 : f32 to vector<16x128xf32>
    %274 = arith.maximumf %273, %272 : vector<16x128xf32>
    %275 = vector.broadcast %cst_85 : f32 to vector<16x128xf32>
    %276 = arith.minimumf %275, %274 : vector<16x128xf32>
    %c15 = arith.constant 15 : index
    %277 = memref.load %arg6[%c15] : memref<272xf32, #tpu.memory_space<smem>>
    %278 = vector.broadcast %277 : f32 to vector<16x128xf32>
    %279 = arith.mulf %278, %276 : vector<16x128xf32>
    %280 = arith.addf %266, %279 : vector<16x128xf32>
    %c66 = arith.constant 66 : index
    %281 = memref.load %arg6[%c66] : memref<272xf32, #tpu.memory_space<smem>>
    %282 = vector.broadcast %281 : f32 to vector<16x128xf32>
    %283 = arith.mulf %282, %276 : vector<16x128xf32>
    %284 = arith.addf %270, %283 : vector<16x128xf32>
    %cst_86 = arith.constant 1.500000e+01 : f32
    %285 = vector.broadcast %cst_86 : f32 to vector<16x128xf32>
    %286 = arith.subf %70, %285 : vector<16x128xf32>
    %cst_87 = arith.constant 0.000000e+00 : f32
    %cst_88 = arith.constant 1.000000e+00 : f32
    %287 = vector.broadcast %cst_87 : f32 to vector<16x128xf32>
    %288 = arith.maximumf %287, %286 : vector<16x128xf32>
    %289 = vector.broadcast %cst_88 : f32 to vector<16x128xf32>
    %290 = arith.minimumf %289, %288 : vector<16x128xf32>
    %c16 = arith.constant 16 : index
    %291 = memref.load %arg6[%c16] : memref<272xf32, #tpu.memory_space<smem>>
    %292 = vector.broadcast %291 : f32 to vector<16x128xf32>
    %293 = arith.mulf %292, %290 : vector<16x128xf32>
    %294 = arith.addf %280, %293 : vector<16x128xf32>
    %c67 = arith.constant 67 : index
    %295 = memref.load %arg6[%c67] : memref<272xf32, #tpu.memory_space<smem>>
    %296 = vector.broadcast %295 : f32 to vector<16x128xf32>
    %297 = arith.mulf %296, %290 : vector<16x128xf32>
    %298 = arith.addf %284, %297 : vector<16x128xf32>
    %cst_89 = arith.constant 1.600000e+01 : f32
    %299 = vector.broadcast %cst_89 : f32 to vector<16x128xf32>
    %300 = arith.mulf %299, %47 : vector<16x128xf32>
    %c17 = arith.constant 17 : index
    %301 = memref.load %arg6[%c17] : memref<272xf32, #tpu.memory_space<smem>>
    %302 = vector.broadcast %301 : f32 to vector<16x128xf32>
    %c68 = arith.constant 68 : index
    %303 = memref.load %arg6[%c68] : memref<272xf32, #tpu.memory_space<smem>>
    %304 = vector.broadcast %303 : f32 to vector<16x128xf32>
    %c102 = arith.constant 102 : index
    %305 = memref.load %arg6[%c102] : memref<272xf32, #tpu.memory_space<smem>>
    %306 = vector.broadcast %305 : f32 to vector<16x128xf32>
    %cst_90 = arith.constant 0.000000e+00 : f32
    %307 = vector.broadcast %cst_90 : f32 to vector<16x128xf32>
    %308 = arith.subf %300, %307 : vector<16x128xf32>
    %cst_91 = arith.constant 0.000000e+00 : f32
    %cst_92 = arith.constant 1.000000e+00 : f32
    %309 = vector.broadcast %cst_91 : f32 to vector<16x128xf32>
    %310 = arith.maximumf %309, %308 : vector<16x128xf32>
    %311 = vector.broadcast %cst_92 : f32 to vector<16x128xf32>
    %312 = arith.minimumf %311, %310 : vector<16x128xf32>
    %c18 = arith.constant 18 : index
    %313 = memref.load %arg6[%c18] : memref<272xf32, #tpu.memory_space<smem>>
    %314 = vector.broadcast %313 : f32 to vector<16x128xf32>
    %315 = arith.mulf %314, %312 : vector<16x128xf32>
    %316 = arith.addf %302, %315 : vector<16x128xf32>
    %c69 = arith.constant 69 : index
    %317 = memref.load %arg6[%c69] : memref<272xf32, #tpu.memory_space<smem>>
    %318 = vector.broadcast %317 : f32 to vector<16x128xf32>
    %319 = arith.mulf %318, %312 : vector<16x128xf32>
    %320 = arith.addf %304, %319 : vector<16x128xf32>
    %c103 = arith.constant 103 : index
    %321 = memref.load %arg6[%c103] : memref<272xf32, #tpu.memory_space<smem>>
    %322 = vector.broadcast %321 : f32 to vector<16x128xf32>
    %323 = arith.mulf %322, %312 : vector<16x128xf32>
    %324 = arith.addf %306, %323 : vector<16x128xf32>
    %cst_93 = arith.constant 1.000000e+00 : f32
    %325 = vector.broadcast %cst_93 : f32 to vector<16x128xf32>
    %326 = arith.subf %300, %325 : vector<16x128xf32>
    %cst_94 = arith.constant 0.000000e+00 : f32
    %cst_95 = arith.constant 1.000000e+00 : f32
    %327 = vector.broadcast %cst_94 : f32 to vector<16x128xf32>
    %328 = arith.maximumf %327, %326 : vector<16x128xf32>
    %329 = vector.broadcast %cst_95 : f32 to vector<16x128xf32>
    %330 = arith.minimumf %329, %328 : vector<16x128xf32>
    %c19 = arith.constant 19 : index
    %331 = memref.load %arg6[%c19] : memref<272xf32, #tpu.memory_space<smem>>
    %332 = vector.broadcast %331 : f32 to vector<16x128xf32>
    %333 = arith.mulf %332, %330 : vector<16x128xf32>
    %334 = arith.addf %316, %333 : vector<16x128xf32>
    %c70 = arith.constant 70 : index
    %335 = memref.load %arg6[%c70] : memref<272xf32, #tpu.memory_space<smem>>
    %336 = vector.broadcast %335 : f32 to vector<16x128xf32>
    %337 = arith.mulf %336, %330 : vector<16x128xf32>
    %338 = arith.addf %320, %337 : vector<16x128xf32>
    %c104 = arith.constant 104 : index
    %339 = memref.load %arg6[%c104] : memref<272xf32, #tpu.memory_space<smem>>
    %340 = vector.broadcast %339 : f32 to vector<16x128xf32>
    %341 = arith.mulf %340, %330 : vector<16x128xf32>
    %342 = arith.addf %324, %341 : vector<16x128xf32>
    %cst_96 = arith.constant 2.000000e+00 : f32
    %343 = vector.broadcast %cst_96 : f32 to vector<16x128xf32>
    %344 = arith.subf %300, %343 : vector<16x128xf32>
    %cst_97 = arith.constant 0.000000e+00 : f32
    %cst_98 = arith.constant 1.000000e+00 : f32
    %345 = vector.broadcast %cst_97 : f32 to vector<16x128xf32>
    %346 = arith.maximumf %345, %344 : vector<16x128xf32>
    %347 = vector.broadcast %cst_98 : f32 to vector<16x128xf32>
    %348 = arith.minimumf %347, %346 : vector<16x128xf32>
    %c20 = arith.constant 20 : index
    %349 = memref.load %arg6[%c20] : memref<272xf32, #tpu.memory_space<smem>>
    %350 = vector.broadcast %349 : f32 to vector<16x128xf32>
    %351 = arith.mulf %350, %348 : vector<16x128xf32>
    %352 = arith.addf %334, %351 : vector<16x128xf32>
    %c71 = arith.constant 71 : index
    %353 = memref.load %arg6[%c71] : memref<272xf32, #tpu.memory_space<smem>>
    %354 = vector.broadcast %353 : f32 to vector<16x128xf32>
    %355 = arith.mulf %354, %348 : vector<16x128xf32>
    %356 = arith.addf %338, %355 : vector<16x128xf32>
    %c105 = arith.constant 105 : index
    %357 = memref.load %arg6[%c105] : memref<272xf32, #tpu.memory_space<smem>>
    %358 = vector.broadcast %357 : f32 to vector<16x128xf32>
    %359 = arith.mulf %358, %348 : vector<16x128xf32>
    %360 = arith.addf %342, %359 : vector<16x128xf32>
    %cst_99 = arith.constant 3.000000e+00 : f32
    %361 = vector.broadcast %cst_99 : f32 to vector<16x128xf32>
    %362 = arith.subf %300, %361 : vector<16x128xf32>
    %cst_100 = arith.constant 0.000000e+00 : f32
    %cst_101 = arith.constant 1.000000e+00 : f32
    %363 = vector.broadcast %cst_100 : f32 to vector<16x128xf32>
    %364 = arith.maximumf %363, %362 : vector<16x128xf32>
    %365 = vector.broadcast %cst_101 : f32 to vector<16x128xf32>
    %366 = arith.minimumf %365, %364 : vector<16x128xf32>
    %c21 = arith.constant 21 : index
    %367 = memref.load %arg6[%c21] : memref<272xf32, #tpu.memory_space<smem>>
    %368 = vector.broadcast %367 : f32 to vector<16x128xf32>
    %369 = arith.mulf %368, %366 : vector<16x128xf32>
    %370 = arith.addf %352, %369 : vector<16x128xf32>
    %c72 = arith.constant 72 : index
    %371 = memref.load %arg6[%c72] : memref<272xf32, #tpu.memory_space<smem>>
    %372 = vector.broadcast %371 : f32 to vector<16x128xf32>
    %373 = arith.mulf %372, %366 : vector<16x128xf32>
    %374 = arith.addf %356, %373 : vector<16x128xf32>
    %c106 = arith.constant 106 : index
    %375 = memref.load %arg6[%c106] : memref<272xf32, #tpu.memory_space<smem>>
    %376 = vector.broadcast %375 : f32 to vector<16x128xf32>
    %377 = arith.mulf %376, %366 : vector<16x128xf32>
    %378 = arith.addf %360, %377 : vector<16x128xf32>
    %cst_102 = arith.constant 4.000000e+00 : f32
    %379 = vector.broadcast %cst_102 : f32 to vector<16x128xf32>
    %380 = arith.subf %300, %379 : vector<16x128xf32>
    %cst_103 = arith.constant 0.000000e+00 : f32
    %cst_104 = arith.constant 1.000000e+00 : f32
    %381 = vector.broadcast %cst_103 : f32 to vector<16x128xf32>
    %382 = arith.maximumf %381, %380 : vector<16x128xf32>
    %383 = vector.broadcast %cst_104 : f32 to vector<16x128xf32>
    %384 = arith.minimumf %383, %382 : vector<16x128xf32>
    %c22 = arith.constant 22 : index
    %385 = memref.load %arg6[%c22] : memref<272xf32, #tpu.memory_space<smem>>
    %386 = vector.broadcast %385 : f32 to vector<16x128xf32>
    %387 = arith.mulf %386, %384 : vector<16x128xf32>
    %388 = arith.addf %370, %387 : vector<16x128xf32>
    %c73 = arith.constant 73 : index
    %389 = memref.load %arg6[%c73] : memref<272xf32, #tpu.memory_space<smem>>
    %390 = vector.broadcast %389 : f32 to vector<16x128xf32>
    %391 = arith.mulf %390, %384 : vector<16x128xf32>
    %392 = arith.addf %374, %391 : vector<16x128xf32>
    %c107 = arith.constant 107 : index
    %393 = memref.load %arg6[%c107] : memref<272xf32, #tpu.memory_space<smem>>
    %394 = vector.broadcast %393 : f32 to vector<16x128xf32>
    %395 = arith.mulf %394, %384 : vector<16x128xf32>
    %396 = arith.addf %378, %395 : vector<16x128xf32>
    %cst_105 = arith.constant 5.000000e+00 : f32
    %397 = vector.broadcast %cst_105 : f32 to vector<16x128xf32>
    %398 = arith.subf %300, %397 : vector<16x128xf32>
    %cst_106 = arith.constant 0.000000e+00 : f32
    %cst_107 = arith.constant 1.000000e+00 : f32
    %399 = vector.broadcast %cst_106 : f32 to vector<16x128xf32>
    %400 = arith.maximumf %399, %398 : vector<16x128xf32>
    %401 = vector.broadcast %cst_107 : f32 to vector<16x128xf32>
    %402 = arith.minimumf %401, %400 : vector<16x128xf32>
    %c23 = arith.constant 23 : index
    %403 = memref.load %arg6[%c23] : memref<272xf32, #tpu.memory_space<smem>>
    %404 = vector.broadcast %403 : f32 to vector<16x128xf32>
    %405 = arith.mulf %404, %402 : vector<16x128xf32>
    %406 = arith.addf %388, %405 : vector<16x128xf32>
    %c74 = arith.constant 74 : index
    %407 = memref.load %arg6[%c74] : memref<272xf32, #tpu.memory_space<smem>>
    %408 = vector.broadcast %407 : f32 to vector<16x128xf32>
    %409 = arith.mulf %408, %402 : vector<16x128xf32>
    %410 = arith.addf %392, %409 : vector<16x128xf32>
    %c108 = arith.constant 108 : index
    %411 = memref.load %arg6[%c108] : memref<272xf32, #tpu.memory_space<smem>>
    %412 = vector.broadcast %411 : f32 to vector<16x128xf32>
    %413 = arith.mulf %412, %402 : vector<16x128xf32>
    %414 = arith.addf %396, %413 : vector<16x128xf32>
    %cst_108 = arith.constant 6.000000e+00 : f32
    %415 = vector.broadcast %cst_108 : f32 to vector<16x128xf32>
    %416 = arith.subf %300, %415 : vector<16x128xf32>
    %cst_109 = arith.constant 0.000000e+00 : f32
    %cst_110 = arith.constant 1.000000e+00 : f32
    %417 = vector.broadcast %cst_109 : f32 to vector<16x128xf32>
    %418 = arith.maximumf %417, %416 : vector<16x128xf32>
    %419 = vector.broadcast %cst_110 : f32 to vector<16x128xf32>
    %420 = arith.minimumf %419, %418 : vector<16x128xf32>
    %c24 = arith.constant 24 : index
    %421 = memref.load %arg6[%c24] : memref<272xf32, #tpu.memory_space<smem>>
    %422 = vector.broadcast %421 : f32 to vector<16x128xf32>
    %423 = arith.mulf %422, %420 : vector<16x128xf32>
    %424 = arith.addf %406, %423 : vector<16x128xf32>
    %c75 = arith.constant 75 : index
    %425 = memref.load %arg6[%c75] : memref<272xf32, #tpu.memory_space<smem>>
    %426 = vector.broadcast %425 : f32 to vector<16x128xf32>
    %427 = arith.mulf %426, %420 : vector<16x128xf32>
    %428 = arith.addf %410, %427 : vector<16x128xf32>
    %c109 = arith.constant 109 : index
    %429 = memref.load %arg6[%c109] : memref<272xf32, #tpu.memory_space<smem>>
    %430 = vector.broadcast %429 : f32 to vector<16x128xf32>
    %431 = arith.mulf %430, %420 : vector<16x128xf32>
    %432 = arith.addf %414, %431 : vector<16x128xf32>
    %cst_111 = arith.constant 7.000000e+00 : f32
    %433 = vector.broadcast %cst_111 : f32 to vector<16x128xf32>
    %434 = arith.subf %300, %433 : vector<16x128xf32>
    %cst_112 = arith.constant 0.000000e+00 : f32
    %cst_113 = arith.constant 1.000000e+00 : f32
    %435 = vector.broadcast %cst_112 : f32 to vector<16x128xf32>
    %436 = arith.maximumf %435, %434 : vector<16x128xf32>
    %437 = vector.broadcast %cst_113 : f32 to vector<16x128xf32>
    %438 = arith.minimumf %437, %436 : vector<16x128xf32>
    %c25 = arith.constant 25 : index
    %439 = memref.load %arg6[%c25] : memref<272xf32, #tpu.memory_space<smem>>
    %440 = vector.broadcast %439 : f32 to vector<16x128xf32>
    %441 = arith.mulf %440, %438 : vector<16x128xf32>
    %442 = arith.addf %424, %441 : vector<16x128xf32>
    %c76 = arith.constant 76 : index
    %443 = memref.load %arg6[%c76] : memref<272xf32, #tpu.memory_space<smem>>
    %444 = vector.broadcast %443 : f32 to vector<16x128xf32>
    %445 = arith.mulf %444, %438 : vector<16x128xf32>
    %446 = arith.addf %428, %445 : vector<16x128xf32>
    %c110 = arith.constant 110 : index
    %447 = memref.load %arg6[%c110] : memref<272xf32, #tpu.memory_space<smem>>
    %448 = vector.broadcast %447 : f32 to vector<16x128xf32>
    %449 = arith.mulf %448, %438 : vector<16x128xf32>
    %450 = arith.addf %432, %449 : vector<16x128xf32>
    %cst_114 = arith.constant 8.000000e+00 : f32
    %451 = vector.broadcast %cst_114 : f32 to vector<16x128xf32>
    %452 = arith.subf %300, %451 : vector<16x128xf32>
    %cst_115 = arith.constant 0.000000e+00 : f32
    %cst_116 = arith.constant 1.000000e+00 : f32
    %453 = vector.broadcast %cst_115 : f32 to vector<16x128xf32>
    %454 = arith.maximumf %453, %452 : vector<16x128xf32>
    %455 = vector.broadcast %cst_116 : f32 to vector<16x128xf32>
    %456 = arith.minimumf %455, %454 : vector<16x128xf32>
    %c26 = arith.constant 26 : index
    %457 = memref.load %arg6[%c26] : memref<272xf32, #tpu.memory_space<smem>>
    %458 = vector.broadcast %457 : f32 to vector<16x128xf32>
    %459 = arith.mulf %458, %456 : vector<16x128xf32>
    %460 = arith.addf %442, %459 : vector<16x128xf32>
    %c77 = arith.constant 77 : index
    %461 = memref.load %arg6[%c77] : memref<272xf32, #tpu.memory_space<smem>>
    %462 = vector.broadcast %461 : f32 to vector<16x128xf32>
    %463 = arith.mulf %462, %456 : vector<16x128xf32>
    %464 = arith.addf %446, %463 : vector<16x128xf32>
    %c111 = arith.constant 111 : index
    %465 = memref.load %arg6[%c111] : memref<272xf32, #tpu.memory_space<smem>>
    %466 = vector.broadcast %465 : f32 to vector<16x128xf32>
    %467 = arith.mulf %466, %456 : vector<16x128xf32>
    %468 = arith.addf %450, %467 : vector<16x128xf32>
    %cst_117 = arith.constant 9.000000e+00 : f32
    %469 = vector.broadcast %cst_117 : f32 to vector<16x128xf32>
    %470 = arith.subf %300, %469 : vector<16x128xf32>
    %cst_118 = arith.constant 0.000000e+00 : f32
    %cst_119 = arith.constant 1.000000e+00 : f32
    %471 = vector.broadcast %cst_118 : f32 to vector<16x128xf32>
    %472 = arith.maximumf %471, %470 : vector<16x128xf32>
    %473 = vector.broadcast %cst_119 : f32 to vector<16x128xf32>
    %474 = arith.minimumf %473, %472 : vector<16x128xf32>
    %c27 = arith.constant 27 : index
    %475 = memref.load %arg6[%c27] : memref<272xf32, #tpu.memory_space<smem>>
    %476 = vector.broadcast %475 : f32 to vector<16x128xf32>
    %477 = arith.mulf %476, %474 : vector<16x128xf32>
    %478 = arith.addf %460, %477 : vector<16x128xf32>
    %c78 = arith.constant 78 : index
    %479 = memref.load %arg6[%c78] : memref<272xf32, #tpu.memory_space<smem>>
    %480 = vector.broadcast %479 : f32 to vector<16x128xf32>
    %481 = arith.mulf %480, %474 : vector<16x128xf32>
    %482 = arith.addf %464, %481 : vector<16x128xf32>
    %c112 = arith.constant 112 : index
    %483 = memref.load %arg6[%c112] : memref<272xf32, #tpu.memory_space<smem>>
    %484 = vector.broadcast %483 : f32 to vector<16x128xf32>
    %485 = arith.mulf %484, %474 : vector<16x128xf32>
    %486 = arith.addf %468, %485 : vector<16x128xf32>
    %cst_120 = arith.constant 1.000000e+01 : f32
    %487 = vector.broadcast %cst_120 : f32 to vector<16x128xf32>
    %488 = arith.subf %300, %487 : vector<16x128xf32>
    %cst_121 = arith.constant 0.000000e+00 : f32
    %cst_122 = arith.constant 1.000000e+00 : f32
    %489 = vector.broadcast %cst_121 : f32 to vector<16x128xf32>
    %490 = arith.maximumf %489, %488 : vector<16x128xf32>
    %491 = vector.broadcast %cst_122 : f32 to vector<16x128xf32>
    %492 = arith.minimumf %491, %490 : vector<16x128xf32>
    %c28 = arith.constant 28 : index
    %493 = memref.load %arg6[%c28] : memref<272xf32, #tpu.memory_space<smem>>
    %494 = vector.broadcast %493 : f32 to vector<16x128xf32>
    %495 = arith.mulf %494, %492 : vector<16x128xf32>
    %496 = arith.addf %478, %495 : vector<16x128xf32>
    %c79 = arith.constant 79 : index
    %497 = memref.load %arg6[%c79] : memref<272xf32, #tpu.memory_space<smem>>
    %498 = vector.broadcast %497 : f32 to vector<16x128xf32>
    %499 = arith.mulf %498, %492 : vector<16x128xf32>
    %500 = arith.addf %482, %499 : vector<16x128xf32>
    %c113 = arith.constant 113 : index
    %501 = memref.load %arg6[%c113] : memref<272xf32, #tpu.memory_space<smem>>
    %502 = vector.broadcast %501 : f32 to vector<16x128xf32>
    %503 = arith.mulf %502, %492 : vector<16x128xf32>
    %504 = arith.addf %486, %503 : vector<16x128xf32>
    %cst_123 = arith.constant 1.100000e+01 : f32
    %505 = vector.broadcast %cst_123 : f32 to vector<16x128xf32>
    %506 = arith.subf %300, %505 : vector<16x128xf32>
    %cst_124 = arith.constant 0.000000e+00 : f32
    %cst_125 = arith.constant 1.000000e+00 : f32
    %507 = vector.broadcast %cst_124 : f32 to vector<16x128xf32>
    %508 = arith.maximumf %507, %506 : vector<16x128xf32>
    %509 = vector.broadcast %cst_125 : f32 to vector<16x128xf32>
    %510 = arith.minimumf %509, %508 : vector<16x128xf32>
    %c29 = arith.constant 29 : index
    %511 = memref.load %arg6[%c29] : memref<272xf32, #tpu.memory_space<smem>>
    %512 = vector.broadcast %511 : f32 to vector<16x128xf32>
    %513 = arith.mulf %512, %510 : vector<16x128xf32>
    %514 = arith.addf %496, %513 : vector<16x128xf32>
    %c80 = arith.constant 80 : index
    %515 = memref.load %arg6[%c80] : memref<272xf32, #tpu.memory_space<smem>>
    %516 = vector.broadcast %515 : f32 to vector<16x128xf32>
    %517 = arith.mulf %516, %510 : vector<16x128xf32>
    %518 = arith.addf %500, %517 : vector<16x128xf32>
    %c114 = arith.constant 114 : index
    %519 = memref.load %arg6[%c114] : memref<272xf32, #tpu.memory_space<smem>>
    %520 = vector.broadcast %519 : f32 to vector<16x128xf32>
    %521 = arith.mulf %520, %510 : vector<16x128xf32>
    %522 = arith.addf %504, %521 : vector<16x128xf32>
    %cst_126 = arith.constant 1.200000e+01 : f32
    %523 = vector.broadcast %cst_126 : f32 to vector<16x128xf32>
    %524 = arith.subf %300, %523 : vector<16x128xf32>
    %cst_127 = arith.constant 0.000000e+00 : f32
    %cst_128 = arith.constant 1.000000e+00 : f32
    %525 = vector.broadcast %cst_127 : f32 to vector<16x128xf32>
    %526 = arith.maximumf %525, %524 : vector<16x128xf32>
    %527 = vector.broadcast %cst_128 : f32 to vector<16x128xf32>
    %528 = arith.minimumf %527, %526 : vector<16x128xf32>
    %c30 = arith.constant 30 : index
    %529 = memref.load %arg6[%c30] : memref<272xf32, #tpu.memory_space<smem>>
    %530 = vector.broadcast %529 : f32 to vector<16x128xf32>
    %531 = arith.mulf %530, %528 : vector<16x128xf32>
    %532 = arith.addf %514, %531 : vector<16x128xf32>
    %c81 = arith.constant 81 : index
    %533 = memref.load %arg6[%c81] : memref<272xf32, #tpu.memory_space<smem>>
    %534 = vector.broadcast %533 : f32 to vector<16x128xf32>
    %535 = arith.mulf %534, %528 : vector<16x128xf32>
    %536 = arith.addf %518, %535 : vector<16x128xf32>
    %c115 = arith.constant 115 : index
    %537 = memref.load %arg6[%c115] : memref<272xf32, #tpu.memory_space<smem>>
    %538 = vector.broadcast %537 : f32 to vector<16x128xf32>
    %539 = arith.mulf %538, %528 : vector<16x128xf32>
    %540 = arith.addf %522, %539 : vector<16x128xf32>
    %cst_129 = arith.constant 1.300000e+01 : f32
    %541 = vector.broadcast %cst_129 : f32 to vector<16x128xf32>
    %542 = arith.subf %300, %541 : vector<16x128xf32>
    %cst_130 = arith.constant 0.000000e+00 : f32
    %cst_131 = arith.constant 1.000000e+00 : f32
    %543 = vector.broadcast %cst_130 : f32 to vector<16x128xf32>
    %544 = arith.maximumf %543, %542 : vector<16x128xf32>
    %545 = vector.broadcast %cst_131 : f32 to vector<16x128xf32>
    %546 = arith.minimumf %545, %544 : vector<16x128xf32>
    %c31 = arith.constant 31 : index
    %547 = memref.load %arg6[%c31] : memref<272xf32, #tpu.memory_space<smem>>
    %548 = vector.broadcast %547 : f32 to vector<16x128xf32>
    %549 = arith.mulf %548, %546 : vector<16x128xf32>
    %550 = arith.addf %532, %549 : vector<16x128xf32>
    %c82 = arith.constant 82 : index
    %551 = memref.load %arg6[%c82] : memref<272xf32, #tpu.memory_space<smem>>
    %552 = vector.broadcast %551 : f32 to vector<16x128xf32>
    %553 = arith.mulf %552, %546 : vector<16x128xf32>
    %554 = arith.addf %536, %553 : vector<16x128xf32>
    %c116 = arith.constant 116 : index
    %555 = memref.load %arg6[%c116] : memref<272xf32, #tpu.memory_space<smem>>
    %556 = vector.broadcast %555 : f32 to vector<16x128xf32>
    %557 = arith.mulf %556, %546 : vector<16x128xf32>
    %558 = arith.addf %540, %557 : vector<16x128xf32>
    %cst_132 = arith.constant 1.400000e+01 : f32
    %559 = vector.broadcast %cst_132 : f32 to vector<16x128xf32>
    %560 = arith.subf %300, %559 : vector<16x128xf32>
    %cst_133 = arith.constant 0.000000e+00 : f32
    %cst_134 = arith.constant 1.000000e+00 : f32
    %561 = vector.broadcast %cst_133 : f32 to vector<16x128xf32>
    %562 = arith.maximumf %561, %560 : vector<16x128xf32>
    %563 = vector.broadcast %cst_134 : f32 to vector<16x128xf32>
    %564 = arith.minimumf %563, %562 : vector<16x128xf32>
    %c32 = arith.constant 32 : index
    %565 = memref.load %arg6[%c32] : memref<272xf32, #tpu.memory_space<smem>>
    %566 = vector.broadcast %565 : f32 to vector<16x128xf32>
    %567 = arith.mulf %566, %564 : vector<16x128xf32>
    %568 = arith.addf %550, %567 : vector<16x128xf32>
    %c83 = arith.constant 83 : index
    %569 = memref.load %arg6[%c83] : memref<272xf32, #tpu.memory_space<smem>>
    %570 = vector.broadcast %569 : f32 to vector<16x128xf32>
    %571 = arith.mulf %570, %564 : vector<16x128xf32>
    %572 = arith.addf %554, %571 : vector<16x128xf32>
    %c117 = arith.constant 117 : index
    %573 = memref.load %arg6[%c117] : memref<272xf32, #tpu.memory_space<smem>>
    %574 = vector.broadcast %573 : f32 to vector<16x128xf32>
    %575 = arith.mulf %574, %564 : vector<16x128xf32>
    %576 = arith.addf %558, %575 : vector<16x128xf32>
    %cst_135 = arith.constant 1.500000e+01 : f32
    %577 = vector.broadcast %cst_135 : f32 to vector<16x128xf32>
    %578 = arith.subf %300, %577 : vector<16x128xf32>
    %cst_136 = arith.constant 0.000000e+00 : f32
    %cst_137 = arith.constant 1.000000e+00 : f32
    %579 = vector.broadcast %cst_136 : f32 to vector<16x128xf32>
    %580 = arith.maximumf %579, %578 : vector<16x128xf32>
    %581 = vector.broadcast %cst_137 : f32 to vector<16x128xf32>
    %582 = arith.minimumf %581, %580 : vector<16x128xf32>
    %c33 = arith.constant 33 : index
    %583 = memref.load %arg6[%c33] : memref<272xf32, #tpu.memory_space<smem>>
    %584 = vector.broadcast %583 : f32 to vector<16x128xf32>
    %585 = arith.mulf %584, %582 : vector<16x128xf32>
    %586 = arith.addf %568, %585 : vector<16x128xf32>
    %c84 = arith.constant 84 : index
    %587 = memref.load %arg6[%c84] : memref<272xf32, #tpu.memory_space<smem>>
    %588 = vector.broadcast %587 : f32 to vector<16x128xf32>
    %589 = arith.mulf %588, %582 : vector<16x128xf32>
    %590 = arith.addf %572, %589 : vector<16x128xf32>
    %c118 = arith.constant 118 : index
    %591 = memref.load %arg6[%c118] : memref<272xf32, #tpu.memory_space<smem>>
    %592 = vector.broadcast %591 : f32 to vector<16x128xf32>
    %593 = arith.mulf %592, %582 : vector<16x128xf32>
    %594 = arith.addf %576, %593 : vector<16x128xf32>
    %cst_138 = arith.constant 5.000000e-01 : f32
    %595 = vector.broadcast %cst_138 : f32 to vector<16x128xf32>
    %596 = arith.subf %594, %595 : vector<16x128xf32>
    %597 = math.absf %596 : vector<16x128xf32>
    %cst_139 = arith.constant dense<0.000000e+00> : vector<128xf32>
    %598 = vector.multi_reduction <add>, %597, %cst_139 [0] : vector<16x128xf32> to vector<128xf32>
    %599 = vector.shape_cast %598 : vector<128xf32> to vector<1x128xf32>
    %cst_140 = arith.constant 6.250000e-02 : f32
    %600 = vector.broadcast %cst_140 : f32 to vector<1x128xf32>
    %601 = arith.mulf %599, %600 : vector<1x128xf32>
    %602 = arith.mulf %294, %586 : vector<16x128xf32>
    %603 = arith.mulf %298, %590 : vector<16x128xf32>
    %c0_141 = arith.constant 0 : index
    %c0_142 = arith.constant 0 : index
    %604 = vector.load %arg8[%c0_141, %c0_142] : memref<16x128xf32, #tpu.memory_space<vmem>>, vector<16x128xf32>
    tpu.vector_store %arg8[%c0_141, %c0_142], %603 {strides = array<i32>} : memref<16x128xf32, #tpu.memory_space<vmem>>, vector<16x128xf32>,
    %cst_143 = arith.constant 1.000000e+00 : f32
    %605 = vector.broadcast %cst_143 : f32 to vector<16x128xf32>
    %606 = arith.subf %605, %68 : vector<16x128xf32>
    %c0_144 = arith.constant 0 : index
    %c0_145 = arith.constant 0 : index
    %607 = vector.load %arg8[%c0_144, %c0_145] : memref<16x128xf32, #tpu.memory_space<vmem>>, vector<4x128xf32>
    %608 = tpu.concatenate %607, %607, %607, %607 in 0 : vector<4x128xf32>, vector<4x128xf32>, vector<4x128xf32>, vector<4x128xf32> -> vector<16x128xf32>
    %c0_146 = arith.constant 0 : index
    %c0_147 = arith.constant 0 : index
    %609 = vector.load %arg8[%c0_146, %c0_147] : memref<16x128xf32, #tpu.memory_space<vmem>>, vector<1x128xf32>
    %610 = vector.shape_cast %609 : vector<1x128xf32> to vector<1x128xf32>
    %611 = vector.broadcast %610 : vector<1x128xf32> to vector<4x128xf32>
    %c1_148 = arith.constant 1 : index
    %c0_149 = arith.constant 0 : index
    %612 = vector.load %arg8[%c1_148, %c0_149] : memref<16x128xf32, #tpu.memory_space<vmem>>, vector<1x128xf32>
    %613 = vector.shape_cast %612 : vector<1x128xf32> to vector<1x128xf32>
    %614 = vector.broadcast %613 : vector<1x128xf32> to vector<4x128xf32>
    %c2_150 = arith.constant 2 : index
    %c0_151 = arith.constant 0 : index
    %615 = vector.load %arg8[%c2_150, %c0_151] : memref<16x128xf32, #tpu.memory_space<vmem>>, vector<1x128xf32>
    %616 = vector.shape_cast %615 : vector<1x128xf32> to vector<1x128xf32>
    %617 = vector.broadcast %616 : vector<1x128xf32> to vector<4x128xf32>
    %c3_152 = arith.constant 3 : index
    %c0_153 = arith.constant 0 : index
    %618 = vector.load %arg8[%c3_152, %c0_153] : memref<16x128xf32, #tpu.memory_space<vmem>>, vector<1x128xf32>
    %619 = vector.shape_cast %618 : vector<1x128xf32> to vector<1x128xf32>
    %620 = vector.broadcast %619 : vector<1x128xf32> to vector<4x128xf32>
    %621 = tpu.concatenate %611, %614, %617, %620 in 0 : vector<4x128xf32>, vector<4x128xf32>, vector<4x128xf32>, vector<4x128xf32> -> vector<16x128xf32>
    %622 = arith.subf %621, %608 : vector<16x128xf32>
    %623 = math.absf %622 : vector<16x128xf32>
    %cst_154 = arith.constant 1.000000e+00 : f32
    %624 = vector.broadcast %cst_154 : f32 to vector<16x128xf32>
    %625 = arith.subf %624, %623 : vector<16x128xf32>
    %c4_155 = arith.constant 4 : index
    %c0_156 = arith.constant 0 : index
    %626 = vector.load %arg8[%c4_155, %c0_156] : memref<16x128xf32, #tpu.memory_space<vmem>>, vector<4x128xf32>
    %627 = tpu.concatenate %626, %626, %626, %626 in 0 : vector<4x128xf32>, vector<4x128xf32>, vector<4x128xf32>, vector<4x128xf32> -> vector<16x128xf32>
    %c4_157 = arith.constant 4 : index
    %c0_158 = arith.constant 0 : index
    %628 = vector.load %arg8[%c4_157, %c0_158] : memref<16x128xf32, #tpu.memory_space<vmem>>, vector<1x128xf32>
    %629 = vector.shape_cast %628 : vector<1x128xf32> to vector<1x128xf32>
    %630 = vector.broadcast %629 : vector<1x128xf32> to vector<4x128xf32>
    %c5_159 = arith.constant 5 : index
    %c0_160 = arith.constant 0 : index
    %631 = vector.load %arg8[%c5_159, %c0_160] : memref<16x128xf32, #tpu.memory_space<vmem>>, vector<1x128xf32>
    %632 = vector.shape_cast %631 : vector<1x128xf32> to vector<1x128xf32>
    %633 = vector.broadcast %632 : vector<1x128xf32> to vector<4x128xf32>
    %c6_161 = arith.constant 6 : index
    %c0_162 = arith.constant 0 : index
    %634 = vector.load %arg8[%c6_161, %c0_162] : memref<16x128xf32, #tpu.memory_space<vmem>>, vector<1x128xf32>
    %635 = vector.shape_cast %634 : vector<1x128xf32> to vector<1x128xf32>
    %636 = vector.broadcast %635 : vector<1x128xf32> to vector<4x128xf32>
    %c7_163 = arith.constant 7 : index
    %c0_164 = arith.constant 0 : index
    %637 = vector.load %arg8[%c7_163, %c0_164] : memref<16x128xf32, #tpu.memory_space<vmem>>, vector<1x128xf32>
    %638 = vector.shape_cast %637 : vector<1x128xf32> to vector<1x128xf32>
    %639 = vector.broadcast %638 : vector<1x128xf32> to vector<4x128xf32>
    %640 = tpu.concatenate %630, %633, %636, %639 in 0 : vector<4x128xf32>, vector<4x128xf32>, vector<4x128xf32>, vector<4x128xf32> -> vector<16x128xf32>
    %641 = arith.subf %640, %627 : vector<16x128xf32>
    %642 = math.absf %641 : vector<16x128xf32>
    %cst_165 = arith.constant 1.000000e+00 : f32
    %643 = vector.broadcast %cst_165 : f32 to vector<16x128xf32>
    %644 = arith.subf %643, %642 : vector<16x128xf32>
    %c8_166 = arith.constant 8 : index
    %c0_167 = arith.constant 0 : index
    %645 = vector.load %arg8[%c8_166, %c0_167] : memref<16x128xf32, #tpu.memory_space<vmem>>, vector<4x128xf32>
    %646 = tpu.concatenate %645, %645, %645, %645 in 0 : vector<4x128xf32>, vector<4x128xf32>, vector<4x128xf32>, vector<4x128xf32> -> vector<16x128xf32>
    %c8_168 = arith.constant 8 : index
    %c0_169 = arith.constant 0 : index
    %647 = vector.load %arg8[%c8_168, %c0_169] : memref<16x128xf32, #tpu.memory_space<vmem>>, vector<1x128xf32>
    %648 = vector.shape_cast %647 : vector<1x128xf32> to vector<1x128xf32>
    %649 = vector.broadcast %648 : vector<1x128xf32> to vector<4x128xf32>
    %c9_170 = arith.constant 9 : index
    %c0_171 = arith.constant 0 : index
    %650 = vector.load %arg8[%c9_170, %c0_171] : memref<16x128xf32, #tpu.memory_space<vmem>>, vector<1x128xf32>
    %651 = vector.shape_cast %650 : vector<1x128xf32> to vector<1x128xf32>
    %652 = vector.broadcast %651 : vector<1x128xf32> to vector<4x128xf32>
    %c10_172 = arith.constant 10 : index
    %c0_173 = arith.constant 0 : index
    %653 = vector.load %arg8[%c10_172, %c0_173] : memref<16x128xf32, #tpu.memory_space<vmem>>, vector<1x128xf32>
    %654 = vector.shape_cast %653 : vector<1x128xf32> to vector<1x128xf32>
    %655 = vector.broadcast %654 : vector<1x128xf32> to vector<4x128xf32>
    %c11_174 = arith.constant 11 : index
    %c0_175 = arith.constant 0 : index
    %656 = vector.load %arg8[%c11_174, %c0_175] : memref<16x128xf32, #tpu.memory_space<vmem>>, vector<1x128xf32>
    %657 = vector.shape_cast %656 : vector<1x128xf32> to vector<1x128xf32>
    %658 = vector.broadcast %657 : vector<1x128xf32> to vector<4x128xf32>
    %659 = tpu.concatenate %649, %652, %655, %658 in 0 : vector<4x128xf32>, vector<4x128xf32>, vector<4x128xf32>, vector<4x128xf32> -> vector<16x128xf32>
    %660 = arith.subf %659, %646 : vector<16x128xf32>
    %661 = math.absf %660 : vector<16x128xf32>
    %cst_176 = arith.constant 1.000000e+00 : f32
    %662 = vector.broadcast %cst_176 : f32 to vector<16x128xf32>
    %663 = arith.subf %662, %661 : vector<16x128xf32>
    %c12_177 = arith.constant 12 : index
    %c0_178 = arith.constant 0 : index
    %664 = vector.load %arg8[%c12_177, %c0_178] : memref<16x128xf32, #tpu.memory_space<vmem>>, vector<4x128xf32>
    %665 = tpu.concatenate %664, %664, %664, %664 in 0 : vector<4x128xf32>, vector<4x128xf32>, vector<4x128xf32>, vector<4x128xf32> -> vector<16x128xf32>
    %c12_179 = arith.constant 12 : index
    %c0_180 = arith.constant 0 : index
    %666 = vector.load %arg8[%c12_179, %c0_180] : memref<16x128xf32, #tpu.memory_space<vmem>>, vector<1x128xf32>
    %667 = vector.shape_cast %666 : vector<1x128xf32> to vector<1x128xf32>
    %668 = vector.broadcast %667 : vector<1x128xf32> to vector<4x128xf32>
    %c13_181 = arith.constant 13 : index
    %c0_182 = arith.constant 0 : index
    %669 = vector.load %arg8[%c13_181, %c0_182] : memref<16x128xf32, #tpu.memory_space<vmem>>, vector<1x128xf32>
    %670 = vector.shape_cast %669 : vector<1x128xf32> to vector<1x128xf32>
    %671 = vector.broadcast %670 : vector<1x128xf32> to vector<4x128xf32>
    %c14_183 = arith.constant 14 : index
    %c0_184 = arith.constant 0 : index
    %672 = vector.load %arg8[%c14_183, %c0_184] : memref<16x128xf32, #tpu.memory_space<vmem>>, vector<1x128xf32>
    %673 = vector.shape_cast %672 : vector<1x128xf32> to vector<1x128xf32>
    %674 = vector.broadcast %673 : vector<1x128xf32> to vector<4x128xf32>
    %c15_185 = arith.constant 15 : index
    %c0_186 = arith.constant 0 : index
    %675 = vector.load %arg8[%c15_185, %c0_186] : memref<16x128xf32, #tpu.memory_space<vmem>>, vector<1x128xf32>
    %676 = vector.shape_cast %675 : vector<1x128xf32> to vector<1x128xf32>
    %677 = vector.broadcast %676 : vector<1x128xf32> to vector<4x128xf32>
    %678 = tpu.concatenate %668, %671, %674, %677 in 0 : vector<4x128xf32>, vector<4x128xf32>, vector<4x128xf32>, vector<4x128xf32> -> vector<16x128xf32>
    %679 = arith.subf %678, %665 : vector<16x128xf32>
    %680 = math.absf %679 : vector<16x128xf32>
    %cst_187 = arith.constant 1.000000e+00 : f32
    %681 = vector.broadcast %cst_187 : f32 to vector<16x128xf32>
    %682 = arith.subf %681, %680 : vector<16x128xf32>
    %683 = tpu.concatenate %606, %625, %644, %663, %682 in 0 : vector<16x128xf32>, vector<16x128xf32>, vector<16x128xf32>, vector<16x128xf32>, vector<16x128xf32> -> vector<80x128xf32>
    %cst_188 = arith.constant 1.600000e+01 : f32
    %684 = vector.broadcast %cst_188 : f32 to vector<80x128xf32>
    %685 = arith.mulf %684, %683 : vector<80x128xf32>
    %c34 = arith.constant 34 : index
    %686 = memref.load %arg6[%c34] : memref<272xf32, #tpu.memory_space<smem>>
    %687 = vector.broadcast %686 : f32 to vector<80x128xf32>
    %c35 = arith.constant 35 : index
    %688 = memref.load %arg6[%c35] : memref<272xf32, #tpu.memory_space<smem>>
    %cst_189 = arith.constant 0.000000e+00 : f32
    %689 = vector.broadcast %cst_189 : f32 to vector<80x128xf32>
    %690 = arith.subf %685, %689 : vector<80x128xf32>
    %cst_190 = arith.constant 0.000000e+00 : f32
    %cst_191 = arith.constant 1.000000e+00 : f32
    %691 = vector.broadcast %cst_190 : f32 to vector<80x128xf32>
    %692 = arith.maximumf %691, %690 : vector<80x128xf32>
    %693 = vector.broadcast %cst_191 : f32 to vector<80x128xf32>
    %694 = arith.minimumf %693, %692 : vector<80x128xf32>
    %695 = vector.broadcast %688 : f32 to vector<80x128xf32>
    %696 = arith.mulf %695, %694 : vector<80x128xf32>
    %697 = arith.addf %687, %696 : vector<80x128xf32>
    %c36 = arith.constant 36 : index
    %698 = memref.load %arg6[%c36] : memref<272xf32, #tpu.memory_space<smem>>
    %cst_192 = arith.constant 1.000000e+00 : f32
    %699 = vector.broadcast %cst_192 : f32 to vector<80x128xf32>
    %700 = arith.subf %685, %699 : vector<80x128xf32>
    %cst_193 = arith.constant 0.000000e+00 : f32
    %cst_194 = arith.constant 1.000000e+00 : f32
    %701 = vector.broadcast %cst_193 : f32 to vector<80x128xf32>
    %702 = arith.maximumf %701, %700 : vector<80x128xf32>
    %703 = vector.broadcast %cst_194 : f32 to vector<80x128xf32>
    %704 = arith.minimumf %703, %702 : vector<80x128xf32>
    %705 = vector.broadcast %698 : f32 to vector<80x128xf32>
    %706 = arith.mulf %705, %704 : vector<80x128xf32>
    %707 = arith.addf %697, %706 : vector<80x128xf32>
    %c37 = arith.constant 37 : index
    %708 = memref.load %arg6[%c37] : memref<272xf32, #tpu.memory_space<smem>>
    %cst_195 = arith.constant 2.000000e+00 : f32
    %709 = vector.broadcast %cst_195 : f32 to vector<80x128xf32>
    %710 = arith.subf %685, %709 : vector<80x128xf32>
    %cst_196 = arith.constant 0.000000e+00 : f32
    %cst_197 = arith.constant 1.000000e+00 : f32
    %711 = vector.broadcast %cst_196 : f32 to vector<80x128xf32>
    %712 = arith.maximumf %711, %710 : vector<80x128xf32>
    %713 = vector.broadcast %cst_197 : f32 to vector<80x128xf32>
    %714 = arith.minimumf %713, %712 : vector<80x128xf32>
    %715 = vector.broadcast %708 : f32 to vector<80x128xf32>
    %716 = arith.mulf %715, %714 : vector<80x128xf32>
    %717 = arith.addf %707, %716 : vector<80x128xf32>
    %c38 = arith.constant 38 : index
    %718 = memref.load %arg6[%c38] : memref<272xf32, #tpu.memory_space<smem>>
    %cst_198 = arith.constant 3.000000e+00 : f32
    %719 = vector.broadcast %cst_198 : f32 to vector<80x128xf32>
    %720 = arith.subf %685, %719 : vector<80x128xf32>
    %cst_199 = arith.constant 0.000000e+00 : f32
    %cst_200 = arith.constant 1.000000e+00 : f32
    %721 = vector.broadcast %cst_199 : f32 to vector<80x128xf32>
    %722 = arith.maximumf %721, %720 : vector<80x128xf32>
    %723 = vector.broadcast %cst_200 : f32 to vector<80x128xf32>
    %724 = arith.minimumf %723, %722 : vector<80x128xf32>
    %725 = vector.broadcast %718 : f32 to vector<80x128xf32>
    %726 = arith.mulf %725, %724 : vector<80x128xf32>
    %727 = arith.addf %717, %726 : vector<80x128xf32>
    %c39 = arith.constant 39 : index
    %728 = memref.load %arg6[%c39] : memref<272xf32, #tpu.memory_space<smem>>
    %cst_201 = arith.constant 4.000000e+00 : f32
    %729 = vector.broadcast %cst_201 : f32 to vector<80x128xf32>
    %730 = arith.subf %685, %729 : vector<80x128xf32>
    %cst_202 = arith.constant 0.000000e+00 : f32
    %cst_203 = arith.constant 1.000000e+00 : f32
    %731 = vector.broadcast %cst_202 : f32 to vector<80x128xf32>
    %732 = arith.maximumf %731, %730 : vector<80x128xf32>
    %733 = vector.broadcast %cst_203 : f32 to vector<80x128xf32>
    %734 = arith.minimumf %733, %732 : vector<80x128xf32>
    %735 = vector.broadcast %728 : f32 to vector<80x128xf32>
    %736 = arith.mulf %735, %734 : vector<80x128xf32>
    %737 = arith.addf %727, %736 : vector<80x128xf32>
    %c40 = arith.constant 40 : index
    %738 = memref.load %arg6[%c40] : memref<272xf32, #tpu.memory_space<smem>>
    %cst_204 = arith.constant 5.000000e+00 : f32
    %739 = vector.broadcast %cst_204 : f32 to vector<80x128xf32>
    %740 = arith.subf %685, %739 : vector<80x128xf32>
    %cst_205 = arith.constant 0.000000e+00 : f32
    %cst_206 = arith.constant 1.000000e+00 : f32
    %741 = vector.broadcast %cst_205 : f32 to vector<80x128xf32>
    %742 = arith.maximumf %741, %740 : vector<80x128xf32>
    %743 = vector.broadcast %cst_206 : f32 to vector<80x128xf32>
    %744 = arith.minimumf %743, %742 : vector<80x128xf32>
    %745 = vector.broadcast %738 : f32 to vector<80x128xf32>
    %746 = arith.mulf %745, %744 : vector<80x128xf32>
    %747 = arith.addf %737, %746 : vector<80x128xf32>
    %c41 = arith.constant 41 : index
    %748 = memref.load %arg6[%c41] : memref<272xf32, #tpu.memory_space<smem>>
    %cst_207 = arith.constant 6.000000e+00 : f32
    %749 = vector.broadcast %cst_207 : f32 to vector<80x128xf32>
    %750 = arith.subf %685, %749 : vector<80x128xf32>
    %cst_208 = arith.constant 0.000000e+00 : f32
    %cst_209 = arith.constant 1.000000e+00 : f32
    %751 = vector.broadcast %cst_208 : f32 to vector<80x128xf32>
    %752 = arith.maximumf %751, %750 : vector<80x128xf32>
    %753 = vector.broadcast %cst_209 : f32 to vector<80x128xf32>
    %754 = arith.minimumf %753, %752 : vector<80x128xf32>
    %755 = vector.broadcast %748 : f32 to vector<80x128xf32>
    %756 = arith.mulf %755, %754 : vector<80x128xf32>
    %757 = arith.addf %747, %756 : vector<80x128xf32>
    %c42 = arith.constant 42 : index
    %758 = memref.load %arg6[%c42] : memref<272xf32, #tpu.memory_space<smem>>
    %cst_210 = arith.constant 7.000000e+00 : f32
    %759 = vector.broadcast %cst_210 : f32 to vector<80x128xf32>
    %760 = arith.subf %685, %759 : vector<80x128xf32>
    %cst_211 = arith.constant 0.000000e+00 : f32
    %cst_212 = arith.constant 1.000000e+00 : f32
    %761 = vector.broadcast %cst_211 : f32 to vector<80x128xf32>
    %762 = arith.maximumf %761, %760 : vector<80x128xf32>
    %763 = vector.broadcast %cst_212 : f32 to vector<80x128xf32>
    %764 = arith.minimumf %763, %762 : vector<80x128xf32>
    %765 = vector.broadcast %758 : f32 to vector<80x128xf32>
    %766 = arith.mulf %765, %764 : vector<80x128xf32>
    %767 = arith.addf %757, %766 : vector<80x128xf32>
    %c43 = arith.constant 43 : index
    %768 = memref.load %arg6[%c43] : memref<272xf32, #tpu.memory_space<smem>>
    %cst_213 = arith.constant 8.000000e+00 : f32
    %769 = vector.broadcast %cst_213 : f32 to vector<80x128xf32>
    %770 = arith.subf %685, %769 : vector<80x128xf32>
    %cst_214 = arith.constant 0.000000e+00 : f32
    %cst_215 = arith.constant 1.000000e+00 : f32
    %771 = vector.broadcast %cst_214 : f32 to vector<80x128xf32>
    %772 = arith.maximumf %771, %770 : vector<80x128xf32>
    %773 = vector.broadcast %cst_215 : f32 to vector<80x128xf32>
    %774 = arith.minimumf %773, %772 : vector<80x128xf32>
    %775 = vector.broadcast %768 : f32 to vector<80x128xf32>
    %776 = arith.mulf %775, %774 : vector<80x128xf32>
    %777 = arith.addf %767, %776 : vector<80x128xf32>
    %c44 = arith.constant 44 : index
    %778 = memref.load %arg6[%c44] : memref<272xf32, #tpu.memory_space<smem>>
    %cst_216 = arith.constant 9.000000e+00 : f32
    %779 = vector.broadcast %cst_216 : f32 to vector<80x128xf32>
    %780 = arith.subf %685, %779 : vector<80x128xf32>
    %cst_217 = arith.constant 0.000000e+00 : f32
    %cst_218 = arith.constant 1.000000e+00 : f32
    %781 = vector.broadcast %cst_217 : f32 to vector<80x128xf32>
    %782 = arith.maximumf %781, %780 : vector<80x128xf32>
    %783 = vector.broadcast %cst_218 : f32 to vector<80x128xf32>
    %784 = arith.minimumf %783, %782 : vector<80x128xf32>
    %785 = vector.broadcast %778 : f32 to vector<80x128xf32>
    %786 = arith.mulf %785, %784 : vector<80x128xf32>
    %787 = arith.addf %777, %786 : vector<80x128xf32>
    %c45 = arith.constant 45 : index
    %788 = memref.load %arg6[%c45] : memref<272xf32, #tpu.memory_space<smem>>
    %cst_219 = arith.constant 1.000000e+01 : f32
    %789 = vector.broadcast %cst_219 : f32 to vector<80x128xf32>
    %790 = arith.subf %685, %789 : vector<80x128xf32>
    %cst_220 = arith.constant 0.000000e+00 : f32
    %cst_221 = arith.constant 1.000000e+00 : f32
    %791 = vector.broadcast %cst_220 : f32 to vector<80x128xf32>
    %792 = arith.maximumf %791, %790 : vector<80x128xf32>
    %793 = vector.broadcast %cst_221 : f32 to vector<80x128xf32>
    %794 = arith.minimumf %793, %792 : vector<80x128xf32>
    %795 = vector.broadcast %788 : f32 to vector<80x128xf32>
    %796 = arith.mulf %795, %794 : vector<80x128xf32>
    %797 = arith.addf %787, %796 : vector<80x128xf32>
    %c46 = arith.constant 46 : index
    %798 = memref.load %arg6[%c46] : memref<272xf32, #tpu.memory_space<smem>>
    %cst_222 = arith.constant 1.100000e+01 : f32
    %799 = vector.broadcast %cst_222 : f32 to vector<80x128xf32>
    %800 = arith.subf %685, %799 : vector<80x128xf32>
    %cst_223 = arith.constant 0.000000e+00 : f32
    %cst_224 = arith.constant 1.000000e+00 : f32
    %801 = vector.broadcast %cst_223 : f32 to vector<80x128xf32>
    %802 = arith.maximumf %801, %800 : vector<80x128xf32>
    %803 = vector.broadcast %cst_224 : f32 to vector<80x128xf32>
    %804 = arith.minimumf %803, %802 : vector<80x128xf32>
    %805 = vector.broadcast %798 : f32 to vector<80x128xf32>
    %806 = arith.mulf %805, %804 : vector<80x128xf32>
    %807 = arith.addf %797, %806 : vector<80x128xf32>
    %c47 = arith.constant 47 : index
    %808 = memref.load %arg6[%c47] : memref<272xf32, #tpu.memory_space<smem>>
    %cst_225 = arith.constant 1.200000e+01 : f32
    %809 = vector.broadcast %cst_225 : f32 to vector<80x128xf32>
    %810 = arith.subf %685, %809 : vector<80x128xf32>
    %cst_226 = arith.constant 0.000000e+00 : f32
    %cst_227 = arith.constant 1.000000e+00 : f32
    %811 = vector.broadcast %cst_226 : f32 to vector<80x128xf32>
    %812 = arith.maximumf %811, %810 : vector<80x128xf32>
    %813 = vector.broadcast %cst_227 : f32 to vector<80x128xf32>
    %814 = arith.minimumf %813, %812 : vector<80x128xf32>
    %815 = vector.broadcast %808 : f32 to vector<80x128xf32>
    %816 = arith.mulf %815, %814 : vector<80x128xf32>
    %817 = arith.addf %807, %816 : vector<80x128xf32>
    %c48 = arith.constant 48 : index
    %818 = memref.load %arg6[%c48] : memref<272xf32, #tpu.memory_space<smem>>
    %cst_228 = arith.constant 1.300000e+01 : f32
    %819 = vector.broadcast %cst_228 : f32 to vector<80x128xf32>
    %820 = arith.subf %685, %819 : vector<80x128xf32>
    %cst_229 = arith.constant 0.000000e+00 : f32
    %cst_230 = arith.constant 1.000000e+00 : f32
    %821 = vector.broadcast %cst_229 : f32 to vector<80x128xf32>
    %822 = arith.maximumf %821, %820 : vector<80x128xf32>
    %823 = vector.broadcast %cst_230 : f32 to vector<80x128xf32>
    %824 = arith.minimumf %823, %822 : vector<80x128xf32>
    %825 = vector.broadcast %818 : f32 to vector<80x128xf32>
    %826 = arith.mulf %825, %824 : vector<80x128xf32>
    %827 = arith.addf %817, %826 : vector<80x128xf32>
    %c49 = arith.constant 49 : index
    %828 = memref.load %arg6[%c49] : memref<272xf32, #tpu.memory_space<smem>>
    %cst_231 = arith.constant 1.400000e+01 : f32
    %829 = vector.broadcast %cst_231 : f32 to vector<80x128xf32>
    %830 = arith.subf %685, %829 : vector<80x128xf32>
    %cst_232 = arith.constant 0.000000e+00 : f32
    %cst_233 = arith.constant 1.000000e+00 : f32
    %831 = vector.broadcast %cst_232 : f32 to vector<80x128xf32>
    %832 = arith.maximumf %831, %830 : vector<80x128xf32>
    %833 = vector.broadcast %cst_233 : f32 to vector<80x128xf32>
    %834 = arith.minimumf %833, %832 : vector<80x128xf32>
    %835 = vector.broadcast %828 : f32 to vector<80x128xf32>
    %836 = arith.mulf %835, %834 : vector<80x128xf32>
    %837 = arith.addf %827, %836 : vector<80x128xf32>
    %c50 = arith.constant 50 : index
    %838 = memref.load %arg6[%c50] : memref<272xf32, #tpu.memory_space<smem>>
    %cst_234 = arith.constant 1.500000e+01 : f32
    %839 = vector.broadcast %cst_234 : f32 to vector<80x128xf32>
    %840 = arith.subf %685, %839 : vector<80x128xf32>
    %cst_235 = arith.constant 0.000000e+00 : f32
    %cst_236 = arith.constant 1.000000e+00 : f32
    %841 = vector.broadcast %cst_235 : f32 to vector<80x128xf32>
    %842 = arith.maximumf %841, %840 : vector<80x128xf32>
    %843 = vector.broadcast %cst_236 : f32 to vector<80x128xf32>
    %844 = arith.minimumf %843, %842 : vector<80x128xf32>
    %845 = vector.broadcast %838 : f32 to vector<80x128xf32>
    %846 = arith.mulf %845, %844 : vector<80x128xf32>
    %847 = arith.addf %837, %846 : vector<80x128xf32>
    %848 = vector.extract_strided_slice %847 {offsets = [0, 0], sizes = [16, 128], strides = [1, 1]} : vector<80x128xf32> to vector<16x128xf32>
    %849 = vector.extract_strided_slice %847 {offsets = [16, 0], sizes = [16, 128], strides = [1, 1]} : vector<80x128xf32> to vector<16x128xf32>
    %850 = arith.mulf %848, %849 : vector<16x128xf32>
    %851 = vector.extract_strided_slice %847 {offsets = [32, 0], sizes = [16, 128], strides = [1, 1]} : vector<80x128xf32> to vector<16x128xf32>
    %852 = arith.mulf %850, %851 : vector<16x128xf32>
    %853 = vector.extract_strided_slice %847 {offsets = [48, 0], sizes = [16, 128], strides = [1, 1]} : vector<80x128xf32> to vector<16x128xf32>
    %854 = arith.mulf %852, %853 : vector<16x128xf32>
    %855 = vector.extract_strided_slice %847 {offsets = [64, 0], sizes = [16, 128], strides = [1, 1]} : vector<80x128xf32> to vector<16x128xf32>
    %856 = arith.mulf %854, %855 : vector<16x128xf32>
    %857 = vector.extract_strided_slice %856 {offsets = [0, 0], sizes = [4, 128], strides = [1, 1]} : vector<16x128xf32> to vector<4x128xf32>
    %cst_237 = arith.constant dense<0.000000e+00> : vector<128xf32>
    %858 = vector.multi_reduction <add>, %857, %cst_237 [0] : vector<4x128xf32> to vector<128xf32>
    %859 = vector.shape_cast %858 : vector<128xf32> to vector<1x128xf32>
    %cst_238 = arith.constant 1.000000e+00 : f32
    %860 = vector.broadcast %cst_238 : f32 to vector<1x128xf32>
    %861 = arith.divf %860, %859 : vector<1x128xf32>
    %862 = vector.extract_strided_slice %856 {offsets = [4, 0], sizes = [4, 128], strides = [1, 1]} : vector<16x128xf32> to vector<4x128xf32>
    %cst_239 = arith.constant dense<0.000000e+00> : vector<128xf32>
    %863 = vector.multi_reduction <add>, %862, %cst_239 [0] : vector<4x128xf32> to vector<128xf32>
    %864 = vector.shape_cast %863 : vector<128xf32> to vector<1x128xf32>
    %cst_240 = arith.constant 1.000000e+00 : f32
    %865 = vector.broadcast %cst_240 : f32 to vector<1x128xf32>
    %866 = arith.divf %865, %864 : vector<1x128xf32>
    %867 = vector.extract_strided_slice %856 {offsets = [8, 0], sizes = [4, 128], strides = [1, 1]} : vector<16x128xf32> to vector<4x128xf32>
    %cst_241 = arith.constant dense<0.000000e+00> : vector<128xf32>
    %868 = vector.multi_reduction <add>, %867, %cst_241 [0] : vector<4x128xf32> to vector<128xf32>
    %869 = vector.shape_cast %868 : vector<128xf32> to vector<1x128xf32>
    %cst_242 = arith.constant 1.000000e+00 : f32
    %870 = vector.broadcast %cst_242 : f32 to vector<1x128xf32>
    %871 = arith.divf %870, %869 : vector<1x128xf32>
    %872 = vector.extract_strided_slice %856 {offsets = [12, 0], sizes = [4, 128], strides = [1, 1]} : vector<16x128xf32> to vector<4x128xf32>
    %cst_243 = arith.constant dense<0.000000e+00> : vector<128xf32>
    %873 = vector.multi_reduction <add>, %872, %cst_243 [0] : vector<4x128xf32> to vector<128xf32>
    %874 = vector.shape_cast %873 : vector<128xf32> to vector<1x128xf32>
    %cst_244 = arith.constant 1.000000e+00 : f32
    %875 = vector.broadcast %cst_244 : f32 to vector<1x128xf32>
    %876 = arith.divf %875, %874 : vector<1x128xf32>
    %877 = tpu.concatenate %861, %866, %871, %876 in 0 : vector<1x128xf32>, vector<1x128xf32>, vector<1x128xf32>, vector<1x128xf32> -> vector<4x128xf32>
    %cst_245 = arith.constant 0.000000e+00 : f32
    %878 = vector.broadcast %cst_245 : f32 to vector<1x128xf32>
    %879 = vector.extract_strided_slice %602 {offsets = [0, 0], sizes = [4, 128], strides = [1, 1]} : vector<16x128xf32> to vector<4x128xf32>
    %880 = arith.mulf %879, %877 : vector<4x128xf32>
    %cst_246 = arith.constant dense<0.000000e+00> : vector<128xf32>
    %881 = vector.multi_reduction <add>, %880, %cst_246 [0] : vector<4x128xf32> to vector<128xf32>
    %882 = vector.shape_cast %881 : vector<128xf32> to vector<1x128xf32>
    %883 = arith.mulf %861, %882 : vector<1x128xf32>
    %884 = arith.addf %878, %883 : vector<1x128xf32>
    %885 = vector.extract_strided_slice %602 {offsets = [4, 0], sizes = [4, 128], strides = [1, 1]} : vector<16x128xf32> to vector<4x128xf32>
    %886 = arith.mulf %885, %877 : vector<4x128xf32>
    %cst_247 = arith.constant dense<0.000000e+00> : vector<128xf32>
    %887 = vector.multi_reduction <add>, %886, %cst_247 [0] : vector<4x128xf32> to vector<128xf32>
    %888 = vector.shape_cast %887 : vector<128xf32> to vector<1x128xf32>
    %889 = arith.mulf %866, %888 : vector<1x128xf32>
    %890 = arith.addf %884, %889 : vector<1x128xf32>
    %891 = vector.extract_strided_slice %602 {offsets = [8, 0], sizes = [4, 128], strides = [1, 1]} : vector<16x128xf32> to vector<4x128xf32>
    %892 = arith.mulf %891, %877 : vector<4x128xf32>
    %cst_248 = arith.constant dense<0.000000e+00> : vector<128xf32>
    %893 = vector.multi_reduction <add>, %892, %cst_248 [0] : vector<4x128xf32> to vector<128xf32>
    %894 = vector.shape_cast %893 : vector<128xf32> to vector<1x128xf32>
    %895 = arith.mulf %871, %894 : vector<1x128xf32>
    %896 = arith.addf %890, %895 : vector<1x128xf32>
    %897 = vector.extract_strided_slice %602 {offsets = [12, 0], sizes = [4, 128], strides = [1, 1]} : vector<16x128xf32> to vector<4x128xf32>
    %898 = arith.mulf %897, %877 : vector<4x128xf32>
    %cst_249 = arith.constant dense<0.000000e+00> : vector<128xf32>
    %899 = vector.multi_reduction <add>, %898, %cst_249 [0] : vector<4x128xf32> to vector<128xf32>
    %900 = vector.shape_cast %899 : vector<128xf32> to vector<1x128xf32>
    %901 = arith.mulf %876, %900 : vector<1x128xf32>
    %902 = arith.addf %896, %901 : vector<1x128xf32>
    %903 = arith.mulf %65, %65 : vector<4x128xf32>
    %cst_250 = arith.constant 1.600000e+01 : f32
    %904 = vector.broadcast %cst_250 : f32 to vector<4x128xf32>
    %905 = arith.mulf %904, %903 : vector<4x128xf32>
    %c0_251 = arith.constant 0 : index
    %906 = memref.load %arg6[%c0_251] : memref<272xf32, #tpu.memory_space<smem>>
    %907 = vector.broadcast %906 : f32 to vector<4x128xf32>
    %cst_252 = arith.constant 0.000000e+00 : f32
    %908 = vector.broadcast %cst_252 : f32 to vector<4x128xf32>
    %909 = arith.subf %905, %908 : vector<4x128xf32>
    %cst_253 = arith.constant 0.000000e+00 : f32
    %cst_254 = arith.constant 1.000000e+00 : f32
    %910 = vector.broadcast %cst_253 : f32 to vector<4x128xf32>
    %911 = arith.maximumf %910, %909 : vector<4x128xf32>
    %912 = vector.broadcast %cst_254 : f32 to vector<4x128xf32>
    %913 = arith.minimumf %912, %911 : vector<4x128xf32>
    %c1_255 = arith.constant 1 : index
    %914 = memref.load %arg6[%c1_255] : memref<272xf32, #tpu.memory_space<smem>>
    %915 = vector.broadcast %914 : f32 to vector<4x128xf32>
    %916 = arith.mulf %915, %913 : vector<4x128xf32>
    %917 = arith.addf %907, %916 : vector<4x128xf32>
    %cst_256 = arith.constant 1.000000e+00 : f32
    %918 = vector.broadcast %cst_256 : f32 to vector<4x128xf32>
    %919 = arith.subf %905, %918 : vector<4x128xf32>
    %cst_257 = arith.constant 0.000000e+00 : f32
    %cst_258 = arith.constant 1.000000e+00 : f32
    %920 = vector.broadcast %cst_257 : f32 to vector<4x128xf32>
    %921 = arith.maximumf %920, %919 : vector<4x128xf32>
    %922 = vector.broadcast %cst_258 : f32 to vector<4x128xf32>
    %923 = arith.minimumf %922, %921 : vector<4x128xf32>
    %c2_259 = arith.constant 2 : index
    %924 = memref.load %arg6[%c2_259] : memref<272xf32, #tpu.memory_space<smem>>
    %925 = vector.broadcast %924 : f32 to vector<4x128xf32>
    %926 = arith.mulf %925, %923 : vector<4x128xf32>
    %927 = arith.addf %917, %926 : vector<4x128xf32>
    %cst_260 = arith.constant 2.000000e+00 : f32
    %928 = vector.broadcast %cst_260 : f32 to vector<4x128xf32>
    %929 = arith.subf %905, %928 : vector<4x128xf32>
    %cst_261 = arith.constant 0.000000e+00 : f32
    %cst_262 = arith.constant 1.000000e+00 : f32
    %930 = vector.broadcast %cst_261 : f32 to vector<4x128xf32>
    %931 = arith.maximumf %930, %929 : vector<4x128xf32>
    %932 = vector.broadcast %cst_262 : f32 to vector<4x128xf32>
    %933 = arith.minimumf %932, %931 : vector<4x128xf32>
    %c3_263 = arith.constant 3 : index
    %934 = memref.load %arg6[%c3_263] : memref<272xf32, #tpu.memory_space<smem>>
    %935 = vector.broadcast %934 : f32 to vector<4x128xf32>
    %936 = arith.mulf %935, %933 : vector<4x128xf32>
    %937 = arith.addf %927, %936 : vector<4x128xf32>
    %cst_264 = arith.constant 3.000000e+00 : f32
    %938 = vector.broadcast %cst_264 : f32 to vector<4x128xf32>
    %939 = arith.subf %905, %938 : vector<4x128xf32>
    %cst_265 = arith.constant 0.000000e+00 : f32
    %cst_266 = arith.constant 1.000000e+00 : f32
    %940 = vector.broadcast %cst_265 : f32 to vector<4x128xf32>
    %941 = arith.maximumf %940, %939 : vector<4x128xf32>
    %942 = vector.broadcast %cst_266 : f32 to vector<4x128xf32>
    %943 = arith.minimumf %942, %941 : vector<4x128xf32>
    %c4_267 = arith.constant 4 : index
    %944 = memref.load %arg6[%c4_267] : memref<272xf32, #tpu.memory_space<smem>>
    %945 = vector.broadcast %944 : f32 to vector<4x128xf32>
    %946 = arith.mulf %945, %943 : vector<4x128xf32>
    %947 = arith.addf %937, %946 : vector<4x128xf32>
    %cst_268 = arith.constant 4.000000e+00 : f32
    %948 = vector.broadcast %cst_268 : f32 to vector<4x128xf32>
    %949 = arith.subf %905, %948 : vector<4x128xf32>
    %cst_269 = arith.constant 0.000000e+00 : f32
    %cst_270 = arith.constant 1.000000e+00 : f32
    %950 = vector.broadcast %cst_269 : f32 to vector<4x128xf32>
    %951 = arith.maximumf %950, %949 : vector<4x128xf32>
    %952 = vector.broadcast %cst_270 : f32 to vector<4x128xf32>
    %953 = arith.minimumf %952, %951 : vector<4x128xf32>
    %c5_271 = arith.constant 5 : index
    %954 = memref.load %arg6[%c5_271] : memref<272xf32, #tpu.memory_space<smem>>
    %955 = vector.broadcast %954 : f32 to vector<4x128xf32>
    %956 = arith.mulf %955, %953 : vector<4x128xf32>
    %957 = arith.addf %947, %956 : vector<4x128xf32>
    %cst_272 = arith.constant 5.000000e+00 : f32
    %958 = vector.broadcast %cst_272 : f32 to vector<4x128xf32>
    %959 = arith.subf %905, %958 : vector<4x128xf32>
    %cst_273 = arith.constant 0.000000e+00 : f32
    %cst_274 = arith.constant 1.000000e+00 : f32
    %960 = vector.broadcast %cst_273 : f32 to vector<4x128xf32>
    %961 = arith.maximumf %960, %959 : vector<4x128xf32>
    %962 = vector.broadcast %cst_274 : f32 to vector<4x128xf32>
    %963 = arith.minimumf %962, %961 : vector<4x128xf32>
    %c6_275 = arith.constant 6 : index
    %964 = memref.load %arg6[%c6_275] : memref<272xf32, #tpu.memory_space<smem>>
    %965 = vector.broadcast %964 : f32 to vector<4x128xf32>
    %966 = arith.mulf %965, %963 : vector<4x128xf32>
    %967 = arith.addf %957, %966 : vector<4x128xf32>
    %cst_276 = arith.constant 6.000000e+00 : f32
    %968 = vector.broadcast %cst_276 : f32 to vector<4x128xf32>
    %969 = arith.subf %905, %968 : vector<4x128xf32>
    %cst_277 = arith.constant 0.000000e+00 : f32
    %cst_278 = arith.constant 1.000000e+00 : f32
    %970 = vector.broadcast %cst_277 : f32 to vector<4x128xf32>
    %971 = arith.maximumf %970, %969 : vector<4x128xf32>
    %972 = vector.broadcast %cst_278 : f32 to vector<4x128xf32>
    %973 = arith.minimumf %972, %971 : vector<4x128xf32>
    %c7_279 = arith.constant 7 : index
    %974 = memref.load %arg6[%c7_279] : memref<272xf32, #tpu.memory_space<smem>>
    %975 = vector.broadcast %974 : f32 to vector<4x128xf32>
    %976 = arith.mulf %975, %973 : vector<4x128xf32>
    %977 = arith.addf %967, %976 : vector<4x128xf32>
    %cst_280 = arith.constant 7.000000e+00 : f32
    %978 = vector.broadcast %cst_280 : f32 to vector<4x128xf32>
    %979 = arith.subf %905, %978 : vector<4x128xf32>
    %cst_281 = arith.constant 0.000000e+00 : f32
    %cst_282 = arith.constant 1.000000e+00 : f32
    %980 = vector.broadcast %cst_281 : f32 to vector<4x128xf32>
    %981 = arith.maximumf %980, %979 : vector<4x128xf32>
    %982 = vector.broadcast %cst_282 : f32 to vector<4x128xf32>
    %983 = arith.minimumf %982, %981 : vector<4x128xf32>
    %c8_283 = arith.constant 8 : index
    %984 = memref.load %arg6[%c8_283] : memref<272xf32, #tpu.memory_space<smem>>
    %985 = vector.broadcast %984 : f32 to vector<4x128xf32>
    %986 = arith.mulf %985, %983 : vector<4x128xf32>
    %987 = arith.addf %977, %986 : vector<4x128xf32>
    %cst_284 = arith.constant 8.000000e+00 : f32
    %988 = vector.broadcast %cst_284 : f32 to vector<4x128xf32>
    %989 = arith.subf %905, %988 : vector<4x128xf32>
    %cst_285 = arith.constant 0.000000e+00 : f32
    %cst_286 = arith.constant 1.000000e+00 : f32
    %990 = vector.broadcast %cst_285 : f32 to vector<4x128xf32>
    %991 = arith.maximumf %990, %989 : vector<4x128xf32>
    %992 = vector.broadcast %cst_286 : f32 to vector<4x128xf32>
    %993 = arith.minimumf %992, %991 : vector<4x128xf32>
    %c9_287 = arith.constant 9 : index
    %994 = memref.load %arg6[%c9_287] : memref<272xf32, #tpu.memory_space<smem>>
    %995 = vector.broadcast %994 : f32 to vector<4x128xf32>
    %996 = arith.mulf %995, %993 : vector<4x128xf32>
    %997 = arith.addf %987, %996 : vector<4x128xf32>
    %cst_288 = arith.constant 9.000000e+00 : f32
    %998 = vector.broadcast %cst_288 : f32 to vector<4x128xf32>
    %999 = arith.subf %905, %998 : vector<4x128xf32>
    %cst_289 = arith.constant 0.000000e+00 : f32
    %cst_290 = arith.constant 1.000000e+00 : f32
    %1000 = vector.broadcast %cst_289 : f32 to vector<4x128xf32>
    %1001 = arith.maximumf %1000, %999 : vector<4x128xf32>
    %1002 = vector.broadcast %cst_290 : f32 to vector<4x128xf32>
    %1003 = arith.minimumf %1002, %1001 : vector<4x128xf32>
    %c10_291 = arith.constant 10 : index
    %1004 = memref.load %arg6[%c10_291] : memref<272xf32, #tpu.memory_space<smem>>
    %1005 = vector.broadcast %1004 : f32 to vector<4x128xf32>
    %1006 = arith.mulf %1005, %1003 : vector<4x128xf32>
    %1007 = arith.addf %997, %1006 : vector<4x128xf32>
    %cst_292 = arith.constant 1.000000e+01 : f32
    %1008 = vector.broadcast %cst_292 : f32 to vector<4x128xf32>
    %1009 = arith.subf %905, %1008 : vector<4x128xf32>
    %cst_293 = arith.constant 0.000000e+00 : f32
    %cst_294 = arith.constant 1.000000e+00 : f32
    %1010 = vector.broadcast %cst_293 : f32 to vector<4x128xf32>
    %1011 = arith.maximumf %1010, %1009 : vector<4x128xf32>
    %1012 = vector.broadcast %cst_294 : f32 to vector<4x128xf32>
    %1013 = arith.minimumf %1012, %1011 : vector<4x128xf32>
    %c11_295 = arith.constant 11 : index
    %1014 = memref.load %arg6[%c11_295] : memref<272xf32, #tpu.memory_space<smem>>
    %1015 = vector.broadcast %1014 : f32 to vector<4x128xf32>
    %1016 = arith.mulf %1015, %1013 : vector<4x128xf32>
    %1017 = arith.addf %1007, %1016 : vector<4x128xf32>
    %cst_296 = arith.constant 1.100000e+01 : f32
    %1018 = vector.broadcast %cst_296 : f32 to vector<4x128xf32>
    %1019 = arith.subf %905, %1018 : vector<4x128xf32>
    %cst_297 = arith.constant 0.000000e+00 : f32
    %cst_298 = arith.constant 1.000000e+00 : f32
    %1020 = vector.broadcast %cst_297 : f32 to vector<4x128xf32>
    %1021 = arith.maximumf %1020, %1019 : vector<4x128xf32>
    %1022 = vector.broadcast %cst_298 : f32 to vector<4x128xf32>
    %1023 = arith.minimumf %1022, %1021 : vector<4x128xf32>
    %c12_299 = arith.constant 12 : index
    %1024 = memref.load %arg6[%c12_299] : memref<272xf32, #tpu.memory_space<smem>>
    %1025 = vector.broadcast %1024 : f32 to vector<4x128xf32>
    %1026 = arith.mulf %1025, %1023 : vector<4x128xf32>
    %1027 = arith.addf %1017, %1026 : vector<4x128xf32>
    %cst_300 = arith.constant 1.200000e+01 : f32
    %1028 = vector.broadcast %cst_300 : f32 to vector<4x128xf32>
    %1029 = arith.subf %905, %1028 : vector<4x128xf32>
    %cst_301 = arith.constant 0.000000e+00 : f32
    %cst_302 = arith.constant 1.000000e+00 : f32
    %1030 = vector.broadcast %cst_301 : f32 to vector<4x128xf32>
    %1031 = arith.maximumf %1030, %1029 : vector<4x128xf32>
    %1032 = vector.broadcast %cst_302 : f32 to vector<4x128xf32>
    %1033 = arith.minimumf %1032, %1031 : vector<4x128xf32>
    %c13_303 = arith.constant 13 : index
    %1034 = memref.load %arg6[%c13_303] : memref<272xf32, #tpu.memory_space<smem>>
    %1035 = vector.broadcast %1034 : f32 to vector<4x128xf32>
    %1036 = arith.mulf %1035, %1033 : vector<4x128xf32>
    %1037 = arith.addf %1027, %1036 : vector<4x128xf32>
    %cst_304 = arith.constant 1.300000e+01 : f32
    %1038 = vector.broadcast %cst_304 : f32 to vector<4x128xf32>
    %1039 = arith.subf %905, %1038 : vector<4x128xf32>
    %cst_305 = arith.constant 0.000000e+00 : f32
    %cst_306 = arith.constant 1.000000e+00 : f32
    %1040 = vector.broadcast %cst_305 : f32 to vector<4x128xf32>
    %1041 = arith.maximumf %1040, %1039 : vector<4x128xf32>
    %1042 = vector.broadcast %cst_306 : f32 to vector<4x128xf32>
    %1043 = arith.minimumf %1042, %1041 : vector<4x128xf32>
    %c14_307 = arith.constant 14 : index
    %1044 = memref.load %arg6[%c14_307] : memref<272xf32, #tpu.memory_space<smem>>
    %1045 = vector.broadcast %1044 : f32 to vector<4x128xf32>
    %1046 = arith.mulf %1045, %1043 : vector<4x128xf32>
    %1047 = arith.addf %1037, %1046 : vector<4x128xf32>
    %cst_308 = arith.constant 1.400000e+01 : f32
    %1048 = vector.broadcast %cst_308 : f32 to vector<4x128xf32>
    %1049 = arith.subf %905, %1048 : vector<4x128xf32>
    %cst_309 = arith.constant 0.000000e+00 : f32
    %cst_310 = arith.constant 1.000000e+00 : f32
    %1050 = vector.broadcast %cst_309 : f32 to vector<4x128xf32>
    %1051 = arith.maximumf %1050, %1049 : vector<4x128xf32>
    %1052 = vector.broadcast %cst_310 : f32 to vector<4x128xf32>
    %1053 = arith.minimumf %1052, %1051 : vector<4x128xf32>
    %c15_311 = arith.constant 15 : index
    %1054 = memref.load %arg6[%c15_311] : memref<272xf32, #tpu.memory_space<smem>>
    %1055 = vector.broadcast %1054 : f32 to vector<4x128xf32>
    %1056 = arith.mulf %1055, %1053 : vector<4x128xf32>
    %1057 = arith.addf %1047, %1056 : vector<4x128xf32>
    %cst_312 = arith.constant 1.500000e+01 : f32
    %1058 = vector.broadcast %cst_312 : f32 to vector<4x128xf32>
    %1059 = arith.subf %905, %1058 : vector<4x128xf32>
    %cst_313 = arith.constant 0.000000e+00 : f32
    %cst_314 = arith.constant 1.000000e+00 : f32
    %1060 = vector.broadcast %cst_313 : f32 to vector<4x128xf32>
    %1061 = arith.maximumf %1060, %1059 : vector<4x128xf32>
    %1062 = vector.broadcast %cst_314 : f32 to vector<4x128xf32>
    %1063 = arith.minimumf %1062, %1061 : vector<4x128xf32>
    %c16_315 = arith.constant 16 : index
    %1064 = memref.load %arg6[%c16_315] : memref<272xf32, #tpu.memory_space<smem>>
    %1065 = vector.broadcast %1064 : f32 to vector<4x128xf32>
    %1066 = arith.mulf %1065, %1063 : vector<4x128xf32>
    %1067 = arith.addf %1057, %1066 : vector<4x128xf32>
    %1068 = arith.mulf %1067, %877 : vector<4x128xf32>
    %cst_316 = arith.constant dense<0.000000e+00> : vector<128xf32>
    %1069 = vector.multi_reduction <add>, %1068, %cst_316 [0] : vector<4x128xf32> to vector<128xf32>
    %1070 = vector.shape_cast %1069 : vector<128xf32> to vector<1x128xf32>
    %1071 = arith.addf %902, %1070 : vector<1x128xf32>
    %cst_317 = arith.constant 9.99999968E-21 : f32
    %1072 = vector.broadcast %cst_317 : f32 to vector<1x128xf32>
    %1073 = arith.addf %1071, %1072 : vector<1x128xf32>
    %1074 = math.sqrt %1073 : vector<1x128xf32>
    %cst_318 = arith.constant 0.000000e+00 : f32
    %cst_319 = arith.constant 4.000000e+00 : f32
    %1075 = vector.broadcast %cst_318 : f32 to vector<1x128xf32>
    %1076 = arith.maximumf %1075, %1074 : vector<1x128xf32>
    %1077 = vector.broadcast %cst_319 : f32 to vector<1x128xf32>
    %1078 = arith.minimumf %1077, %1076 : vector<1x128xf32>
    %1079 = math.floor %1078 : vector<1x128xf32>
    %1080 = arith.subf %1078, %1079 : vector<1x128xf32>
    %1081 = arith.fptosi %1079 : vector<1x128xf32> to vector<1x128xi32>
    %c4_i32 = arith.constant 4 : i32
    %1082 = vector.broadcast %c4_i32 : i32 to vector<1x128xi32>
    %1083 = arith.minsi %1081, %1082 : vector<1x128xi32>
    %c1_i32 = arith.constant 1 : i32
    %1084 = vector.broadcast %c1_i32 : i32 to vector<1x128xi32>
    %1085 = arith.addi %1083, %1084 : vector<1x128xi32>
    %c4_i32_320 = arith.constant 4 : i32
    %1086 = vector.broadcast %c4_i32_320 : i32 to vector<1x128xi32>
    %1087 = arith.minsi %1085, %1086 : vector<1x128xi32>
    %1088 = tpu.iota {dimensions = array<i32: 0>} : vector<5x128xi32>
    %cst_321 = arith.constant 1.000000e+00 : f32
    %1089 = vector.broadcast %cst_321 : f32 to vector<1x128xf32>
    %1090 = arith.subf %1089, %1080 : vector<1x128xf32>
    %1091 = vector.broadcast %1083 : vector<1x128xi32> to vector<5x128xi32>
    %1092 = arith.cmpi eq, %1088, %1091 : vector<5x128xi32>
    %1093 = arith.extui %1092 : vector<5x128xi1> to vector<5x128xi32>
    %1094 = arith.sitofp %1093 : vector<5x128xi32> to vector<5x128xf32>
    %1095 = vector.broadcast %1090 : vector<1x128xf32> to vector<5x128xf32>
    %1096 = arith.mulf %1095, %1094 : vector<5x128xf32>
    %1097 = vector.broadcast %1087 : vector<1x128xi32> to vector<5x128xi32>
    %1098 = arith.cmpi eq, %1088, %1097 : vector<5x128xi32>
    %1099 = arith.extui %1098 : vector<5x128xi1> to vector<5x128xi32>
    %1100 = arith.sitofp %1099 : vector<5x128xi32> to vector<5x128xf32>
    %1101 = vector.broadcast %1080 : vector<1x128xf32> to vector<5x128xf32>
    %1102 = arith.mulf %1101, %1100 : vector<5x128xf32>
    %1103 = arith.addf %1096, %1102 : vector<5x128xf32>
    %cst_322 = arith.constant 1.600000e+01 : f32
    %1104 = vector.broadcast %cst_322 : f32 to vector<4x128xf32>
    %1105 = arith.mulf %1104, %65 : vector<4x128xf32>
    %c85 = arith.constant 85 : index
    %1106 = memref.load %arg6[%c85] : memref<272xf32, #tpu.memory_space<smem>>
    %1107 = vector.broadcast %1106 : f32 to vector<4x128xf32>
    %cst_323 = arith.constant 0.000000e+00 : f32
    %1108 = vector.broadcast %cst_323 : f32 to vector<4x128xf32>
    %1109 = arith.subf %1105, %1108 : vector<4x128xf32>
    %cst_324 = arith.constant 0.000000e+00 : f32
    %cst_325 = arith.constant 1.000000e+00 : f32
    %1110 = vector.broadcast %cst_324 : f32 to vector<4x128xf32>
    %1111 = arith.maximumf %1110, %1109 : vector<4x128xf32>
    %1112 = vector.broadcast %cst_325 : f32 to vector<4x128xf32>
    %1113 = arith.minimumf %1112, %1111 : vector<4x128xf32>
    %c86 = arith.constant 86 : index
    %1114 = memref.load %arg6[%c86] : memref<272xf32, #tpu.memory_space<smem>>
    %1115 = vector.broadcast %1114 : f32 to vector<4x128xf32>
    %1116 = arith.mulf %1115, %1113 : vector<4x128xf32>
    %1117 = arith.addf %1107, %1116 : vector<4x128xf32>
    %cst_326 = arith.constant 1.000000e+00 : f32
    %1118 = vector.broadcast %cst_326 : f32 to vector<4x128xf32>
    %1119 = arith.subf %1105, %1118 : vector<4x128xf32>
    %cst_327 = arith.constant 0.000000e+00 : f32
    %cst_328 = arith.constant 1.000000e+00 : f32
    %1120 = vector.broadcast %cst_327 : f32 to vector<4x128xf32>
    %1121 = arith.maximumf %1120, %1119 : vector<4x128xf32>
    %1122 = vector.broadcast %cst_328 : f32 to vector<4x128xf32>
    %1123 = arith.minimumf %1122, %1121 : vector<4x128xf32>
    %c87 = arith.constant 87 : index
    %1124 = memref.load %arg6[%c87] : memref<272xf32, #tpu.memory_space<smem>>
    %1125 = vector.broadcast %1124 : f32 to vector<4x128xf32>
    %1126 = arith.mulf %1125, %1123 : vector<4x128xf32>
    %1127 = arith.addf %1117, %1126 : vector<4x128xf32>
    %cst_329 = arith.constant 2.000000e+00 : f32
    %1128 = vector.broadcast %cst_329 : f32 to vector<4x128xf32>
    %1129 = arith.subf %1105, %1128 : vector<4x128xf32>
    %cst_330 = arith.constant 0.000000e+00 : f32
    %cst_331 = arith.constant 1.000000e+00 : f32
    %1130 = vector.broadcast %cst_330 : f32 to vector<4x128xf32>
    %1131 = arith.maximumf %1130, %1129 : vector<4x128xf32>
    %1132 = vector.broadcast %cst_331 : f32 to vector<4x128xf32>
    %1133 = arith.minimumf %1132, %1131 : vector<4x128xf32>
    %c88 = arith.constant 88 : index
    %1134 = memref.load %arg6[%c88] : memref<272xf32, #tpu.memory_space<smem>>
    %1135 = vector.broadcast %1134 : f32 to vector<4x128xf32>
    %1136 = arith.mulf %1135, %1133 : vector<4x128xf32>
    %1137 = arith.addf %1127, %1136 : vector<4x128xf32>
    %cst_332 = arith.constant 3.000000e+00 : f32
    %1138 = vector.broadcast %cst_332 : f32 to vector<4x128xf32>
    %1139 = arith.subf %1105, %1138 : vector<4x128xf32>
    %cst_333 = arith.constant 0.000000e+00 : f32
    %cst_334 = arith.constant 1.000000e+00 : f32
    %1140 = vector.broadcast %cst_333 : f32 to vector<4x128xf32>
    %1141 = arith.maximumf %1140, %1139 : vector<4x128xf32>
    %1142 = vector.broadcast %cst_334 : f32 to vector<4x128xf32>
    %1143 = arith.minimumf %1142, %1141 : vector<4x128xf32>
    %c89 = arith.constant 89 : index
    %1144 = memref.load %arg6[%c89] : memref<272xf32, #tpu.memory_space<smem>>
    %1145 = vector.broadcast %1144 : f32 to vector<4x128xf32>
    %1146 = arith.mulf %1145, %1143 : vector<4x128xf32>
    %1147 = arith.addf %1137, %1146 : vector<4x128xf32>
    %cst_335 = arith.constant 4.000000e+00 : f32
    %1148 = vector.broadcast %cst_335 : f32 to vector<4x128xf32>
    %1149 = arith.subf %1105, %1148 : vector<4x128xf32>
    %cst_336 = arith.constant 0.000000e+00 : f32
    %cst_337 = arith.constant 1.000000e+00 : f32
    %1150 = vector.broadcast %cst_336 : f32 to vector<4x128xf32>
    %1151 = arith.maximumf %1150, %1149 : vector<4x128xf32>
    %1152 = vector.broadcast %cst_337 : f32 to vector<4x128xf32>
    %1153 = arith.minimumf %1152, %1151 : vector<4x128xf32>
    %c90 = arith.constant 90 : index
    %1154 = memref.load %arg6[%c90] : memref<272xf32, #tpu.memory_space<smem>>
    %1155 = vector.broadcast %1154 : f32 to vector<4x128xf32>
    %1156 = arith.mulf %1155, %1153 : vector<4x128xf32>
    %1157 = arith.addf %1147, %1156 : vector<4x128xf32>
    %cst_338 = arith.constant 5.000000e+00 : f32
    %1158 = vector.broadcast %cst_338 : f32 to vector<4x128xf32>
    %1159 = arith.subf %1105, %1158 : vector<4x128xf32>
    %cst_339 = arith.constant 0.000000e+00 : f32
    %cst_340 = arith.constant 1.000000e+00 : f32
    %1160 = vector.broadcast %cst_339 : f32 to vector<4x128xf32>
    %1161 = arith.maximumf %1160, %1159 : vector<4x128xf32>
    %1162 = vector.broadcast %cst_340 : f32 to vector<4x128xf32>
    %1163 = arith.minimumf %1162, %1161 : vector<4x128xf32>
    %c91 = arith.constant 91 : index
    %1164 = memref.load %arg6[%c91] : memref<272xf32, #tpu.memory_space<smem>>
    %1165 = vector.broadcast %1164 : f32 to vector<4x128xf32>
    %1166 = arith.mulf %1165, %1163 : vector<4x128xf32>
    %1167 = arith.addf %1157, %1166 : vector<4x128xf32>
    %cst_341 = arith.constant 6.000000e+00 : f32
    %1168 = vector.broadcast %cst_341 : f32 to vector<4x128xf32>
    %1169 = arith.subf %1105, %1168 : vector<4x128xf32>
    %cst_342 = arith.constant 0.000000e+00 : f32
    %cst_343 = arith.constant 1.000000e+00 : f32
    %1170 = vector.broadcast %cst_342 : f32 to vector<4x128xf32>
    %1171 = arith.maximumf %1170, %1169 : vector<4x128xf32>
    %1172 = vector.broadcast %cst_343 : f32 to vector<4x128xf32>
    %1173 = arith.minimumf %1172, %1171 : vector<4x128xf32>
    %c92 = arith.constant 92 : index
    %1174 = memref.load %arg6[%c92] : memref<272xf32, #tpu.memory_space<smem>>
    %1175 = vector.broadcast %1174 : f32 to vector<4x128xf32>
    %1176 = arith.mulf %1175, %1173 : vector<4x128xf32>
    %1177 = arith.addf %1167, %1176 : vector<4x128xf32>
    %cst_344 = arith.constant 7.000000e+00 : f32
    %1178 = vector.broadcast %cst_344 : f32 to vector<4x128xf32>
    %1179 = arith.subf %1105, %1178 : vector<4x128xf32>
    %cst_345 = arith.constant 0.000000e+00 : f32
    %cst_346 = arith.constant 1.000000e+00 : f32
    %1180 = vector.broadcast %cst_345 : f32 to vector<4x128xf32>
    %1181 = arith.maximumf %1180, %1179 : vector<4x128xf32>
    %1182 = vector.broadcast %cst_346 : f32 to vector<4x128xf32>
    %1183 = arith.minimumf %1182, %1181 : vector<4x128xf32>
    %c93 = arith.constant 93 : index
    %1184 = memref.load %arg6[%c93] : memref<272xf32, #tpu.memory_space<smem>>
    %1185 = vector.broadcast %1184 : f32 to vector<4x128xf32>
    %1186 = arith.mulf %1185, %1183 : vector<4x128xf32>
    %1187 = arith.addf %1177, %1186 : vector<4x128xf32>
    %cst_347 = arith.constant 8.000000e+00 : f32
    %1188 = vector.broadcast %cst_347 : f32 to vector<4x128xf32>
    %1189 = arith.subf %1105, %1188 : vector<4x128xf32>
    %cst_348 = arith.constant 0.000000e+00 : f32
    %cst_349 = arith.constant 1.000000e+00 : f32
    %1190 = vector.broadcast %cst_348 : f32 to vector<4x128xf32>
    %1191 = arith.maximumf %1190, %1189 : vector<4x128xf32>
    %1192 = vector.broadcast %cst_349 : f32 to vector<4x128xf32>
    %1193 = arith.minimumf %1192, %1191 : vector<4x128xf32>
    %c94 = arith.constant 94 : index
    %1194 = memref.load %arg6[%c94] : memref<272xf32, #tpu.memory_space<smem>>
    %1195 = vector.broadcast %1194 : f32 to vector<4x128xf32>
    %1196 = arith.mulf %1195, %1193 : vector<4x128xf32>
    %1197 = arith.addf %1187, %1196 : vector<4x128xf32>
    %cst_350 = arith.constant 9.000000e+00 : f32
    %1198 = vector.broadcast %cst_350 : f32 to vector<4x128xf32>
    %1199 = arith.subf %1105, %1198 : vector<4x128xf32>
    %cst_351 = arith.constant 0.000000e+00 : f32
    %cst_352 = arith.constant 1.000000e+00 : f32
    %1200 = vector.broadcast %cst_351 : f32 to vector<4x128xf32>
    %1201 = arith.maximumf %1200, %1199 : vector<4x128xf32>
    %1202 = vector.broadcast %cst_352 : f32 to vector<4x128xf32>
    %1203 = arith.minimumf %1202, %1201 : vector<4x128xf32>
    %c95 = arith.constant 95 : index
    %1204 = memref.load %arg6[%c95] : memref<272xf32, #tpu.memory_space<smem>>
    %1205 = vector.broadcast %1204 : f32 to vector<4x128xf32>
    %1206 = arith.mulf %1205, %1203 : vector<4x128xf32>
    %1207 = arith.addf %1197, %1206 : vector<4x128xf32>
    %cst_353 = arith.constant 1.000000e+01 : f32
    %1208 = vector.broadcast %cst_353 : f32 to vector<4x128xf32>
    %1209 = arith.subf %1105, %1208 : vector<4x128xf32>
    %cst_354 = arith.constant 0.000000e+00 : f32
    %cst_355 = arith.constant 1.000000e+00 : f32
    %1210 = vector.broadcast %cst_354 : f32 to vector<4x128xf32>
    %1211 = arith.maximumf %1210, %1209 : vector<4x128xf32>
    %1212 = vector.broadcast %cst_355 : f32 to vector<4x128xf32>
    %1213 = arith.minimumf %1212, %1211 : vector<4x128xf32>
    %c96 = arith.constant 96 : index
    %1214 = memref.load %arg6[%c96] : memref<272xf32, #tpu.memory_space<smem>>
    %1215 = vector.broadcast %1214 : f32 to vector<4x128xf32>
    %1216 = arith.mulf %1215, %1213 : vector<4x128xf32>
    %1217 = arith.addf %1207, %1216 : vector<4x128xf32>
    %cst_356 = arith.constant 1.100000e+01 : f32
    %1218 = vector.broadcast %cst_356 : f32 to vector<4x128xf32>
    %1219 = arith.subf %1105, %1218 : vector<4x128xf32>
    %cst_357 = arith.constant 0.000000e+00 : f32
    %cst_358 = arith.constant 1.000000e+00 : f32
    %1220 = vector.broadcast %cst_357 : f32 to vector<4x128xf32>
    %1221 = arith.maximumf %1220, %1219 : vector<4x128xf32>
    %1222 = vector.broadcast %cst_358 : f32 to vector<4x128xf32>
    %1223 = arith.minimumf %1222, %1221 : vector<4x128xf32>
    %c97 = arith.constant 97 : index
    %1224 = memref.load %arg6[%c97] : memref<272xf32, #tpu.memory_space<smem>>
    %1225 = vector.broadcast %1224 : f32 to vector<4x128xf32>
    %1226 = arith.mulf %1225, %1223 : vector<4x128xf32>
    %1227 = arith.addf %1217, %1226 : vector<4x128xf32>
    %cst_359 = arith.constant 1.200000e+01 : f32
    %1228 = vector.broadcast %cst_359 : f32 to vector<4x128xf32>
    %1229 = arith.subf %1105, %1228 : vector<4x128xf32>
    %cst_360 = arith.constant 0.000000e+00 : f32
    %cst_361 = arith.constant 1.000000e+00 : f32
    %1230 = vector.broadcast %cst_360 : f32 to vector<4x128xf32>
    %1231 = arith.maximumf %1230, %1229 : vector<4x128xf32>
    %1232 = vector.broadcast %cst_361 : f32 to vector<4x128xf32>
    %1233 = arith.minimumf %1232, %1231 : vector<4x128xf32>
    %c98 = arith.constant 98 : index
    %1234 = memref.load %arg6[%c98] : memref<272xf32, #tpu.memory_space<smem>>
    %1235 = vector.broadcast %1234 : f32 to vector<4x128xf32>
    %1236 = arith.mulf %1235, %1233 : vector<4x128xf32>
    %1237 = arith.addf %1227, %1236 : vector<4x128xf32>
    %cst_362 = arith.constant 1.300000e+01 : f32
    %1238 = vector.broadcast %cst_362 : f32 to vector<4x128xf32>
    %1239 = arith.subf %1105, %1238 : vector<4x128xf32>
    %cst_363 = arith.constant 0.000000e+00 : f32
    %cst_364 = arith.constant 1.000000e+00 : f32
    %1240 = vector.broadcast %cst_363 : f32 to vector<4x128xf32>
    %1241 = arith.maximumf %1240, %1239 : vector<4x128xf32>
    %1242 = vector.broadcast %cst_364 : f32 to vector<4x128xf32>
    %1243 = arith.minimumf %1242, %1241 : vector<4x128xf32>
    %c99 = arith.constant 99 : index
    %1244 = memref.load %arg6[%c99] : memref<272xf32, #tpu.memory_space<smem>>
    %1245 = vector.broadcast %1244 : f32 to vector<4x128xf32>
    %1246 = arith.mulf %1245, %1243 : vector<4x128xf32>
    %1247 = arith.addf %1237, %1246 : vector<4x128xf32>
    %cst_365 = arith.constant 1.400000e+01 : f32
    %1248 = vector.broadcast %cst_365 : f32 to vector<4x128xf32>
    %1249 = arith.subf %1105, %1248 : vector<4x128xf32>
    %cst_366 = arith.constant 0.000000e+00 : f32
    %cst_367 = arith.constant 1.000000e+00 : f32
    %1250 = vector.broadcast %cst_366 : f32 to vector<4x128xf32>
    %1251 = arith.maximumf %1250, %1249 : vector<4x128xf32>
    %1252 = vector.broadcast %cst_367 : f32 to vector<4x128xf32>
    %1253 = arith.minimumf %1252, %1251 : vector<4x128xf32>
    %c100 = arith.constant 100 : index
    %1254 = memref.load %arg6[%c100] : memref<272xf32, #tpu.memory_space<smem>>
    %1255 = vector.broadcast %1254 : f32 to vector<4x128xf32>
    %1256 = arith.mulf %1255, %1253 : vector<4x128xf32>
    %1257 = arith.addf %1247, %1256 : vector<4x128xf32>
    %cst_368 = arith.constant 1.500000e+01 : f32
    %1258 = vector.broadcast %cst_368 : f32 to vector<4x128xf32>
    %1259 = arith.subf %1105, %1258 : vector<4x128xf32>
    %cst_369 = arith.constant 0.000000e+00 : f32
    %cst_370 = arith.constant 1.000000e+00 : f32
    %1260 = vector.broadcast %cst_369 : f32 to vector<4x128xf32>
    %1261 = arith.maximumf %1260, %1259 : vector<4x128xf32>
    %1262 = vector.broadcast %cst_370 : f32 to vector<4x128xf32>
    %1263 = arith.minimumf %1262, %1261 : vector<4x128xf32>
    %c101 = arith.constant 101 : index
    %1264 = memref.load %arg6[%c101] : memref<272xf32, #tpu.memory_space<smem>>
    %1265 = vector.broadcast %1264 : f32 to vector<4x128xf32>
    %1266 = arith.mulf %1265, %1263 : vector<4x128xf32>
    %1267 = arith.addf %1257, %1266 : vector<4x128xf32>
    %cst_371 = arith.constant 5.000000e-01 : f32
    %1268 = vector.broadcast %cst_371 : f32 to vector<4x128xf32>
    %1269 = arith.subf %1267, %1268 : vector<4x128xf32>
    %1270 = math.absf %1269 : vector<4x128xf32>
    %cst_372 = arith.constant dense<0.000000e+00> : vector<128xf32>
    %1271 = vector.multi_reduction <add>, %1270, %cst_372 [0] : vector<4x128xf32> to vector<128xf32>
    %1272 = vector.shape_cast %1271 : vector<128xf32> to vector<1x128xf32>
    %cst_373 = arith.constant 2.500000e-01 : f32
    %1273 = vector.broadcast %cst_373 : f32 to vector<1x128xf32>
    %1274 = arith.mulf %1272, %1273 : vector<1x128xf32>
    %1275 = arith.addf %1274, %601 : vector<1x128xf32>
    %cst_374 = arith.constant 1.600000e+01 : f32
    %1276 = vector.broadcast %cst_374 : f32 to vector<1x128xf32>
    %1277 = arith.mulf %1276, %1275 : vector<1x128xf32>
    %c119 = arith.constant 119 : index
    %1278 = memref.load %arg6[%c119] : memref<272xf32, #tpu.memory_space<smem>>
    %1279 = vector.broadcast %1278 : f32 to vector<1x128xf32>
    %cst_375 = arith.constant 0.000000e+00 : f32
    %1280 = vector.broadcast %cst_375 : f32 to vector<1x128xf32>
    %1281 = arith.subf %1277, %1280 : vector<1x128xf32>
    %cst_376 = arith.constant 0.000000e+00 : f32
    %cst_377 = arith.constant 1.000000e+00 : f32
    %1282 = vector.broadcast %cst_376 : f32 to vector<1x128xf32>
    %1283 = arith.maximumf %1282, %1281 : vector<1x128xf32>
    %1284 = vector.broadcast %cst_377 : f32 to vector<1x128xf32>
    %1285 = arith.minimumf %1284, %1283 : vector<1x128xf32>
    %c120 = arith.constant 120 : index
    %1286 = memref.load %arg6[%c120] : memref<272xf32, #tpu.memory_space<smem>>
    %1287 = vector.broadcast %1286 : f32 to vector<1x128xf32>
    %1288 = arith.mulf %1287, %1285 : vector<1x128xf32>
    %1289 = arith.addf %1279, %1288 : vector<1x128xf32>
    %cst_378 = arith.constant 1.000000e+00 : f32
    %1290 = vector.broadcast %cst_378 : f32 to vector<1x128xf32>
    %1291 = arith.subf %1277, %1290 : vector<1x128xf32>
    %cst_379 = arith.constant 0.000000e+00 : f32
    %cst_380 = arith.constant 1.000000e+00 : f32
    %1292 = vector.broadcast %cst_379 : f32 to vector<1x128xf32>
    %1293 = arith.maximumf %1292, %1291 : vector<1x128xf32>
    %1294 = vector.broadcast %cst_380 : f32 to vector<1x128xf32>
    %1295 = arith.minimumf %1294, %1293 : vector<1x128xf32>
    %c121 = arith.constant 121 : index
    %1296 = memref.load %arg6[%c121] : memref<272xf32, #tpu.memory_space<smem>>
    %1297 = vector.broadcast %1296 : f32 to vector<1x128xf32>
    %1298 = arith.mulf %1297, %1295 : vector<1x128xf32>
    %1299 = arith.addf %1289, %1298 : vector<1x128xf32>
    %cst_381 = arith.constant 2.000000e+00 : f32
    %1300 = vector.broadcast %cst_381 : f32 to vector<1x128xf32>
    %1301 = arith.subf %1277, %1300 : vector<1x128xf32>
    %cst_382 = arith.constant 0.000000e+00 : f32
    %cst_383 = arith.constant 1.000000e+00 : f32
    %1302 = vector.broadcast %cst_382 : f32 to vector<1x128xf32>
    %1303 = arith.maximumf %1302, %1301 : vector<1x128xf32>
    %1304 = vector.broadcast %cst_383 : f32 to vector<1x128xf32>
    %1305 = arith.minimumf %1304, %1303 : vector<1x128xf32>
    %c122 = arith.constant 122 : index
    %1306 = memref.load %arg6[%c122] : memref<272xf32, #tpu.memory_space<smem>>
    %1307 = vector.broadcast %1306 : f32 to vector<1x128xf32>
    %1308 = arith.mulf %1307, %1305 : vector<1x128xf32>
    %1309 = arith.addf %1299, %1308 : vector<1x128xf32>
    %cst_384 = arith.constant 3.000000e+00 : f32
    %1310 = vector.broadcast %cst_384 : f32 to vector<1x128xf32>
    %1311 = arith.subf %1277, %1310 : vector<1x128xf32>
    %cst_385 = arith.constant 0.000000e+00 : f32
    %cst_386 = arith.constant 1.000000e+00 : f32
    %1312 = vector.broadcast %cst_385 : f32 to vector<1x128xf32>
    %1313 = arith.maximumf %1312, %1311 : vector<1x128xf32>
    %1314 = vector.broadcast %cst_386 : f32 to vector<1x128xf32>
    %1315 = arith.minimumf %1314, %1313 : vector<1x128xf32>
    %c123 = arith.constant 123 : index
    %1316 = memref.load %arg6[%c123] : memref<272xf32, #tpu.memory_space<smem>>
    %1317 = vector.broadcast %1316 : f32 to vector<1x128xf32>
    %1318 = arith.mulf %1317, %1315 : vector<1x128xf32>
    %1319 = arith.addf %1309, %1318 : vector<1x128xf32>
    %cst_387 = arith.constant 4.000000e+00 : f32
    %1320 = vector.broadcast %cst_387 : f32 to vector<1x128xf32>
    %1321 = arith.subf %1277, %1320 : vector<1x128xf32>
    %cst_388 = arith.constant 0.000000e+00 : f32
    %cst_389 = arith.constant 1.000000e+00 : f32
    %1322 = vector.broadcast %cst_388 : f32 to vector<1x128xf32>
    %1323 = arith.maximumf %1322, %1321 : vector<1x128xf32>
    %1324 = vector.broadcast %cst_389 : f32 to vector<1x128xf32>
    %1325 = arith.minimumf %1324, %1323 : vector<1x128xf32>
    %c124 = arith.constant 124 : index
    %1326 = memref.load %arg6[%c124] : memref<272xf32, #tpu.memory_space<smem>>
    %1327 = vector.broadcast %1326 : f32 to vector<1x128xf32>
    %1328 = arith.mulf %1327, %1325 : vector<1x128xf32>
    %1329 = arith.addf %1319, %1328 : vector<1x128xf32>
    %cst_390 = arith.constant 5.000000e+00 : f32
    %1330 = vector.broadcast %cst_390 : f32 to vector<1x128xf32>
    %1331 = arith.subf %1277, %1330 : vector<1x128xf32>
    %cst_391 = arith.constant 0.000000e+00 : f32
    %cst_392 = arith.constant 1.000000e+00 : f32
    %1332 = vector.broadcast %cst_391 : f32 to vector<1x128xf32>
    %1333 = arith.maximumf %1332, %1331 : vector<1x128xf32>
    %1334 = vector.broadcast %cst_392 : f32 to vector<1x128xf32>
    %1335 = arith.minimumf %1334, %1333 : vector<1x128xf32>
    %c125 = arith.constant 125 : index
    %1336 = memref.load %arg6[%c125] : memref<272xf32, #tpu.memory_space<smem>>
    %1337 = vector.broadcast %1336 : f32 to vector<1x128xf32>
    %1338 = arith.mulf %1337, %1335 : vector<1x128xf32>
    %1339 = arith.addf %1329, %1338 : vector<1x128xf32>
    %cst_393 = arith.constant 6.000000e+00 : f32
    %1340 = vector.broadcast %cst_393 : f32 to vector<1x128xf32>
    %1341 = arith.subf %1277, %1340 : vector<1x128xf32>
    %cst_394 = arith.constant 0.000000e+00 : f32
    %cst_395 = arith.constant 1.000000e+00 : f32
    %1342 = vector.broadcast %cst_394 : f32 to vector<1x128xf32>
    %1343 = arith.maximumf %1342, %1341 : vector<1x128xf32>
    %1344 = vector.broadcast %cst_395 : f32 to vector<1x128xf32>
    %1345 = arith.minimumf %1344, %1343 : vector<1x128xf32>
    %c126 = arith.constant 126 : index
    %1346 = memref.load %arg6[%c126] : memref<272xf32, #tpu.memory_space<smem>>
    %1347 = vector.broadcast %1346 : f32 to vector<1x128xf32>
    %1348 = arith.mulf %1347, %1345 : vector<1x128xf32>
    %1349 = arith.addf %1339, %1348 : vector<1x128xf32>
    %cst_396 = arith.constant 7.000000e+00 : f32
    %1350 = vector.broadcast %cst_396 : f32 to vector<1x128xf32>
    %1351 = arith.subf %1277, %1350 : vector<1x128xf32>
    %cst_397 = arith.constant 0.000000e+00 : f32
    %cst_398 = arith.constant 1.000000e+00 : f32
    %1352 = vector.broadcast %cst_397 : f32 to vector<1x128xf32>
    %1353 = arith.maximumf %1352, %1351 : vector<1x128xf32>
    %1354 = vector.broadcast %cst_398 : f32 to vector<1x128xf32>
    %1355 = arith.minimumf %1354, %1353 : vector<1x128xf32>
    %c127 = arith.constant 127 : index
    %1356 = memref.load %arg6[%c127] : memref<272xf32, #tpu.memory_space<smem>>
    %1357 = vector.broadcast %1356 : f32 to vector<1x128xf32>
    %1358 = arith.mulf %1357, %1355 : vector<1x128xf32>
    %1359 = arith.addf %1349, %1358 : vector<1x128xf32>
    %cst_399 = arith.constant 8.000000e+00 : f32
    %1360 = vector.broadcast %cst_399 : f32 to vector<1x128xf32>
    %1361 = arith.subf %1277, %1360 : vector<1x128xf32>
    %cst_400 = arith.constant 0.000000e+00 : f32
    %cst_401 = arith.constant 1.000000e+00 : f32
    %1362 = vector.broadcast %cst_400 : f32 to vector<1x128xf32>
    %1363 = arith.maximumf %1362, %1361 : vector<1x128xf32>
    %1364 = vector.broadcast %cst_401 : f32 to vector<1x128xf32>
    %1365 = arith.minimumf %1364, %1363 : vector<1x128xf32>
    %c128 = arith.constant 128 : index
    %1366 = memref.load %arg6[%c128] : memref<272xf32, #tpu.memory_space<smem>>
    %1367 = vector.broadcast %1366 : f32 to vector<1x128xf32>
    %1368 = arith.mulf %1367, %1365 : vector<1x128xf32>
    %1369 = arith.addf %1359, %1368 : vector<1x128xf32>
    %cst_402 = arith.constant 9.000000e+00 : f32
    %1370 = vector.broadcast %cst_402 : f32 to vector<1x128xf32>
    %1371 = arith.subf %1277, %1370 : vector<1x128xf32>
    %cst_403 = arith.constant 0.000000e+00 : f32
    %cst_404 = arith.constant 1.000000e+00 : f32
    %1372 = vector.broadcast %cst_403 : f32 to vector<1x128xf32>
    %1373 = arith.maximumf %1372, %1371 : vector<1x128xf32>
    %1374 = vector.broadcast %cst_404 : f32 to vector<1x128xf32>
    %1375 = arith.minimumf %1374, %1373 : vector<1x128xf32>
    %c129 = arith.constant 129 : index
    %1376 = memref.load %arg6[%c129] : memref<272xf32, #tpu.memory_space<smem>>
    %1377 = vector.broadcast %1376 : f32 to vector<1x128xf32>
    %1378 = arith.mulf %1377, %1375 : vector<1x128xf32>
    %1379 = arith.addf %1369, %1378 : vector<1x128xf32>
    %cst_405 = arith.constant 1.000000e+01 : f32
    %1380 = vector.broadcast %cst_405 : f32 to vector<1x128xf32>
    %1381 = arith.subf %1277, %1380 : vector<1x128xf32>
    %cst_406 = arith.constant 0.000000e+00 : f32
    %cst_407 = arith.constant 1.000000e+00 : f32
    %1382 = vector.broadcast %cst_406 : f32 to vector<1x128xf32>
    %1383 = arith.maximumf %1382, %1381 : vector<1x128xf32>
    %1384 = vector.broadcast %cst_407 : f32 to vector<1x128xf32>
    %1385 = arith.minimumf %1384, %1383 : vector<1x128xf32>
    %c130 = arith.constant 130 : index
    %1386 = memref.load %arg6[%c130] : memref<272xf32, #tpu.memory_space<smem>>
    %1387 = vector.broadcast %1386 : f32 to vector<1x128xf32>
    %1388 = arith.mulf %1387, %1385 : vector<1x128xf32>
    %1389 = arith.addf %1379, %1388 : vector<1x128xf32>
    %cst_408 = arith.constant 1.100000e+01 : f32
    %1390 = vector.broadcast %cst_408 : f32 to vector<1x128xf32>
    %1391 = arith.subf %1277, %1390 : vector<1x128xf32>
    %cst_409 = arith.constant 0.000000e+00 : f32
    %cst_410 = arith.constant 1.000000e+00 : f32
    %1392 = vector.broadcast %cst_409 : f32 to vector<1x128xf32>
    %1393 = arith.maximumf %1392, %1391 : vector<1x128xf32>
    %1394 = vector.broadcast %cst_410 : f32 to vector<1x128xf32>
    %1395 = arith.minimumf %1394, %1393 : vector<1x128xf32>
    %c131 = arith.constant 131 : index
    %1396 = memref.load %arg6[%c131] : memref<272xf32, #tpu.memory_space<smem>>
    %1397 = vector.broadcast %1396 : f32 to vector<1x128xf32>
    %1398 = arith.mulf %1397, %1395 : vector<1x128xf32>
    %1399 = arith.addf %1389, %1398 : vector<1x128xf32>
    %cst_411 = arith.constant 1.200000e+01 : f32
    %1400 = vector.broadcast %cst_411 : f32 to vector<1x128xf32>
    %1401 = arith.subf %1277, %1400 : vector<1x128xf32>
    %cst_412 = arith.constant 0.000000e+00 : f32
    %cst_413 = arith.constant 1.000000e+00 : f32
    %1402 = vector.broadcast %cst_412 : f32 to vector<1x128xf32>
    %1403 = arith.maximumf %1402, %1401 : vector<1x128xf32>
    %1404 = vector.broadcast %cst_413 : f32 to vector<1x128xf32>
    %1405 = arith.minimumf %1404, %1403 : vector<1x128xf32>
    %c132 = arith.constant 132 : index
    %1406 = memref.load %arg6[%c132] : memref<272xf32, #tpu.memory_space<smem>>
    %1407 = vector.broadcast %1406 : f32 to vector<1x128xf32>
    %1408 = arith.mulf %1407, %1405 : vector<1x128xf32>
    %1409 = arith.addf %1399, %1408 : vector<1x128xf32>
    %cst_414 = arith.constant 1.300000e+01 : f32
    %1410 = vector.broadcast %cst_414 : f32 to vector<1x128xf32>
    %1411 = arith.subf %1277, %1410 : vector<1x128xf32>
    %cst_415 = arith.constant 0.000000e+00 : f32
    %cst_416 = arith.constant 1.000000e+00 : f32
    %1412 = vector.broadcast %cst_415 : f32 to vector<1x128xf32>
    %1413 = arith.maximumf %1412, %1411 : vector<1x128xf32>
    %1414 = vector.broadcast %cst_416 : f32 to vector<1x128xf32>
    %1415 = arith.minimumf %1414, %1413 : vector<1x128xf32>
    %c133 = arith.constant 133 : index
    %1416 = memref.load %arg6[%c133] : memref<272xf32, #tpu.memory_space<smem>>
    %1417 = vector.broadcast %1416 : f32 to vector<1x128xf32>
    %1418 = arith.mulf %1417, %1415 : vector<1x128xf32>
    %1419 = arith.addf %1409, %1418 : vector<1x128xf32>
    %cst_417 = arith.constant 1.400000e+01 : f32
    %1420 = vector.broadcast %cst_417 : f32 to vector<1x128xf32>
    %1421 = arith.subf %1277, %1420 : vector<1x128xf32>
    %cst_418 = arith.constant 0.000000e+00 : f32
    %cst_419 = arith.constant 1.000000e+00 : f32
    %1422 = vector.broadcast %cst_418 : f32 to vector<1x128xf32>
    %1423 = arith.maximumf %1422, %1421 : vector<1x128xf32>
    %1424 = vector.broadcast %cst_419 : f32 to vector<1x128xf32>
    %1425 = arith.minimumf %1424, %1423 : vector<1x128xf32>
    %c134 = arith.constant 134 : index
    %1426 = memref.load %arg6[%c134] : memref<272xf32, #tpu.memory_space<smem>>
    %1427 = vector.broadcast %1426 : f32 to vector<1x128xf32>
    %1428 = arith.mulf %1427, %1425 : vector<1x128xf32>
    %1429 = arith.addf %1419, %1428 : vector<1x128xf32>
    %cst_420 = arith.constant 1.500000e+01 : f32
    %1430 = vector.broadcast %cst_420 : f32 to vector<1x128xf32>
    %1431 = arith.subf %1277, %1430 : vector<1x128xf32>
    %cst_421 = arith.constant 0.000000e+00 : f32
    %cst_422 = arith.constant 1.000000e+00 : f32
    %1432 = vector.broadcast %cst_421 : f32 to vector<1x128xf32>
    %1433 = arith.maximumf %1432, %1431 : vector<1x128xf32>
    %1434 = vector.broadcast %cst_422 : f32 to vector<1x128xf32>
    %1435 = arith.minimumf %1434, %1433 : vector<1x128xf32>
    %c135 = arith.constant 135 : index
    %1436 = memref.load %arg6[%c135] : memref<272xf32, #tpu.memory_space<smem>>
    %1437 = vector.broadcast %1436 : f32 to vector<1x128xf32>
    %1438 = arith.mulf %1437, %1435 : vector<1x128xf32>
    %1439 = arith.addf %1429, %1438 : vector<1x128xf32>
    %1440 = vector.broadcast %1439 : vector<1x128xf32> to vector<5x128xf32>
    %1441 = arith.mulf %1103, %1440 : vector<5x128xf32>
    %c0_423 = arith.constant 0 : index
    %c0_424 = arith.constant 0 : index
    %1442 = vector.load %arg7[%c0_423, %c0_424] : memref<5x128xf32, #tpu.memory_space<vmem>>, vector<5x128xf32>
    tpu.vector_store %arg7[%c0_423, %c0_424], %1441 {strides = array<i32>} : memref<5x128xf32, #tpu.memory_space<vmem>>, vector<5x128xf32>,
    return
  }
  func.func @transform_0(%arg0: i32) -> (i32, i32, i32) {
    %c0_i32 = arith.constant 0 : i32
    %c0_i32_0 = arith.constant 0 : i32
    %c0_i32_1 = arith.constant 0 : i32
    return %c0_i32, %c0_i32_0, %arg0 : i32, i32, i32
  }
  func.func @transform_1(%arg0: i32) -> (i32, i32, i32) {
    %c0_i32 = arith.constant 0 : i32
    %c0_i32_0 = arith.constant 0 : i32
    %c0_i32_1 = arith.constant 0 : i32
    return %c0_i32, %c0_i32_0, %arg0 : i32, i32, i32
  }
  func.func @transform_2(%arg0: i32) -> (i32, i32) {
    %c0_i32 = arith.constant 0 : i32
    %c0_i32_0 = arith.constant 0 : i32
    return %c0_i32, %arg0 : i32, i32
  }
  func.func @transform_3(%arg0: i32) -> (i32, i32) {
    %c0_i32 = arith.constant 0 : i32
    %c0_i32_0 = arith.constant 0 : i32
    return %c0_i32, %arg0 : i32, i32
  }
  func.func @transform_4(%arg0: i32) -> (i32, i32) {
    %c0_i32 = arith.constant 0 : i32
    %c0_i32_0 = arith.constant 0 : i32
    return %c0_i32, %arg0 : i32, i32
  }
  func.func @transform_5(%arg0: i32) -> i32 {
    %c0_i32 = arith.constant 0 : i32
    %c0_i32_0 = arith.constant 0 : i32
    return %c0_i32 : i32
  }
  func.func @transform_6(%arg0: i32) -> (i32, i32) {
    %c0_i32 = arith.constant 0 : i32
    %c0_i32_0 = arith.constant 0 : i32
    return %c0_i32, %arg0 : i32, i32
  }
}

</mosaic_0001>

<bundles_post_ra>
// kernel: tpu_custom_call.1
= control target key start
LH: loop header
LB: loop body
LE: loop exit
PB: predicated region body
PF: predicated region fallthrough
CT: control target
= control target key end

     0   :  { %11 = vsyncpa [#allocation4], 0  ;;  %s4483_s0 = inlined_call_operand.hbm [shape: f32[4,16,128], index: 0, kind: input, shape index: {}]   ;;  %s4484_s1 = inlined_call_operand.hbm [shape: f32[4,16,128], index: 1, kind: input, shape index: {}]   ;;  %s4485_s2 = inlined_call_operand.hbm [shape: f32[16,128], index: 2, kind: input, shape index: {}]   ;;  %s4486_s3 = inlined_call_operand.hbm [shape: f32[16,128], index: 3, kind: input, shape index: {}]   ;;  %s4487_s4 = inlined_call_operand.hbm [shape: f32[4,128], index: 4, kind: input, shape index: {}]   ;;  %s4488_s5 = inlined_call_operand.vmem [shape: f32[272], index: 5, kind: input, shape index: {}]   ;;  %s4489_s6 = inlined_call_operand.hbm [shape: f32[5,128], index: 6, kind: output, shape index: {}]  }
   0x1   :  { %12 = vsyncpa [#allocation8], 0 }
   0x2   :  { %13 = vsyncpa [#allocation11], 0 }
   0x3   :  { %14 = vsyncpa [#allocation6], 0 }
   0x4   :  { %15 = vsyncpa [#allocation5], 0  ;;  %s33_s23 = sshll.u32 %s4484_s1, 4  ;;  %s3159_s24 = smov [#allocation7]   ;;  %s34_s23 = int_to_ptr.hbm [resolvable:$true] %s33_s23 }
   0x5   :  { %s35_s25 = sshll.u32 %s3159_s24, 4  ;;  %s59_s28 = sshll.u32 %s4486_s3, 4  ;;  %s36_s25 = int_to_ptr.vmem [resolvable:$true] %s35_s25  ;;  %s60_s28 = int_to_ptr.hbm [resolvable:$true] %s59_s28 }
   0x6   :  { %s3160_s29 = smov 128   ;;  %s3161_s30 = smov 8  }
   0x7   :  { %41 = dma.hbm_to_vmem [thread:$0]  %s34_s23, 1024, %s36_s25, [#allocation8], %s3160_s29, %s3160_s29, %s3161_s30  }
   0x8   :  { %s3162_s7 = smov [#allocation10]   ;;  %s20_s11 = sshll.u32 %s4483_s0, 4  ;;  %s21_s11 = int_to_ptr.hbm [resolvable:$true] %s20_s11 }
   0x9   :  { %s61_s8 = sshll.u32 %s3162_s7, 4  ;;  %s46_s13 = sshll.u32 %s4485_s2, 4  ;;  %s62_s8 = int_to_ptr.vmem [resolvable:$true] %s61_s8  ;;  %s47_s13 = int_to_ptr.hbm [resolvable:$true] %s46_s13 }
   0xa   :  { %67 = dma.hbm_to_vmem [thread:$0]  %s60_s28, 256, %s62_s8, [#allocation11], %s3160_s29, %s3160_s29, %s3161_s30  }
   0xb   :  { %s3163_s14 = smov [#allocation3]   ;;  %s3164_s3 = smov [#allocation9]  }
   0xc   :  { %s22_s15 = sshll.u32 %s3163_s14, 4  ;;  %s48_s16 = sshll.u32 %s3164_s3, 4  ;;  %s23_s15 = int_to_ptr.vmem [resolvable:$true] %s22_s15  ;;  %s49_s16 = int_to_ptr.vmem [resolvable:$true] %s48_s16 }
   0xd   :  { %28 = dma.hbm_to_vmem [thread:$0]  %s21_s11, 1024, %s23_s15, [#allocation4], %s3160_s29, %s3160_s29, %s3161_s30  }
   0xe   :  { %s73_s19 = sshll.u32 %s4487_s4, 4  ;;  %s84_s21 = sshll.u32 %s4488_s5, 4  ;;  %s74_s19 = int_to_ptr.hbm [resolvable:$true] %s73_s19  ;;  %s85_s21 = int_to_ptr.vmem [resolvable:$true] %s84_s21 }
   0xf   :  { %54 = dma.hbm_to_vmem [thread:$0]  %s47_s13, 256, %s49_s16, [#allocation8], %s3160_s29, %s3160_s29, %s3161_s30  }
  0x10   :  { %s3165_s22 = smov [#allocation12]   ;;  %s3166_s23 = smov [#allocation13]  }
  0x11   :  { %s75_s2 = sshll.u32 %s3165_s22, 4  ;;  %s76_s2 = int_to_ptr.vmem [resolvable:$true] %s75_s2 }
  0x12   :  { %78 = dma.hbm_to_vmem [thread:$0]  %s74_s19, 64, %s76_s2, [#allocation11]  }
  0x13   :  { %87 = dma.vmem_to_smem %s85_s21, 48, %s3166_s23, [#allocation6]  }
  0x14   :  { %3149 = dma.done.wait [#allocation4], 1024  }
  0x15   :  { %3150 = vsyncadd [#allocation4], 4294966272 }
  0x16   :  { %3151 = dma.done.wait [#allocation8], 1280  }
  0x17   :  { %3152 = vsyncadd [#allocation8], 4294966016 }
  0x18   :  { %3153 = dma.done.wait [#allocation11], 320  }
  0x19   :  { %3154 = vsyncadd [#allocation11], 4294966976 }
  0x1a   :  { %3155 = dma.done.wait [#allocation6], 48  }
  0x1b   :  { %3156 = vsyncadd [#allocation6], 4294967248 }
  0x1c   :  { %112 = sfence }
  0x1d   :  { %v113_v0 = vld [vmem:[#allocation3] sm:$0xff]  ;;  %v114_v1 = vld [vmem:[#allocation3 + $0x8] sm:$0xff]  ;;  %v116_v2 = vld [vmem:[#allocation3 + $0x10] sm:$0xff]  ;;  %s3228_s4 = sld [smem:[#allocation13]] }
  0x1e   :  { %v117_v3 = vld [vmem:[#allocation3 + $0x18] sm:$0xff]  ;;  %v119_v4 = vld [vmem:[#allocation3 + $0x20] sm:$0xff]  ;;  %v120_v5 = vld [vmem:[#allocation3 + $0x28] sm:$0xff]  ;;  %s3232_s5 = sld [smem:[#allocation13 + $0x33]] }
  0x1f   :  { %v122_v6 = vld [vmem:[#allocation3 + $0x30] sm:$0xff]  ;;  %v123_v7 = vld [vmem:[#allocation3 + $0x38] sm:$0xff]  ;;  %v124_v8 = vld [vmem:[#allocation7] sm:$0xff]  ;;  %v135_v9 = vsub.f32 %v119_v4, %v113_v0  ;;  %v136_v10 = vsub.f32 %v120_v5, %v114_v1  ;;  %s3251_s24 = sld [smem:[#allocation13 + $0x1]] }
  0x20   :  { %v125_v11 = vld [vmem:[#allocation7 + $0x8] sm:$0xff]  ;;  %v127_v12 = vld [vmem:[#allocation7 + $0x10] sm:$0xff]  ;;  %v128_v13 = vld [vmem:[#allocation7 + $0x18] sm:$0xff]  ;;  %v139_v14 = vsub.f32 %v122_v6, %v116_v2  ;;  %v140_v15 = vsub.f32 %v123_v7, %v117_v3  ;;  %v157_v16 = vmax.f32 %v113_v0, %v124_v8  ;;  %s3282_s25 = sld [smem:[#allocation13 + $0x34]] }
  0x21   :  { %v130_v17 = vld [vmem:[#allocation7 + $0x20] sm:$0xff]  ;;  %v131_v18 = vld [vmem:[#allocation7 + $0x28] sm:$0xff]  ;;  %v133_v19 = vld [vmem:[#allocation7 + $0x30] sm:$0xff]  ;;  %v137_v20 = vmax.f32 %v135_v9, 0.0  ;;  %v138_v21 = vmax.f32 %v136_v10, 0.0  ;;  %v158_v22 = vmax.f32 %v114_v1, %v125_v11  ;;  %v165_v23 = vmax.f32 %v116_v2, %v127_v12  ;;  %s3286_s26 = sld [smem:[#allocation13 + $0x2]] }
  0x22   :  { %v134_v24 = vld [vmem:[#allocation7 + $0x38] sm:$0xff]  ;;  %v141_v25 = vmax.f32 %v139_v14, 0.0  ;;  %v142_v26 = vmax.f32 %v140_v15, 0.0  ;;  %v145_v27 = vsub.f32 %v130_v17, %v124_v8  ;;  %v146_v28 = vsub.f32 %v131_v18, %v125_v11  ;;  %v211_v33 = vld [vmem:[#allocation9] sm:$0xff]  ;;  %v212_v42 = vld [vmem:[#allocation9 + $0x8] sm:$0xff]  ;;  %s3296_s27 = sld [smem:[#allocation13 + $0x35]] }
  0x23   :  { %v149_v29 = vsub.f32 %v133_v19, %v127_v12  ;;  %v150_v30 = vsub.f32 %v134_v24, %v128_v13  ;;  %v155_v31 = vmin.f32 %v119_v4, %v130_v17  ;;  %v156_v32 = vmin.f32 %v120_v5, %v131_v18  ;;  %v251_v47 = vld [vmem:[#allocation10] sm:$0xff]  ;;  %v252_v52 = vld [vmem:[#allocation10 + $0x8] sm:$0xff]  ;;  %v291_v0 = vld [vmem:[#allocation12] sm:$0xf]  ;;  %s3302_s28 = sld [smem:[#allocation13 + $0x3]] }
  0x24   :  { %v143_v34 = vmul.f32 %v141_v25, %v137_v20  ;;  %v144_v35 = vmul.f32 %v142_v26, %v138_v21  ;;  %v147_v36 = vmax.f32 %v145_v27, 0.0  ;;  %v148_v37 = vmax.f32 %v146_v28, 0.0  ;;  %s3316_s29 = sld [smem:[#allocation13 + $0x36]] }
  0x25   :  { %v151_v38 = vmax.f32 %v149_v29, 0.0  ;;  %v152_v39 = vmax.f32 %v150_v30, 0.0  ;;  %v159_v40 = vsub.f32 %v155_v31, %v157_v16  ;;  %v160_v41 = vsub.f32 %v156_v32, %v158_v22  ;;  %s3331_s30 = sld [smem:[#allocation13 + $0x4]] }
  0x26   :  { %v163_v43 = vmin.f32 %v122_v6, %v133_v19  ;;  %v164_v44 = vmin.f32 %v123_v7, %v134_v24  ;;  %v166_v45 = vmax.f32 %v117_v3, %v128_v13  ;;  %v2515_v46 = vmul.f32 -1.442695, %v211_v33  ;;  %s3336_s7 = sld [smem:[#allocation13 + $0x37]] }
  0x27   :  { %v153_v48 = vmul.f32 %v151_v38, %v147_v36  ;;  %v154_v49 = vmul.f32 %v152_v39, %v148_v37  ;;  %v161_v50 = vmax.f32 %v159_v40, 0.0  ;;  %v162_v51 = vmax.f32 %v160_v41, 0.0  ;;  %s3344_s8 = sld [smem:[#allocation13 + $0x5]] }
  0x28   :  { %v167_v53 = vsub.f32 %v163_v43, %v165_v23  ;;  %v168_v54 = vsub.f32 %v164_v44, %v166_v45  ;;  %2959 = vpow2.f32 %v2515_v46  ;;  %v2516_v55 = vmul.f32 -1.442695, %v212_v42  ;;  %s3359_s9 = sld [smem:[#allocation13 + $0x38]] }
  0x29   :  { %v173_v56 = vadd.f32 %v153_v48, %v143_v34  ;;  %v174_v57 = vadd.f32 %v154_v49, %v144_v35  ;;  %v2517_v58 = vmul.f32 -1.442695, %v251_v47  ;;  %v2518_v61 = vmul.f32 -1.442695, %v252_v52  ;;  %s3371_s10 = sld [smem:[#allocation13 + $0x6]] }
  0x2a   :  { %v169_v59 = vmax.f32 %v167_v53, 0.0  ;;  %v170_v60 = vmax.f32 %v168_v54, 0.0  ;;  %2961 = vpow2.f32 %v2516_v55  ;;  %v2519_v8 = vmul.f32 -1.442695, %v291_v0  ;;  %s3375_s11 = sld [smem:[#allocation13 + $0x39]] }
  0x2b   :  { %2963 = vpow2.f32 %v2517_v58  ;;  %v320_v15 = vstv %s3228_s4  ;;  %v322_v19 = vstv %s3232_s5  ;;  %s3384_s1 = sld [smem:[#allocation13 + $0x7]]  ;;  %v370_v34 = vstv %s3316_s29 }
  0x2c   :  { %v3222_v62 = vmul.f32 %v169_v59, %v161_v50  ;;  %v3224_v63 = vmul.f32 %v170_v60, %v162_v51  ;;  %2965 = vpow2.f32 %v2518_v61  ;;  %v328_v50 = vstv %s3251_s24  ;;  %s3456_s12 = sld [smem:[#allocation13 + $0x3a]] }
  0x2d   :  { %v388_v38 = vstv %s3336_s7  ;;  %s3460_s13 = sld [smem:[#allocation13 + $0x8]] }
  0x2e   :  { %v2960_v1 = vpop.eup %2959  ;;  %v175_v2 = vsub.f32 %v173_v56, %v3222_v62  ;;  %v176_v3 = vsub.f32 %v174_v57, %v3224_v63  ;;  %v406_v42 = vstv %s3359_s9  ;;  %s3466_s14 = sld [smem:[#allocation13 + $0x3b]] }
  0x2f   :  { %v3230_v4 = vadd.f32 1.0, %v2960_v1  ;;  %s3472_s15 = sld [smem:[#allocation13 + $0x9]] }
  0x30   :  { %v2962_v5 = vpop.eup %2961  ;;  %v177_v6 = vadd.f32 1e-12, %v175_v2  ;;  %v3234_v7 = vadd.f32 1e-12, %v176_v3  ;;  %s3474_s3 = sld [smem:[#allocation13 + $0x3c]] }
  0x31   :  { %v3236_v9 = vadd.f32 1.0, %v2962_v5  ;;  %2967 = vrcp.f32 %v3230_v4  ;;  %v2964_v10 = vpop.eup %2963  ;;  %vm226_vm0 = vweird.f32 %v3230_v4  ;;  %v230_v23 = vand.u32 2147483647, %v3230_v4  ;;  %s3497_s16 = sld [smem:[#allocation13 + $0xa]] }
  0x32   :  { %2969 = vrcp.f32 %v177_v6  ;;  %v2966_v11 = vpop.eup %2965  ;;  %v188_v12 = vand.u32 2147483647, %v177_v6  ;;  %v190_v13 = vand.u32 2147483648, %v177_v6  ;;  %v3241_v14 = vadd.f32 1.0, %v2964_v10  ;;  %s3501_s17 = sld [smem:[#allocation13 + $0x3d]] }
  0x33   :  { %2971 = vrcp.f32 %v3234_v7  ;;  %v203_v17 = vand.u32 2147483647, %v3234_v7  ;;  %v3248_v18 = vadd.f32 1.0, %v2966_v11  ;;  %vm184_vm1 = vweird.f32 %v177_v6  ;;  %s3507_s18 = sld [smem:[#allocation13 + $0xb]] }
  0x34   :  { %2973 = vpow2.f32 %v2519_v8  ;;  %v205_v21 = vand.u32 2147483648, %v3234_v7  ;;  %vm199_vm2 = vweird.f32 %v3234_v7  ;;  %v232_v26 = vand.u32 2147483648, %v3230_v4  ;;  %s3509_s19 = sld [smem:[#allocation13 + $0x3e]] }
  0x35   :  { %2975 = vrcp.f32 %v3236_v9  ;;  %vm3262_vm3 = vcmp.eq.f32.partialorder %v188_v12, 8.507059e+37  ;;  %v191_v29 = vor.u32 1.1754944e-38, %v190_v13  ;;  %vm3270_vm5 = vcmp.eq.f32.partialorder %v203_v17, 8.507059e+37  ;;  %s3513_s0 = sld [smem:[#allocation13 + $0xc]] }
  0x36   :  { %2977 = vrcp.f32 %v3241_v14  ;;  %v206_v36 = vor.u32 1.1754944e-38, %v205_v21  ;;  %vm3276_vm6 = vcmp.eq.f32.partialorder %v230_v23, 8.507059e+37  ;;  %v233_v41 = vor.u32 1.1754944e-38, %v232_v26  ;;  %s3516_s20 = sld [smem:[#allocation13 + $0x3f]] }
  0x37   :  { %v3244_v16 = vpop.eup %2967  ;;  %2979 = vrcp.f32 %v3248_v18  ;;  %vm241_vm8 = vweird.f32 %v3236_v9  ;;  %v245_v45 = vand.u32 2147483647, %v3236_v9  ;;  %v247_v48 = vand.u32 2147483648, %v3236_v9  ;;  %s3522_s21 = sld [smem:[#allocation13 + $0xd]] }
  0x38   :  { %v2970_v20 = vpop.eup %2969  ;;  %v222_v22 = vmul.f32 %v3244_v16, %v3230_v4  ;;  %vm227_vm10 = vweird.f32 %v3244_v16  ;;  %vm266_vm14 = vweird.f32 %v3241_v14  ;;  %v272_v59 = vand.u32 2147483648, %v3241_v14  ;;  %s3526_s22 = sld [smem:[#allocation13 + $0x40]] }
  0x39   :  { %v3257_v24 = vpop.eup %2971  ;;  %v180_v25 = vmul.f32 %v2970_v20, %v177_v6  ;;  %vm185_vm4 = vweird.f32 %v2970_v20  ;;  %vm3324_vm12 = vmor %vm226_vm0, %vm227_vm10  ;;  %v270_v0 = vand.u32 2147483647, %v3241_v14  ;;  %vm281_vm0 = vweird.f32 %v3248_v18  ;;  %s3533_s2 = sld [smem:[#allocation13 + $0xe]] }
  0x3a   :  { %v2974_v27 = vpop.eup %2973  ;;  %v195_v30 = vmul.f32 %v3257_v24, %v3234_v7  ;;  %v223_v31 = vsub.f32 1.0, %v222_v22  ;;  %vm200_vm7 = vweird.f32 %v3257_v24  ;;  %vm3289_vm9 = vmor %vm184_vm1, %vm185_vm4  ;;  %v285_v7 = vand.u32 2147483647, %v3248_v18  ;;  %s3535_s23 = sld [smem:[#allocation13 + $0x41]] }
  0x3b   :  { %v3268_v32 = vpop.eup %2975  ;;  %v181_v33 = vsub.f32 1.0, %v180_v25  ;;  %v3299_v49 = vadd.f32 1.0, %v2974_v27  ;;  %vm3309_vm11 = vmor %vm199_vm2, %vm200_vm7  ;;  %v287_v8 = vand.u32 2147483648, %v3248_v18  ;;  %vm271_vm4 = vcmp.eq.f32.partialorder %v270_v0, 8.507059e+37  ;;  %s3537_s4 = sld [smem:[#allocation13 + $0xf]] }
  0x3c   :  { %v196_v35 = vsub.f32 1.0, %v195_v30  ;;  %v224_v37 = vmul.f32 %v3244_v16, %v223_v31  ;;  %v237_v39 = vmul.f32 %v3268_v32, %v3236_v9  ;;  %v2978_v46 = vpop.eup %2977  ;;  %vm242_vm13 = vweird.f32 %v3268_v32  ;;  %s3542_s5 = sld [smem:[#allocation13 + $0x42]] }
  0x3d   :  { %v182_v40 = vmul.f32 %v2970_v20, %v181_v33  ;;  %v262_v55 = vmul.f32 %v2978_v46, %v3241_v14  ;;  %v2980_v56 = vpop.eup %2979  ;;  %vm267_vm15 = vweird.f32 %v2978_v46  ;;  %vm3353_vm1 = vmor %vm241_vm8, %vm242_vm13  ;;  %v273_v9 = vor.u32 1.1754944e-38, %v272_v59  ;;  %s3544_s24 = sld [smem:[#allocation13 + $0x10]] }
  0x3e   :  { %v197_v43 = vmul.f32 %v3257_v24, %v196_v35  ;;  %v238_v44 = vsub.f32 1.0, %v237_v39  ;;  %v225_v53 = vadd.f32 %v3244_v16, %v224_v37  ;;  %v277_v3 = vmul.f32 %v2980_v56, %v3248_v18  ;;  %vm3367_vm2 = vmor %vm266_vm14, %vm267_vm15  ;;  %s3564_s29 = sld [smem:[#allocation13 + $0x12]] }
  0x3f   :  { %v183_v47 = vadd.f32 %v2970_v20, %v182_v40  ;;  %v263_v61 = vsub.f32 1.0, %v262_v55  ;;  %vm246_vm7 = vcmp.eq.f32.partialorder %v245_v45, 8.507059e+37  ;;  %v288_v23 = vor.u32 1.1754944e-38, %v287_v8  ;;  %s3569_s7 = sld [smem:[#allocation13 + $0x67]] }
  0x40   :  { %v198_v51 = vadd.f32 %v3257_v24, %v197_v43  ;;  %v239_v54 = vmul.f32 %v3268_v32, %v238_v44  ;;  %v229_v4 = vsel %vm3324_vm12, %v3244_v16, %v225_v53  ;;  %v278_v12 = vsub.f32 1.0, %v277_v3  ;;  %s3590_s9 = sld [smem:[#allocation13 + $0x46]] }
  0x41   :  { %v187_v57 = vsel %vm3289_vm9, %v2970_v20, %v183_v47  ;;  %v264_v6 = vmul.f32 %v2978_v46, %v263_v61  ;;  %v248_v16 = vor.u32 1.1754944e-38, %v247_v48  ;;  %v346_v31 = vstv %s3286_s26  ;;  %s3552_s26 = sld [smem:[#allocation13 + $0x11]] }
  0x42   :  { %v192_v60 = vsel %vm3262_vm3, %v191_v29, %v187_v57  ;;  %v202_v1 = vsel %vm3309_vm11, %v3257_v24, %v198_v51  ;;  %v240_v2 = vadd.f32 %v3268_v32, %v239_v54  ;;  %vm282_vm3 = vweird.f32 %v2980_v56 }
  0x43   :  { %v3362_v10 = vmul.f32 %v192_v60, %v3222_v62  ;;  %v207_v13 = vsel %vm3270_vm5, %v206_v36, %v202_v1  ;;  %v265_v17 = vadd.f32 %v2978_v46, %v264_v6  ;;  %v3379_v62 = vsel %vm3276_vm6, %v233_v41, %v229_v4  ;;  %vm3390_vm5 = vmor %vm281_vm0, %vm282_vm3 }
  0x44   :  { %v244_v14 = vsel %vm3353_vm1, %v3268_v32, %v240_v2  ;;  %v279_v20 = vmul.f32 %v2980_v56, %v278_v12  ;;  %vm286_vm6 = vcmp.eq.f32.partialorder %v285_v7, 8.507059e+37  ;;  %v334_v24 = vstv %s3282_s25  ;;  %s3550_s25 = sld [smem:[#allocation13 + $0x43]] }
  0x45   :  { %v269_v21 = vsel %vm3367_vm2, %v2978_v46, %v265_v17  ;;  %v3396_v25 = vmul.f32 %v207_v13, %v3224_v63  ;;  %v209_v26 = vsub.f32 1.0, %v3362_v10  ;;  %v3401_v18 = vsel %vm246_vm7, %v248_v16, %v244_v14 }
  0x46   :  { %v3399_v27 = vsel %vm271_vm4, %v273_v9, %v269_v21  ;;  %v280_v28 = vadd.f32 %v2980_v56, %v279_v20  ;;  %v352_v32 = vstv %s3296_s27  ;;  %v364_v33 = vstv %s3302_s28  ;;  %s3557_s27 = sld [smem:[#allocation13 + $0x44]] }
  0x47   :  { %v311_v29 = vmul.f32 %v3399_v27, %v3379_v62  ;;  %v313_v30 = vsub.f32 %v3379_v62, %v3399_v27  ;;  %v382_v37 = vstv %s3331_s30  ;;  %v400_v41 = vstv %s3344_s8  ;;  %s3560_s28 = sld [smem:[#allocation13 + $0x66]] }
  0x48   :  { %v284_v63 = vsel %vm3390_vm5, %v2980_v56, %v280_v28  ;;  %v418_v46 = vstv %s3371_s10  ;;  %v424_v51 = vstv %s3375_s11  ;;  %v436_v52 = vstv %s3384_s1  ;;  %s3567_s30 = sld [smem:[#allocation13 + $0x45]] }
  0x49   :  { %v3413_v35 = vsel %vm286_vm6, %v288_v23, %v284_v63  ;;  %v3415_v36 = vmul.f32 16.0, %v311_v29  ;;  %s3575_s8 = sld [smem:[#allocation13 + $0x13]]  ;;  %2981 = vrcp.f32 %v3299_v49  ;;  %vm4490_vm8 = vcmask 1043456  }
  0x4a   :  { %v312_v39 = vmul.f32 %v3413_v35, %v3401_v18  ;;  %v314_v40 = vsub.f32 %v3401_v18, %v3413_v35  ;;  %s3598_s10 = sld [smem:[#allocation13 + $0x68]]  ;;  %vm301_vm9 = vweird.f32 %v3299_v49  ;;  %vm2040_vm7 = vcmask 1040384  }
  0x4b   :  { %v323_v43 = vmax.f32 %v3415_v36, 0.0  ;;  %v2523_v44 = vadd.f32 -1.0, %v3415_v36  ;;  %v2527_v45 = vadd.f32 -2.0, %v3415_v36  ;;  %v2531_v48 = vadd.f32 -3.0, %v3415_v36  ;;  %s3612_s11 = sld [smem:[#allocation13 + $0x14]] }
  0x4c   :  { %v3429_v47 = vmul.f32 16.0, %v312_v39  ;;  %v2535_v56 = vadd.f32 -4.0, %v3415_v36  ;;  %s3614_s1 = sld [smem:[#allocation13 + $0x47]] }
  0x4d   :  { %v325_v53 = vmin.f32 %v323_v43, 1.0  ;;  %v341_v54 = vmax.f32 %v2523_v44, 0.0  ;;  %v359_v55 = vmax.f32 %v2527_v45, 0.0  ;;  %v377_v6 = vmax.f32 %v2531_v48, 0.0 }
  0x4e   :  { %v324_v57 = vmax.f32 %v3429_v47, 0.0  ;;  %v2524_v58 = vadd.f32 -1.0, %v3429_v47  ;;  %v2528_v59 = vadd.f32 -2.0, %v3429_v47  ;;  %v2532_v60 = vadd.f32 -3.0, %v3429_v47 }
  0x4f   :  { %v329_v61 = vmul.f32 %v328_v50, %v325_v53  ;;  %v335_v0 = vmul.f32 %v334_v24, %v325_v53  ;;  %v343_v1 = vmin.f32 %v341_v54, 1.0  ;;  %v361_v2 = vmin.f32 %v359_v55, 1.0 }
  0x50   :  { %v326_v3 = vmin.f32 %v324_v57, 1.0  ;;  %v342_v4 = vmax.f32 %v2524_v58, 0.0  ;;  %v360_v5 = vmax.f32 %v2528_v59, 0.0  ;;  %v378_v48 = vmax.f32 %v2532_v60, 0.0 }
  0x51   :  { %v331_v7 = vadd.f32 %v329_v61, %v320_v15  ;;  %v337_v8 = vadd.f32 %v335_v0, %v322_v19  ;;  %v347_v11 = vmul.f32 %v346_v31, %v343_v1  ;;  %v353_v9 = vmul.f32 %v352_v32, %v343_v1 }
  0x52   :  { %v330_v12 = vmul.f32 %v328_v50, %v326_v3  ;;  %v336_v13 = vmul.f32 %v334_v24, %v326_v3  ;;  %v344_v16 = vmin.f32 %v342_v4, 1.0  ;;  %v362_v17 = vmin.f32 %v360_v5, 1.0 }
  0x53   :  { %v349_v14 = vadd.f32 %v347_v11, %v331_v7  ;;  %v355_v20 = vadd.f32 %v353_v9, %v337_v8  ;;  %v365_v21 = vmul.f32 %v364_v33, %v361_v2  ;;  %v371_v22 = vmul.f32 %v370_v34, %v361_v2 }
  0x54   :  { %v332_v23 = vadd.f32 %v330_v12, %v320_v15  ;;  %v338_v28 = vadd.f32 %v336_v13, %v322_v19  ;;  %v348_v29 = vmul.f32 %v346_v31, %v344_v16  ;;  %v354_v63 = vmul.f32 %v352_v32, %v344_v16 }
  0x55   :  { %v366_v39 = vmul.f32 %v364_v33, %v362_v17  ;;  %v367_v43 = vadd.f32 %v365_v21, %v349_v14  ;;  %v372_v44 = vmul.f32 %v370_v34, %v362_v17  ;;  %v373_v45 = vadd.f32 %v371_v22, %v355_v20 }
  0x56   :  { %v350_v50 = vadd.f32 %v348_v29, %v332_v23  ;;  %v356_v24 = vadd.f32 %v354_v63, %v338_v28  ;;  %v379_v53 = vmin.f32 %v377_v6, 1.0  ;;  %v2536_v54 = vadd.f32 -4.0, %v3429_v47 }
  0x57   :  { %v395_v55 = vmax.f32 %v2535_v56, 0.0  ;;  %v2539_v15 = vadd.f32 -5.0, %v3415_v36  ;;  %v2540_v19 = vadd.f32 -5.0, %v3429_v47  ;;  %v380_v33 = vmin.f32 %v378_v48, 1.0 }
  0x58   :  { %v368_v31 = vadd.f32 %v366_v39, %v350_v50  ;;  %v374_v32 = vadd.f32 %v372_v44, %v356_v24  ;;  %v383_v34 = vmul.f32 %v382_v37, %v379_v53  ;;  %v389_v57 = vmul.f32 %v388_v38, %v379_v53 }
  0x59   :  { %v396_v58 = vmax.f32 %v2536_v54, 0.0  ;;  %v397_v59 = vmin.f32 %v395_v55, 1.0  ;;  %v413_v60 = vmax.f32 %v2539_v15, 0.0  ;;  %v384_v56 = vmul.f32 %v382_v37, %v380_v33 }
  0x5a   :  { %v385_v61 = vadd.f32 %v383_v34, %v367_v43  ;;  %v390_v0 = vmul.f32 %v388_v38, %v380_v33  ;;  %v414_v1 = vmax.f32 %v2540_v19, 0.0  ;;  %v391_v2 = vadd.f32 %v389_v57, %v373_v45 }
  0x5b   :  { %v398_v3 = vmin.f32 %v396_v58, 1.0  ;;  %v401_v4 = vmul.f32 %v400_v41, %v397_v59  ;;  %v407_v5 = vmul.f32 %v406_v42, %v397_v59  ;;  %v386_v37 = vadd.f32 %v384_v56, %v368_v31 }
  0x5c   :  { %v392_v6 = vadd.f32 %v390_v0, %v374_v32  ;;  %v415_v7 = vmin.f32 %v413_v60, 1.0  ;;  %v416_v8 = vmin.f32 %v414_v1, 1.0  ;;  %v2543_v22 = vadd.f32 -6.0, %v3415_v36 }
  0x5d   :  { %v402_v38 = vmul.f32 %v400_v41, %v398_v3  ;;  %v403_v11 = vadd.f32 %v401_v4, %v385_v61  ;;  %v408_v9 = vmul.f32 %v406_v42, %v398_v3  ;;  %v409_v12 = vadd.f32 %v407_v5, %v391_v2 }
  0x5e   :  { %v419_v13 = vmul.f32 %v418_v46, %v415_v7  ;;  %v420_v16 = vmul.f32 %v418_v46, %v416_v8  ;;  %v425_v17 = vmul.f32 %v424_v51, %v415_v7  ;;  %v426_v14 = vmul.f32 %v424_v51, %v416_v8 }
  0x5f   :  { %v404_v20 = vadd.f32 %v402_v38, %v386_v37  ;;  %v410_v21 = vadd.f32 %v408_v9, %v392_v6  ;;  %v2544_v41 = vadd.f32 -6.0, %v3429_v47  ;;  %v442_v42 = vstv %s3456_s12  ;;  %s3616_s12 = sld [smem:[#allocation13 + $0x69]] }
  0x60   :  { %v421_v23 = vadd.f32 %v419_v13, %v403_v11  ;;  %v427_v28 = vadd.f32 %v425_v17, %v409_v12  ;;  %v2547_v29 = vadd.f32 -7.0, %v3415_v36  ;;  %v431_v39 = vmax.f32 %v2543_v22, 0.0 }
  0x61   :  { %v422_v63 = vadd.f32 %v420_v16, %v404_v20  ;;  %v428_v46 = vadd.f32 %v426_v14, %v410_v21  ;;  %v432_v43 = vmax.f32 %v2544_v41, 0.0  ;;  %v2548_v51 = vadd.f32 -7.0, %v3429_v47 }
  0x62   :  { %v449_v44 = vmax.f32 %v2547_v29, 0.0  ;;  %v454_v45 = vstv %s3460_s13  ;;  %v460_v50 = vstv %s3466_s14  ;;  %v433_v24 = vmin.f32 %v431_v39, 1.0  ;;  %s3622_s13 = sld [smem:[#allocation13 + $0x15]] }
  0x63   :  { %v434_v48 = vmin.f32 %v432_v43, 1.0  ;;  %v2551_v53 = vadd.f32 -8.0, %v3415_v36  ;;  %v2552_v54 = vadd.f32 -8.0, %v3429_v47  ;;  %v450_v55 = vmax.f32 %v2548_v51, 0.0  ;;  %s3624_s14 = sld [smem:[#allocation13 + $0x48]] }
  0x64   :  { %v451_v15 = vmin.f32 %v449_v44, 1.0  ;;  %v472_v19 = vstv %s3472_s15  ;;  %v478_v31 = vstv %s3474_s3  ;;  %v437_v32 = vmul.f32 %v436_v52, %v433_v24  ;;  %s3626_s15 = sld [smem:[#allocation13 + $0x6a]] }
  0x65   :  { %v438_v33 = vmul.f32 %v436_v52, %v434_v48  ;;  %v443_v34 = vmul.f32 %v442_v42, %v433_v24  ;;  %v444_v57 = vmul.f32 %v442_v42, %v434_v48  ;;  %v452_v58 = vmin.f32 %v450_v55, 1.0  ;;  %s3628_s3 = sld [smem:[#allocation13 + $0x16]] }
  0x66   :  { %v455_v59 = vmul.f32 %v454_v45, %v451_v15  ;;  %v461_v60 = vmul.f32 %v460_v50, %v451_v15  ;;  %v467_v56 = vmax.f32 %v2551_v53, 0.0  ;;  %v439_v61 = vadd.f32 %v437_v32, %v421_v23 }
  0x67   :  { %v440_v0 = vadd.f32 %v438_v33, %v422_v63  ;;  %v445_v1 = vadd.f32 %v443_v34, %v427_v28  ;;  %v446_v2 = vadd.f32 %v444_v57, %v428_v46  ;;  %v456_v3 = vmul.f32 %v454_v45, %v452_v58 }
  0x68   :  { %v462_v4 = vmul.f32 %v460_v50, %v452_v58  ;;  %v468_v5 = vmax.f32 %v2552_v54, 0.0  ;;  %v469_v37 = vmin.f32 %v467_v56, 1.0  ;;  %v457_v52 = vadd.f32 %v455_v59, %v439_v61 }
  0x69   :  { %v463_v6 = vadd.f32 %v461_v60, %v445_v1  ;;  %v2555_v7 = vadd.f32 -9.0, %v3415_v36  ;;  %v2556_v8 = vadd.f32 -9.0, %v3429_v47  ;;  %v458_v38 = vadd.f32 %v456_v3, %v440_v0 }
  0x6a   :  { %v464_v11 = vadd.f32 %v462_v4, %v446_v2  ;;  %v470_v9 = vmin.f32 %v468_v5, 1.0  ;;  %v473_v12 = vmul.f32 %v472_v19, %v469_v37  ;;  %v479_v13 = vmul.f32 %v478_v31, %v469_v37 }
  0x6b   :  { %v485_v16 = vmax.f32 %v2555_v7, 0.0  ;;  %v486_v17 = vmax.f32 %v2556_v8, 0.0  ;;  %v490_v14 = vstv %s3497_s16  ;;  %v496_v41 = vstv %s3501_s17  ;;  %s3630_s16 = sld [smem:[#allocation13 + $0x49]] }
  0x6c   :  { %v474_v20 = vmul.f32 %v472_v19, %v470_v9  ;;  %v475_v21 = vadd.f32 %v473_v12, %v457_v52  ;;  %v480_v22 = vmul.f32 %v478_v31, %v470_v9  ;;  %v481_v23 = vadd.f32 %v479_v13, %v463_v6  ;;  %s3637_s17 = sld [smem:[#allocation13 + $0x6b]] }
  0x6d   :  { %v487_v28 = vmin.f32 %v485_v16, 1.0  ;;  %v488_v42 = vmin.f32 %v486_v17, 1.0  ;;  %v2559_v29 = vadd.f32 -10.0, %v3415_v36  ;;  %v2560_v39 = vadd.f32 -10.0, %v3429_v47 }
  0x6e   :  { %v476_v63 = vadd.f32 %v474_v20, %v458_v38  ;;  %v482_v46 = vadd.f32 %v480_v22, %v464_v11  ;;  %v508_v43 = vstv %s3507_s18  ;;  %v514_v53 = vstv %s3509_s19  ;;  %s3639_s18 = sld [smem:[#allocation13 + $0x17]] }
  0x6f   :  { %v491_v51 = vmul.f32 %v490_v14, %v487_v28  ;;  %v492_v44 = vmul.f32 %v490_v14, %v488_v42  ;;  %v497_v45 = vmul.f32 %v496_v41, %v487_v28  ;;  %v498_v50 = vmul.f32 %v496_v41, %v488_v42  ;;  %s3645_s19 = sld [smem:[#allocation13 + $0x4a]] }
  0x70   :  { %v503_v24 = vmax.f32 %v2559_v29, 0.0  ;;  %v504_v48 = vmax.f32 %v2560_v39, 0.0  ;;  %v2563_v54 = vadd.f32 -11.0, %v3415_v36  ;;  %v2564_v34 = vadd.f32 -11.0, %v3429_v47 }
  0x71   :  { %v493_v55 = vadd.f32 %v491_v51, %v475_v21  ;;  %v494_v15 = vadd.f32 %v492_v44, %v476_v63  ;;  %v499_v19 = vadd.f32 %v497_v45, %v481_v23  ;;  %v500_v31 = vadd.f32 %v498_v50, %v482_v46 }
  0x72   :  { %v505_v32 = vmin.f32 %v503_v24, 1.0  ;;  %v506_v33 = vmin.f32 %v504_v48, 1.0  ;;  %v521_v57 = vmax.f32 %v2563_v54, 0.0  ;;  %v526_v58 = vstv %s3513_s0  ;;  %s3650_s0 = sld [smem:[#allocation13 + $0x6c]] }
  0x73   :  { %v532_v59 = vstv %s3516_s20  ;;  %v2567_v60 = vadd.f32 -12.0, %v3415_v36  ;;  %v2568_v56 = vadd.f32 -12.0, %v3429_v47  ;;  %v522_v3 = vmax.f32 %v2564_v34, 0.0  ;;  %s3652_s20 = sld [smem:[#allocation13 + $0x18]] }
  0x74   :  { %v509_v61 = vmul.f32 %v508_v43, %v505_v32  ;;  %v510_v0 = vmul.f32 %v508_v43, %v506_v33  ;;  %v515_v1 = vmul.f32 %v514_v53, %v505_v32  ;;  %v516_v2 = vmul.f32 %v514_v53, %v506_v33 }
  0x75   :  { %v523_v4 = vmin.f32 %v521_v57, 1.0  ;;  %v539_v5 = vmax.f32 %v2567_v60, 0.0  ;;  %v540_v37 = vmax.f32 %v2568_v56, 0.0  ;;  %v524_v38 = vmin.f32 %v522_v3, 1.0 }
  0x76   :  { %v511_v52 = vadd.f32 %v509_v61, %v493_v55  ;;  %v512_v6 = vadd.f32 %v510_v0, %v494_v15  ;;  %v517_v7 = vadd.f32 %v515_v1, %v499_v19  ;;  %v518_v8 = vadd.f32 %v516_v2, %v500_v31 }
  0x77   :  { %v527_v11 = vmul.f32 %v526_v58, %v523_v4  ;;  %v533_v9 = vmul.f32 %v532_v59, %v523_v4  ;;  %v541_v12 = vmin.f32 %v539_v5, 1.0  ;;  %v542_v13 = vmin.f32 %v540_v37, 1.0 }
  0x78   :  { %v544_v16 = vstv %s3522_s21  ;;  %v550_v17 = vstv %s3526_s22  ;;  %v2571_v14 = vadd.f32 -13.0, %v3415_v36  ;;  %v528_v20 = vmul.f32 %v526_v58, %v524_v38  ;;  %s3656_s21 = sld [smem:[#allocation13 + $0x4b]] }
  0x79   :  { %v529_v21 = vadd.f32 %v527_v11, %v511_v52  ;;  %v534_v22 = vmul.f32 %v532_v59, %v524_v38  ;;  %v535_v41 = vadd.f32 %v533_v9, %v517_v7  ;;  %v545_v23 = vmul.f32 %v544_v16, %v541_v12  ;;  %s3658_s22 = sld [smem:[#allocation13 + $0x6d]] }
  0x7a   :  { %v546_v28 = vmul.f32 %v544_v16, %v542_v13  ;;  %v551_v42 = vmul.f32 %v550_v17, %v541_v12  ;;  %v552_v29 = vmul.f32 %v550_v17, %v542_v13  ;;  %v530_v63 = vadd.f32 %v528_v20, %v512_v6 }
  0x7b   :  { %v536_v46 = vadd.f32 %v534_v22, %v518_v8  ;;  %v2572_v39 = vadd.f32 -13.0, %v3429_v47  ;;  %v557_v43 = vmax.f32 %v2571_v14, 0.0  ;;  %v210_v51 = vsub.f32 1.0, %v3396_v25 }
  0x7c   :  { %v547_v44 = vadd.f32 %v545_v23, %v529_v21  ;;  %v562_v45 = vstv %s3533_s2  ;;  %v568_v50 = vstv %s3535_s23  ;;  %v548_v24 = vadd.f32 %v546_v28, %v530_v63  ;;  %s3662_s2 = sld [smem:[#allocation13 + $0x19]] }
  0x7d   :  { %v553_v48 = vadd.f32 %v551_v42, %v535_v41  ;;  %v558_v53 = vmax.f32 %v2572_v39, 0.0  ;;  %v559_v54 = vmin.f32 %v557_v43, 1.0  ;;  %v554_v55 = vadd.f32 %v552_v29, %v536_v46  ;;  %s3664_s23 = sld [smem:[#allocation13 + $0x4c]] }
  0x7e   :  { %v2575_v15 = vadd.f32 -14.0, %v3415_v36  ;;  %v2576_v19 = vadd.f32 -14.0, %v3429_v47  ;;  %v580_v31 = vstv %s3537_s4  ;;  %v2579_v34 = vadd.f32 -15.0, %v3415_v36  ;;  %s3666_s4 = sld [smem:[#allocation13 + $0x6e]] }
  0x7f   :  { %v560_v25 = vmin.f32 %v558_v53, 1.0  ;;  %v563_v32 = vmul.f32 %v562_v45, %v559_v54  ;;  %v569_v33 = vmul.f32 %v568_v50, %v559_v54  ;;  %v586_v59 = vstv %s3542_s5  ;;  %s3673_s5 = sld [smem:[#allocation13 + $0x1a]] }
  0x80   :  { %v575_v57 = vmax.f32 %v2575_v15, 0.0  ;;  %v576_v58 = vmax.f32 %v2576_v19, 0.0  ;;  %v2580_v60 = vadd.f32 -15.0, %v3429_v47  ;;  %v598_v1 = vstv %s3544_s24  ;;  %s3675_s24 = sld [smem:[#allocation13 + $0x4d]] }
  0x81   :  { %v564_v56 = vmul.f32 %v562_v45, %v560_v25  ;;  %v565_v61 = vadd.f32 %v563_v32, %v547_v44  ;;  %v570_v0 = vmul.f32 %v568_v50, %v560_v25  ;;  %v593_v4 = vmax.f32 %v2579_v34, 0.0 }
  0x82   :  { %v577_v2 = vmin.f32 %v575_v57, 1.0  ;;  %v578_v3 = vmin.f32 %v576_v58, 1.0  ;;  %v594_v36 = vmax.f32 %v2580_v60, 0.0  ;;  %v571_v37 = vadd.f32 %v569_v33, %v553_v48 }
  0x83   :  { %v566_v5 = vadd.f32 %v564_v56, %v548_v24  ;;  %v572_v52 = vadd.f32 %v570_v0, %v554_v55  ;;  %v3573_v47 = vmul.f32 16.0, %v209_v26  ;;  %v595_v11 = vmin.f32 %v593_v4, 1.0 }
  0x84   :  { %v581_v6 = vmul.f32 %v580_v31, %v577_v2  ;;  %v582_v7 = vmul.f32 %v580_v31, %v578_v3  ;;  %v587_v8 = vmul.f32 %v586_v59, %v577_v2  ;;  %v588_v38 = vmul.f32 %v586_v59, %v578_v3 }
  0x85   :  { %v596_v9 = vmin.f32 %v594_v36, 1.0  ;;  %v604_v12 = vstv %s3550_s25  ;;  %v3578_v13 = vmul.f32 16.0, %v210_v51  ;;  %v3583_v16 = vand.u32 2147483647, %v313_v30  ;;  %s3684_s25 = sld [smem:[#allocation13 + $0x6f]] }
  0x86   :  { %v583_v10 = vadd.f32 %v581_v6, %v565_v61  ;;  %v584_v26 = vadd.f32 %v582_v7, %v566_v5  ;;  %v612_v17 = vstv %s3552_s26  ;;  %v3586_v14 = vadd.f32 %v587_v8, %v571_v37  ;;  %s3686_s26 = sld [smem:[#allocation13 + $0x1b]] }
  0x87   :  { %v3588_v20 = vadd.f32 %v588_v38, %v572_v52  ;;  %v599_v21 = vmul.f32 %v598_v1, %v595_v11  ;;  %v600_v22 = vmul.f32 %v598_v1, %v596_v9  ;;  %v3592_v41 = vmul.f32 %v604_v12, %v595_v11 }
  0x88   :  { %v3594_v62 = vmul.f32 %v604_v12, %v596_v9  ;;  %v617_v27 = vmax.f32 %v3573_v47, 0.0  ;;  %v618_v30 = vmax.f32 %v3578_v13, 0.0  ;;  %v614_v42 = vstv %s3557_s27  ;;  %s3692_s27 = sld [smem:[#allocation13 + $0x4e]] }
  0x89   :  { %v3600_v23 = vadd.f32 %v599_v21, %v583_v10  ;;  %v3602_v28 = vadd.f32 %v600_v22, %v584_v26  ;;  %v616_v29 = vstv %s3560_s28  ;;  %v622_v39 = vstv %s3564_s29  ;;  %s3694_s28 = sld [smem:[#allocation13 + $0x70]] }
  0x8a   :  { %v619_v63 = vmin.f32 %v617_v27, 1.0  ;;  %v620_v46 = vmin.f32 %v618_v30, 1.0  ;;  %v628_v43 = vstv %s3567_s30  ;;  %v634_v51 = vstv %s3569_s7  ;;  %s3700_s29 = sld [smem:[#allocation13 + $0x1c]] }
  0x8b   :  { %v2589_v44 = vadd.f32 -1.0, %v3573_v47  ;;  %v2590_v45 = vadd.f32 -1.0, %v3578_v13  ;;  %v646_v50 = vstv %s3575_s8  ;;  %v652_v56 = vstv %s3590_s9  ;;  %s3702_s30 = sld [smem:[#allocation13 + $0x4f]] }
  0x8c   :  { %v623_v24 = vmul.f32 %v622_v39, %v619_v63  ;;  %v624_v48 = vmul.f32 %v622_v39, %v620_v46  ;;  %v629_v53 = vmul.f32 %v628_v43, %v619_v63  ;;  %v630_v54 = vmul.f32 %v628_v43, %v620_v46  ;;  %s3704_s7 = sld [smem:[#allocation13 + $0x71]] }
  0x8d   :  { %v635_v55 = vmul.f32 %v634_v51, %v619_v63  ;;  %v636_v15 = vmul.f32 %v634_v51, %v620_v46  ;;  %v641_v19 = vmax.f32 %v2589_v44, 0.0  ;;  %v642_v31 = vmax.f32 %v2590_v45, 0.0  ;;  %s3710_s8 = sld [smem:[#allocation13 + $0x1d]] }
  0x8e   :  { %v625_v25 = vadd.f32 %v623_v24, %v612_v17  ;;  %v626_v32 = vadd.f32 %v624_v48, %v612_v17  ;;  %v631_v33 = vadd.f32 %v629_v53, %v614_v42  ;;  %v632_v34 = vadd.f32 %v630_v54, %v614_v42  ;;  %s3712_s9 = sld [smem:[#allocation13 + $0x50]] }
  0x8f   :  { %v637_v57 = vadd.f32 %v635_v55, %v616_v29  ;;  %v638_v58 = vadd.f32 %v636_v15, %v616_v29  ;;  %v643_v59 = vmin.f32 %v641_v19, 1.0  ;;  %v644_v60 = vmin.f32 %v642_v31, 1.0 }
  0x90   :  { %v658_v61 = vstv %s3598_s10  ;;  %v2594_v0 = vadd.f32 -2.0, %v3573_v47  ;;  %v2595_v1 = vadd.f32 -2.0, %v3578_v13  ;;  %v670_v17 = vstv %s3612_s11  ;;  %s3714_s10 = sld [smem:[#allocation13 + $0x72]] }
  0x91   :  { %v647_v2 = vmul.f32 %v646_v50, %v643_v59  ;;  %v648_v3 = vmul.f32 %v646_v50, %v644_v60  ;;  %v653_v4 = vmul.f32 %v652_v56, %v643_v59  ;;  %v654_v36 = vmul.f32 %v652_v56, %v644_v60  ;;  %s3716_s11 = sld [smem:[#allocation13 + $0x1e]] }
  0x92   :  { %v659_v5 = vmul.f32 %v658_v61, %v643_v59  ;;  %v660_v37 = vmul.f32 %v658_v61, %v644_v60  ;;  %v665_v52 = vmax.f32 %v2594_v0, 0.0  ;;  %v666_v6 = vmax.f32 %v2595_v1, 0.0 }
  0x93   :  { %v649_v7 = vadd.f32 %v647_v2, %v625_v25  ;;  %v650_v8 = vadd.f32 %v648_v3, %v626_v32  ;;  %v655_v38 = vadd.f32 %v653_v4, %v631_v33  ;;  %v656_v11 = vadd.f32 %v654_v36, %v632_v34 }
  0x94   :  { %v661_v9 = vadd.f32 %v659_v5, %v637_v57  ;;  %v662_v12 = vadd.f32 %v660_v37, %v638_v58  ;;  %v667_v10 = vmin.f32 %v665_v52, 1.0  ;;  %v668_v26 = vmin.f32 %v666_v6, 1.0 }
  0x95   :  { %v676_v21 = vstv %s3614_s1  ;;  %v682_v22 = vstv %s3616_s12  ;;  %v2599_v27 = vadd.f32 -3.0, %v3573_v47  ;;  %v2600_v43 = vadd.f32 -3.0, %v3578_v13  ;;  %s3718_s1 = sld [smem:[#allocation13 + $0x51]] }
  0x96   :  { %v671_v30 = vmul.f32 %v670_v17, %v667_v10  ;;  %v672_v42 = vmul.f32 %v670_v17, %v668_v26  ;;  %v677_v29 = vmul.f32 %v676_v21, %v667_v10  ;;  %v678_v63 = vmul.f32 %v676_v21, %v668_v26  ;;  %s3725_s12 = sld [smem:[#allocation13 + $0x73]] }
  0x97   :  { %v683_v46 = vmul.f32 %v682_v22, %v667_v10  ;;  %v684_v39 = vmul.f32 %v682_v22, %v668_v26  ;;  %v689_v51 = vmax.f32 %v2599_v27, 0.0  ;;  %v690_v54 = vmax.f32 %v2600_v43, 0.0 }
  0x98   :  { %v673_v44 = vadd.f32 %v671_v30, %v649_v7  ;;  %v674_v45 = vadd.f32 %v672_v42, %v650_v8  ;;  %v679_v50 = vadd.f32 %v677_v29, %v655_v38  ;;  %v680_v24 = vadd.f32 %v678_v63, %v656_v11 }
  0x99   :  { %v685_v48 = vadd.f32 %v683_v46, %v661_v9  ;;  %v686_v53 = vadd.f32 %v684_v39, %v662_v12  ;;  %v691_v55 = vmin.f32 %v689_v51, 1.0  ;;  %v694_v15 = vstv %s3622_s13  ;;  %s3727_s13 = sld [smem:[#allocation13 + $0x1f]] }
  0x9a   :  { %v700_v19 = vstv %s3624_s14  ;;  %v706_v31 = vstv %s3626_s15  ;;  %v2604_v25 = vadd.f32 -4.0, %v3573_v47  ;;  %v692_v32 = vmin.f32 %v690_v54, 1.0  ;;  %s3733_s14 = sld [smem:[#allocation13 + $0x52]] }
  0x9b   :  { %v695_v33 = vmul.f32 %v694_v15, %v691_v55  ;;  %v701_v34 = vmul.f32 %v700_v19, %v691_v55  ;;  %v707_v57 = vmul.f32 %v706_v31, %v691_v55  ;;  %v2605_v58 = vadd.f32 -4.0, %v3578_v13  ;;  %s3738_s15 = sld [smem:[#allocation13 + $0x74]] }
  0x9c   :  { %v713_v59 = vmax.f32 %v2604_v25, 0.0  ;;  %v718_v60 = vstv %s3628_s3  ;;  %v724_v56 = vstv %s3630_s16  ;;  %v696_v61 = vmul.f32 %v694_v15, %v692_v32  ;;  %s3740_s3 = sld [smem:[#allocation13 + $0x20]] }
  0x9d   :  { %v697_v0 = vadd.f32 %v695_v33, %v673_v44  ;;  %v702_v1 = vmul.f32 %v700_v19, %v692_v32  ;;  %v703_v2 = vadd.f32 %v701_v34, %v679_v50  ;;  %v708_v3 = vmul.f32 %v706_v31, %v692_v32  ;;  %s3744_s16 = sld [smem:[#allocation13 + $0x53]] }
  0x9e   :  { %v709_v4 = vadd.f32 %v707_v57, %v685_v48  ;;  %v714_v36 = vmax.f32 %v2605_v58, 0.0  ;;  %v715_v5 = vmin.f32 %v713_v59, 1.0  ;;  %v698_v37 = vadd.f32 %v696_v61, %v674_v45 }
  0x9f   :  { %v704_v52 = vadd.f32 %v702_v1, %v680_v24  ;;  %v730_v6 = vstv %s3637_s17  ;;  %v2609_v7 = vadd.f32 -5.0, %v3573_v47  ;;  %v710_v8 = vadd.f32 %v708_v3, %v686_v53  ;;  %s3746_s17 = sld [smem:[#allocation13 + $0x75]] }
  0xa0   :  { %v716_v38 = vmin.f32 %v714_v36, 1.0  ;;  %v719_v11 = vmul.f32 %v718_v60, %v715_v5  ;;  %v725_v9 = vmul.f32 %v724_v56, %v715_v5  ;;  %v731_v12 = vmul.f32 %v730_v6, %v715_v5 }
  0xa1   :  { %v2610_v10 = vadd.f32 -5.0, %v3578_v13  ;;  %v737_v26 = vmax.f32 %v2609_v7, 0.0  ;;  %v742_v17 = vstv %s3639_s18  ;;  %v748_v51 = vstv %s3645_s19  ;;  %s3750_s18 = sld [smem:[#allocation13 + $0x21]] }
  0xa2   :  { %v720_v21 = vmul.f32 %v718_v60, %v716_v38  ;;  %v721_v22 = vadd.f32 %v719_v11, %v697_v0  ;;  %v726_v27 = vmul.f32 %v724_v56, %v716_v38  ;;  %v727_v30 = vadd.f32 %v725_v9, %v703_v2  ;;  %s3752_s19 = sld [smem:[#allocation13 + $0x54]] }
  0xa3   :  { %v732_v42 = vmul.f32 %v730_v6, %v716_v38  ;;  %v733_v29 = vadd.f32 %v731_v12, %v709_v4  ;;  %v738_v63 = vmax.f32 %v2610_v10, 0.0  ;;  %v739_v46 = vmin.f32 %v737_v26, 1.0 }
  0xa4   :  { %v722_v39 = vadd.f32 %v720_v21, %v698_v37  ;;  %v728_v43 = vadd.f32 %v726_v27, %v704_v52  ;;  %v754_v44 = vstv %s3650_s0  ;;  %v2614_v54 = vadd.f32 -6.0, %v3573_v47  ;;  %s3754_s0 = sld [smem:[#allocation13 + $0x76]] }
  0xa5   :  { %v734_v45 = vadd.f32 %v732_v42, %v710_v8  ;;  %v740_v50 = vmin.f32 %v738_v63, 1.0  ;;  %v743_v24 = vmul.f32 %v742_v17, %v739_v46  ;;  %v749_v48 = vmul.f32 %v748_v51, %v739_v46 }
  0xa6   :  { %v755_v53 = vmul.f32 %v754_v44, %v739_v46  ;;  %v2615_v55 = vadd.f32 -6.0, %v3578_v13  ;;  %v766_v15 = vstv %s3652_s20  ;;  %v761_v57 = vmax.f32 %v2614_v54, 0.0  ;;  %s3794_s20 = sld [smem:[#allocation13 + $0x23]] }
  0xa7   :  { %v744_v19 = vmul.f32 %v742_v17, %v740_v50  ;;  %v745_v31 = vadd.f32 %v743_v24, %v721_v22  ;;  %v750_v25 = vmul.f32 %v748_v51, %v740_v50  ;;  %v751_v32 = vadd.f32 %v749_v48, %v727_v30 }
  0xa8   :  { %v756_v33 = vmul.f32 %v754_v44, %v740_v50  ;;  %v757_v34 = vadd.f32 %v755_v53, %v733_v29  ;;  %v762_v58 = vmax.f32 %v2615_v55, 0.0  ;;  %v772_v56 = vstv %s3656_s21  ;;  %s3796_s21 = sld [smem:[#allocation13 + $0x22]] }
  0xa9   :  { %v746_v59 = vadd.f32 %v744_v19, %v722_v39  ;;  %v752_v60 = vadd.f32 %v750_v25, %v728_v43  ;;  %v778_v61 = vstv %s3658_s22  ;;  %v763_v1 = vmin.f32 %v761_v57, 1.0  ;;  %s3801_s22 = sld [smem:[#allocation13 + $0x24]] }
  0xaa   :  { %v758_v0 = vadd.f32 %v756_v33, %v734_v45  ;;  %v764_v2 = vmin.f32 %v762_v58, 1.0  ;;  %v2619_v3 = vadd.f32 -7.0, %v3573_v47  ;;  %v2620_v4 = vadd.f32 -7.0, %v3578_v13 }
  0xab   :  { %v790_v36 = vstv %s3662_s2  ;;  %v796_v5 = vstv %s3664_s23  ;;  %v802_v37 = vstv %s3666_s4  ;;  %v767_v52 = vmul.f32 %v766_v15, %v763_v1  ;;  %s3806_s2 = sld [smem:[#allocation13 + $0x25]] }
  0xac   :  { %v768_v6 = vmul.f32 %v766_v15, %v764_v2  ;;  %v773_v7 = vmul.f32 %v772_v56, %v763_v1  ;;  %v774_v8 = vmul.f32 %v772_v56, %v764_v2  ;;  %v779_v38 = vmul.f32 %v778_v61, %v763_v1  ;;  %s3947_s23 = sld [smem:[#allocation13 + $0x26]] }
  0xad   :  { %v780_v11 = vmul.f32 %v778_v61, %v764_v2  ;;  %v785_v9 = vmax.f32 %v2619_v3, 0.0  ;;  %v786_v12 = vmax.f32 %v2620_v4, 0.0  ;;  %v769_v10 = vadd.f32 %v767_v52, %v745_v31  ;;  %s3961_s4 = sld [smem:[#allocation13 + $0x27]] }
  0xae   :  { %v770_v26 = vadd.f32 %v768_v6, %v746_v59  ;;  %v775_v17 = vadd.f32 %v773_v7, %v751_v32  ;;  %v776_v21 = vadd.f32 %v774_v8, %v752_v60  ;;  %v781_v22 = vadd.f32 %v779_v38, %v757_v34 }
  0xaf   :  { %v782_v27 = vadd.f32 %v780_v11, %v758_v0  ;;  %v787_v30 = vmin.f32 %v785_v9, 1.0  ;;  %v788_v42 = vmin.f32 %v786_v12, 1.0  ;;  %v2624_v29 = vadd.f32 -8.0, %v3573_v47 }
  0xb0   :  { %v2625_v63 = vadd.f32 -8.0, %v3578_v13  ;;  %v814_v46 = vstv %s3673_s5  ;;  %v820_v39 = vstv %s3675_s24  ;;  %v826_v34 = vstv %s3684_s25  ;;  %s3975_s5 = sld [smem:[#allocation13 + $0x28]] }
  0xb1   :  { %v791_v43 = vmul.f32 %v790_v36, %v787_v30  ;;  %v792_v51 = vmul.f32 %v790_v36, %v788_v42  ;;  %v797_v44 = vmul.f32 %v796_v5, %v787_v30  ;;  %v798_v45 = vmul.f32 %v796_v5, %v788_v42  ;;  %s3995_s24 = sld [smem:[#allocation13 + $0x29]] }
  0xb2   :  { %v803_v50 = vmul.f32 %v802_v37, %v787_v30  ;;  %v804_v24 = vmul.f32 %v802_v37, %v788_v42  ;;  %v809_v48 = vmax.f32 %v2624_v29, 0.0  ;;  %v810_v53 = vmax.f32 %v2625_v63, 0.0  ;;  %s4008_s25 = sld [smem:[#allocation13 + $0x2a]] }
  0xb3   :  { %v793_v54 = vadd.f32 %v791_v43, %v769_v10  ;;  %v794_v55 = vadd.f32 %v792_v51, %v770_v26  ;;  %v799_v15 = vadd.f32 %v797_v44, %v775_v17  ;;  %v800_v19 = vadd.f32 %v798_v45, %v776_v21 }
  0xb4   :  { %v805_v31 = vadd.f32 %v803_v50, %v781_v22  ;;  %v806_v25 = vadd.f32 %v804_v24, %v782_v27  ;;  %v811_v32 = vmin.f32 %v809_v48, 1.0  ;;  %v812_v33 = vmin.f32 %v810_v53, 1.0 }
  0xb5   :  { %v2629_v57 = vadd.f32 -9.0, %v3573_v47  ;;  %v2630_v58 = vadd.f32 -9.0, %v3578_v13  ;;  %v838_v59 = vstv %s3686_s26  ;;  %v844_v11 = vstv %s3692_s27  ;;  %s4022_s26 = sld [smem:[#allocation13 + $0x2b]] }
  0xb6   :  { %v815_v60 = vmul.f32 %v814_v46, %v811_v32  ;;  %v816_v56 = vmul.f32 %v814_v46, %v812_v33  ;;  %v821_v61 = vmul.f32 %v820_v39, %v811_v32  ;;  %v822_v0 = vmul.f32 %v820_v39, %v812_v33  ;;  %s4036_s27 = sld [smem:[#allocation13 + $0x2c]] }
  0xb7   :  { %v827_v1 = vmul.f32 %v826_v34, %v811_v32  ;;  %v828_v2 = vmul.f32 %v826_v34, %v812_v33  ;;  %v833_v3 = vmax.f32 %v2629_v57, 0.0  ;;  %v834_v4 = vmax.f32 %v2630_v58, 0.0 }
  0xb8   :  { %v817_v36 = vadd.f32 %v815_v60, %v793_v54  ;;  %v818_v5 = vadd.f32 %v816_v56, %v794_v55  ;;  %v823_v37 = vadd.f32 %v821_v61, %v799_v15  ;;  %v824_v52 = vadd.f32 %v822_v0, %v800_v19 }
  0xb9   :  { %v829_v6 = vadd.f32 %v827_v1, %v805_v31  ;;  %v830_v7 = vadd.f32 %v828_v2, %v806_v25  ;;  %v835_v8 = vmin.f32 %v833_v3, 1.0  ;;  %v836_v38 = vmin.f32 %v834_v4, 1.0 }
  0xba   :  { %v850_v9 = vstv %s3694_s28  ;;  %v2634_v12 = vadd.f32 -10.0, %v3573_v47  ;;  %v2635_v10 = vadd.f32 -10.0, %v3578_v13  ;;  %v862_v24 = vstv %s3700_s29  ;;  %s4056_s28 = sld [smem:[#allocation13 + $0x2d]] }
  0xbb   :  { %v839_v26 = vmul.f32 %v838_v59, %v835_v8  ;;  %v840_v17 = vmul.f32 %v838_v59, %v836_v38  ;;  %v845_v21 = vmul.f32 %v844_v11, %v835_v8  ;;  %v846_v22 = vmul.f32 %v844_v11, %v836_v38  ;;  %s4069_s29 = sld [smem:[#allocation13 + $0x2e]] }
  0xbc   :  { %v851_v27 = vmul.f32 %v850_v9, %v835_v8  ;;  %v852_v30 = vmul.f32 %v850_v9, %v836_v38  ;;  %v857_v42 = vmax.f32 %v2634_v12, 0.0  ;;  %v858_v29 = vmax.f32 %v2635_v10, 0.0 }
  0xbd   :  { %v841_v63 = vadd.f32 %v839_v26, %v817_v36  ;;  %v842_v46 = vadd.f32 %v840_v17, %v818_v5  ;;  %v847_v39 = vadd.f32 %v845_v21, %v823_v37  ;;  %v848_v43 = vadd.f32 %v846_v22, %v824_v52 }
  0xbe   :  { %v853_v51 = vadd.f32 %v851_v27, %v829_v6  ;;  %v854_v44 = vadd.f32 %v852_v30, %v830_v7  ;;  %v859_v45 = vmin.f32 %v857_v42, 1.0  ;;  %v860_v50 = vmin.f32 %v858_v29, 1.0 }
  0xbf   :  { %v868_v48 = vstv %s3702_s30  ;;  %v874_v53 = vstv %s3704_s7  ;;  %v2639_v54 = vadd.f32 -11.0, %v3573_v47  ;;  %v2640_v33 = vadd.f32 -11.0, %v3578_v13  ;;  %s4083_s30 = sld [smem:[#allocation13 + $0x2f]] }
  0xc0   :  { %v863_v55 = vmul.f32 %v862_v24, %v859_v45  ;;  %v864_v15 = vmul.f32 %v862_v24, %v860_v50  ;;  %v869_v19 = vmul.f32 %v868_v48, %v859_v45  ;;  %v870_v31 = vmul.f32 %v868_v48, %v860_v50  ;;  %s4097_s7 = sld [smem:[#allocation13 + $0x30]] }
  0xc1   :  { %v875_v25 = vmul.f32 %v874_v53, %v859_v45  ;;  %v876_v32 = vmul.f32 %v874_v53, %v860_v50  ;;  %v881_v34 = vmax.f32 %v2639_v54, 0.0  ;;  %v882_v0 = vmax.f32 %v2640_v33, 0.0 }
  0xc2   :  { %v865_v57 = vadd.f32 %v863_v55, %v841_v63  ;;  %v866_v58 = vadd.f32 %v864_v15, %v842_v46  ;;  %v871_v59 = vadd.f32 %v869_v19, %v847_v39  ;;  %v872_v60 = vadd.f32 %v870_v31, %v848_v43 }
  0xc3   :  { %v877_v56 = vadd.f32 %v875_v25, %v853_v51  ;;  %v878_v61 = vadd.f32 %v876_v32, %v854_v44  ;;  %v883_v1 = vmin.f32 %v881_v34, 1.0  ;;  %v886_v2 = vstv %s3710_s8  ;;  %s4117_s8 = sld [smem:[#allocation13 + $0x31]] }
  0xc4   :  { %v892_v3 = vstv %s3712_s9  ;;  %v898_v4 = vstv %s3714_s10  ;;  %v2644_v36 = vadd.f32 -12.0, %v3573_v47  ;;  %v884_v5 = vmin.f32 %v882_v0, 1.0  ;;  %s4130_s9 = sld [smem:[#allocation13 + $0x32]] }
  0xc5   :  { %v887_v37 = vmul.f32 %v886_v2, %v883_v1  ;;  %v893_v52 = vmul.f32 %v892_v3, %v883_v1  ;;  %v899_v6 = vmul.f32 %v898_v4, %v883_v1  ;;  %v2645_v7 = vadd.f32 -12.0, %v3578_v13  ;;  %s4143_s10 = sld [smem:[#allocation13 + $0x1]] }
  0xc6   :  { %v905_v8 = vmax.f32 %v2644_v36, 0.0  ;;  %v910_v38 = vstv %s3716_s11  ;;  %v916_v11 = vstv %s3718_s1  ;;  %v888_v9 = vmul.f32 %v886_v2, %v884_v5  ;;  %s4147_s11 = sld [smem:[#allocation13]] }
  0xc7   :  { %v889_v12 = vadd.f32 %v887_v37, %v865_v57  ;;  %v894_v10 = vmul.f32 %v892_v3, %v884_v5  ;;  %v895_v26 = vadd.f32 %v893_v52, %v871_v59  ;;  %v900_v17 = vmul.f32 %v898_v4, %v884_v5  ;;  %s4149_s1 = sld [smem:[#allocation13 + $0x2]] }
  0xc8   :  { %v901_v21 = vadd.f32 %v899_v6, %v877_v56  ;;  %v906_v22 = vmax.f32 %v2645_v7, 0.0  ;;  %v907_v27 = vmin.f32 %v905_v8, 1.0  ;;  %v890_v30 = vadd.f32 %v888_v9, %v866_v58 }
  0xc9   :  { %v896_v42 = vadd.f32 %v894_v10, %v872_v60  ;;  %v922_v29 = vstv %s3725_s12  ;;  %v2649_v63 = vadd.f32 -13.0, %v3573_v47  ;;  %v902_v46 = vadd.f32 %v900_v17, %v878_v61  ;;  %s4154_s12 = sld [smem:[#allocation13 + $0x3]] }
  0xca   :  { %v908_v39 = vmin.f32 %v906_v22, 1.0  ;;  %v911_v43 = vmul.f32 %v910_v38, %v907_v27  ;;  %v917_v51 = vmul.f32 %v916_v11, %v907_v27  ;;  %v923_v44 = vmul.f32 %v922_v29, %v907_v27 }
  0xcb   :  { %v2650_v45 = vadd.f32 -13.0, %v3578_v13  ;;  %v929_v50 = vmax.f32 %v2649_v63, 0.0  ;;  %v934_v24 = vstv %s3727_s13  ;;  %v940_v34 = vstv %s3733_s14  ;;  %s4166_s13 = sld [smem:[#allocation13 + $0x4]] }
  0xcc   :  { %v912_v48 = vmul.f32 %v910_v38, %v908_v39  ;;  %v913_v53 = vadd.f32 %v911_v43, %v889_v12  ;;  %v918_v54 = vmul.f32 %v916_v11, %v908_v39  ;;  %v919_v55 = vadd.f32 %v917_v51, %v895_v26  ;;  %s4169_s14 = sld [smem:[#allocation13 + $0x5]] }
  0xcd   :  { %v924_v15 = vmul.f32 %v922_v29, %v908_v39  ;;  %v925_v19 = vadd.f32 %v923_v44, %v901_v21  ;;  %v930_v31 = vmax.f32 %v2650_v45, 0.0  ;;  %v931_v25 = vmin.f32 %v929_v50, 1.0 }
  0xce   :  { %v914_v32 = vadd.f32 %v912_v48, %v890_v30  ;;  %v920_v33 = vadd.f32 %v918_v54, %v896_v42  ;;  %v946_v57 = vstv %s3738_s15  ;;  %v2654_v0 = vadd.f32 -14.0, %v3573_v47  ;;  %s4172_s15 = sld [smem:[#allocation13 + $0x6]] }
  0xcf   :  { %v926_v58 = vadd.f32 %v924_v15, %v902_v46  ;;  %v932_v59 = vmin.f32 %v930_v31, 1.0  ;;  %v935_v60 = vmul.f32 %v934_v24, %v931_v25  ;;  %v941_v56 = vmul.f32 %v940_v34, %v931_v25 }
  0xd0   :  { %v947_v61 = vmul.f32 %v946_v57, %v931_v25  ;;  %v2655_v1 = vadd.f32 -14.0, %v3578_v13  ;;  %v958_v2 = vstv %s3740_s3  ;;  %v953_v6 = vmax.f32 %v2654_v0, 0.0  ;;  %v3783_v0 = vpop.eup %2981  ;;  %s4180_s3 = sld [smem:[#allocation13 + $0x7]] }
  0xd1   :  { %v936_v3 = vmul.f32 %v934_v24, %v932_v59  ;;  %v937_v4 = vadd.f32 %v935_v60, %v913_v53  ;;  %v942_v36 = vmul.f32 %v940_v34, %v932_v59  ;;  %v943_v5 = vadd.f32 %v941_v56, %v919_v55 }
  0xd2   :  { %v948_v37 = vmul.f32 %v946_v57, %v932_v59  ;;  %v949_v52 = vadd.f32 %v947_v61, %v925_v19  ;;  %v954_v7 = vmax.f32 %v2655_v1, 0.0  ;;  %v964_v11 = vstv %s3744_s16  ;;  %s4188_s16 = sld [smem:[#allocation13 + $0x8]] }
  0xd3   :  { %v938_v8 = vadd.f32 %v936_v3, %v914_v32  ;;  %v944_v38 = vadd.f32 %v942_v36, %v920_v33  ;;  %v970_v9 = vstv %s3746_s17  ;;  %v955_v10 = vmin.f32 %v953_v6, 1.0  ;;  %s4202_s17 = sld [smem:[#allocation13 + $0x9]] }
  0xd4   :  { %v950_v12 = vadd.f32 %v948_v37, %v926_v58  ;;  %v956_v26 = vmin.f32 %v954_v7, 1.0  ;;  %v2659_v17 = vadd.f32 -15.0, %v3573_v47  ;;  %v2660_v21 = vadd.f32 -15.0, %v3578_v13 }
  0xd5   :  { %v982_v22 = vstv %s3750_s18  ;;  %v988_v27 = vstv %s3752_s19  ;;  %v994_v30 = vstv %s3754_s0  ;;  %v959_v42 = vmul.f32 %v958_v2, %v955_v10  ;;  %s4221_s18 = sld [smem:[#allocation13 + $0xa]] }
  0xd6   :  { %v960_v29 = vmul.f32 %v958_v2, %v956_v26  ;;  %v965_v63 = vmul.f32 %v964_v11, %v955_v10  ;;  %v966_v46 = vmul.f32 %v964_v11, %v956_v26  ;;  %v971_v39 = vmul.f32 %v970_v9, %v955_v10  ;;  %s4237_s19 = sld [smem:[#allocation13 + $0xb]] }
  0xd7   :  { %v972_v43 = vmul.f32 %v970_v9, %v956_v26  ;;  %v977_v51 = vmax.f32 %v2659_v17, 0.0  ;;  %v978_v44 = vmax.f32 %v2660_v21, 0.0  ;;  %v961_v45 = vadd.f32 %v959_v42, %v937_v4  ;;  %s4246_s0 = sld [smem:[#allocation13 + $0xc]] }
  0xd8   :  { %v962_v50 = vadd.f32 %v960_v29, %v938_v8  ;;  %v967_v24 = vadd.f32 %v965_v63, %v943_v5  ;;  %v968_v48 = vadd.f32 %v966_v46, %v944_v38  ;;  %v973_v53 = vadd.f32 %v971_v39, %v949_v52 }
  0xd9   :  { %v974_v54 = vadd.f32 %v972_v43, %v950_v12  ;;  %v979_v47 = vmin.f32 %v977_v51, 1.0  ;;  %v980_v55 = vmin.f32 %v978_v44, 1.0  ;;  %v316_v13 = vand.u32 2147483647, %v314_v40 }
  0xda   :  { %v607_v15 = vadd.f32 %v3592_v41, %v3586_v14  ;;  %v608_v19 = vadd.f32 %v3594_v62, %v3588_v20  ;;  %v1017_v58 = vsub.f32 1.0, %v3583_v16  ;;  %v305_v37 = vand.u32 2147483647, %v3299_v49 }
  0xdb   :  { %v983_v31 = vmul.f32 %v982_v22, %v979_v47  ;;  %v984_v25 = vmul.f32 %v982_v22, %v980_v55  ;;  %v989_v32 = vmul.f32 %v988_v27, %v979_v47  ;;  %v990_v33 = vmul.f32 %v988_v27, %v980_v55 }
  0xdc   :  { %v995_v34 = vmul.f32 %v994_v30, %v979_v47  ;;  %v996_v57 = vmul.f32 %v994_v30, %v980_v55  ;;  %v1018_v40 = vsub.f32 1.0, %v316_v13  ;;  %v3785_v16 = vmul.f32 16.0, %v1017_v58 }
  0xdd   :  { %v985_v59 = vadd.f32 %v983_v31, %v961_v45  ;;  %v986_v60 = vadd.f32 %v984_v25, %v962_v50  ;;  %v991_v56 = vadd.f32 %v989_v32, %v967_v24  ;;  %v992_v61 = vadd.f32 %v990_v33, %v968_v48 }
  0xde   :  { %v997_v18 = vadd.f32 %v995_v34, %v973_v53  ;;  %v998_v35 = vadd.f32 %v996_v57, %v974_v54  ;;  %v3787_v36 = vmul.f32 16.0, %v1018_v40  ;;  %v1117_v52 = vmax.f32 %v3785_v16, 0.0 }
  0xdf   :  { %v3778_v14 = vmul.f32 %v985_v59, %v3600_v23  ;;  %v3781_v20 = vmul.f32 %v986_v60, %v3602_v28  ;;  %v1013_v41 = vmul.f32 %v991_v56, %v607_v15  ;;  %v1014_v62 = vmul.f32 %v992_v61, %v608_v19 }
  0xe0   :  { %v2664_v1 = vadd.f32 -0.5, %v997_v18  ;;  %v2665_v2 = vadd.f32 -0.5, %v998_v35  ;;  %v297_v23 = vmul.f32 %v3783_v0, %v3299_v49  ;;  %v307_v28 = vand.u32 2147483648, %v3299_v49 }
  0xe1   :  { %1015 = vst [vmem:[#allocation2] sm:$0xff] %v1013_v41  ;;  %v1118_v6 = vmax.f32 %v3787_v36, 0.0  ;;  %v2669_v38 = vadd.f32 -1.0, %v3785_v16  ;;  %v2670_v26 = vadd.f32 -1.0, %v3787_v36  ;;  %v1127_v21 = vmin.f32 %v1117_v52, 1.0 }
  0xe2   :  { %v1001_v3 = vand.u32 2147483647, %v2664_v1  ;;  %v1002_v4 = vand.u32 2147483647, %v2665_v2  ;;  %1016 = vst [vmem:[#allocation2 + $0x8] sm:$0xff] %v1014_v62  ;;  %v298_v7 = vsub.f32 1.0, %v297_v23  ;;  %vm302_vm10 = vweird.f32 %v3783_v0 }
  0xe3   :  { %v3803_v8 = vor.u32 1.1754944e-38, %v307_v28  ;;  %v1128_v22 = vmin.f32 %v1118_v6, 1.0  ;;  %v1169_v43 = vmax.f32 %v2669_v38, 0.0  ;;  %v1170_v54 = vmax.f32 %v2670_v26, 0.0  ;;  %vm3824_vm11 = vmor %vm301_vm9, %vm302_vm10 }
  0xe4   :  { %v3792_v5 = vadd.f32 %v1002_v4, %v1001_v3  ;;  %v299_v51 = vmul.f32 %v3783_v0, %v298_v7  ;;  %v3818_v25 = vstv %s3794_s20  ;;  %vm3828_vm12 = vcmp.eq.f32.partialorder %v305_v37, 8.507059e+37  ;;  %s4261_s20 = sld [smem:[#allocation13 + $0xd]] }
  0xe5   :  { %v1179_v57 = vmin.f32 %v1169_v43, 1.0  ;;  %v1180_v18 = vmin.f32 %v1170_v54, 1.0  ;;  %v3834_v62 = vstv %s3796_s21  ;;  %v1138_v1 = vmul.f32 %v3818_v25, %v1127_v21  ;;  %s4290_s21 = sld [smem:[#allocation13 + $0xe]] }
  0xe6   :  { %v3821_v32 = vadd.f32 %v3783_v0, %v299_v51  ;;  %v3838_v2 = vstv %s3801_s22  ;;  %v1139_v26 = vmul.f32 %v3818_v25, %v1128_v22  ;;  %vm2042_vm9 = vcmask 1041408   ;;  %s4305_s22 = sld [smem:[#allocation13 + $0xf]] }
  0xe8   :  { %v1019_v11 = vld [vmem:[#allocation2] sm:$0xf]  ;;  %v1041_v29 = vld [vmem:[#allocation2 + $0x4] sm:$0xf]  ;;  %v304_v37 = vsel %vm3824_vm11, %v3783_v0, %v3821_v32 }
  0xe9   :  { %v2943_v9 = vld [vmem:[#allocation2] ss:$0 sm:$0xff]  ;;  %v1021_v12 = vrot.slane %v1019_v11, 4  ;;  %v2944_v10 = vld [vmem:[#allocation2 + $0x1] ss:$0 sm:$0xff]  ;;  %v1043_v46 = vrot.slane %v1041_v29, 4 }
  0xea   :  { %v2945_v17 = vld [vmem:[#allocation2 + $0x2] ss:$0 sm:$0xff]  ;;  %v2946_v30 = vld [vmem:[#allocation2 + $0x3] ss:$0 sm:$0xff]  ;;  %v1033_v42 = vsel %vm4490_vm8, %v2943_v9, %v2944_v10  ;;  %v2947_v39 = vld [vmem:[#allocation2 + $0x4] ss:$0 sm:$0xff] }
  0xeb   :  { %v1024_v27 = vsel %vm4490_vm8, %v1019_v11, %v1021_v12  ;;  %v1034_v44 = vsel %vm4490_vm8, %v2945_v17, %v2946_v30  ;;  %v2948_v45 = vld [vmem:[#allocation2 + $0x5] ss:$0 sm:$0xff]  ;;  %v1045_v48 = vsel %vm4490_vm8, %v1041_v29, %v1043_v46  ;;  %v2949_v53 = vld [vmem:[#allocation2 + $0x6] ss:$0 sm:$0xff]  ;;  %v2950_v47 = vld [vmem:[#allocation2 + $0x7] ss:$0 sm:$0xff]  ;;  %v1148_v30 = vadd.f32 %v1138_v1, %v3834_v62 }
  0xec   :  { %v1035_v63 = vsub.f32 %v1033_v42, %v1024_v27  ;;  %v1036_v50 = vsub.f32 %v1034_v44, %v1024_v27  ;;  %v1054_v55 = vsel %vm4490_vm8, %v2947_v39, %v2948_v45  ;;  %v1062_v13 = vld [vmem:[#allocation2 + $0x8] sm:$0xf]  ;;  %v1055_v33 = vsel %vm4490_vm8, %v2949_v53, %v2950_v47  ;;  %v1083_v7 = vld [vmem:[#allocation2 + $0xc] sm:$0xf] }
  0xed   :  { %v1056_v31 = vsub.f32 %v1054_v55, %v1045_v48  ;;  %v1064_v34 = vrot.slane %v1062_v13, 4  ;;  %v2951_v49 = vld [vmem:[#allocation2 + $0x8] ss:$0 sm:$0xff]  ;;  %v1057_v60 = vsub.f32 %v1055_v33, %v1045_v48  ;;  %v2952_v61 = vld [vmem:[#allocation2 + $0x9] ss:$0 sm:$0xff]  ;;  %v1085_v12 = vrot.slane %v1083_v7, 4 }
  0xee   :  { %v1037_v24 = vand.u32 2147483647, %v1035_v63  ;;  %v1038_v15 = vand.u32 2147483647, %v1036_v50  ;;  %v2953_v41 = vld [vmem:[#allocation2 + $0xa] ss:$0 sm:$0xff]  ;;  %v1075_v28 = vsel %vm4490_vm8, %v2951_v49, %v2952_v61  ;;  %v1190_v42 = vmul.f32 %v3838_v2, %v1179_v57 }
  0xef   :  { %v1058_v56 = vand.u32 2147483647, %v1056_v31  ;;  %v1066_v40 = vsel %vm4490_vm8, %v1062_v13, %v1064_v34  ;;  %v1059_v3 = vand.u32 2147483647, %v1057_v60  ;;  %v2954_v23 = vld [vmem:[#allocation2 + $0xb] ss:$0 sm:$0xff]  ;;  %v1087_v29 = vsel %vm4490_vm8, %v1083_v7, %v1085_v12 }
  0xf0   :  { %v1039_v19 = vsub.f32 1.0, %v1037_v24  ;;  %v1040_v59 = vsub.f32 1.0, %v1038_v15  ;;  %v1077_v6 = vsub.f32 %v1075_v28, %v1066_v40  ;;  %v2955_v38 = vld [vmem:[#allocation2 + $0xc] ss:$0 sm:$0xff]  ;;  %v1076_v9 = vsel %vm4490_vm8, %v2953_v41, %v2954_v23  ;;  %v2956_v10 = vld [vmem:[#allocation2 + $0xd] ss:$0 sm:$0xff] }
  0xf1   :  { %v1060_v4 = vsub.f32 1.0, %v1058_v56  ;;  %v1061_v11 = vsub.f32 1.0, %v1059_v3  ;;  %v1078_v17 = vsub.f32 %v1076_v9, %v1066_v40  ;;  %v2957_v27 = vld [vmem:[#allocation2 + $0xe] ss:$0 sm:$0xff]  ;;  %v2958_v0 = vld [vmem:[#allocation2 + $0xf] ss:$0 sm:$0xff]  ;;  %v1096_v63 = vsel %vm4490_vm8, %v2955_v38, %v2956_v10 }
  0xf2   :  { %v3841_v52 = vmul.f32 16.0, %v1039_v19  ;;  %v1079_v21 = vand.u32 2147483647, %v1077_v6  ;;  %v3853_v46 = vmul.f32 16.0, %v1040_v59  ;;  %v1098_v44 = vsub.f32 %v1096_v63, %v1087_v29 }
  0xf3   :  { %v3855_v39 = vmul.f32 16.0, %v1060_v4  ;;  %v1080_v43 = vand.u32 2147483647, %v1078_v17  ;;  %v3857_v22 = vmul.f32 16.0, %v1061_v11  ;;  %v1097_v45 = vsel %vm4490_vm8, %v2957_v27, %v2958_v0 }
  0xf4   :  { %v1081_v51 = vsub.f32 1.0, %v1079_v21  ;;  %v1119_v50 = vmax.f32 %v3841_v52, 0.0  ;;  %v1120_v24 = vmax.f32 %v3853_v46, 0.0  ;;  %v1099_v54 = vsub.f32 %v1097_v45, %v1087_v29 }
  0xf5   :  { %v1121_v48 = vmax.f32 %v3855_v39, 0.0  ;;  %v1082_v53 = vsub.f32 1.0, %v1080_v43  ;;  %v1100_v47 = vand.u32 2147483647, %v1098_v44  ;;  %v1122_v13 = vmax.f32 %v3857_v22, 0.0 }
  0xf6   :  { %v3863_v55 = vmul.f32 16.0, %v1081_v51  ;;  %v1129_v15 = vmin.f32 %v1119_v50, 1.0  ;;  %v1149_v19 = vadd.f32 %v1139_v26, %v3834_v62  ;;  %v1191_v31 = vmul.f32 %v3838_v2, %v1180_v18 }
  0xf7   :  { %v1101_v32 = vand.u32 2147483647, %v1099_v54  ;;  %v1102_v33 = vsub.f32 1.0, %v1100_v47  ;;  %v3868_v34 = vmul.f32 16.0, %v1082_v53  ;;  %v3874_v57 = vsel %vm3828_vm12, %v3803_v8, %v304_v37 }
  0xf8   :  { %v1123_v49 = vmax.f32 %v3863_v55, 0.0  ;;  %v1130_v58 = vmin.f32 %v1120_v24, 1.0  ;;  %v3876_v59 = vadd.f32 %v1190_v42, %v1148_v30  ;;  %v1131_v18 = vmin.f32 %v1121_v48, 1.0 }
  0xf9   :  { %v1103_v60 = vsub.f32 1.0, %v1101_v32  ;;  %v3878_v56 = vmul.f32 16.0, %v1102_v33  ;;  %v1124_v61 = vmax.f32 %v3868_v34, 0.0  ;;  %v1132_v40 = vmin.f32 %v1122_v13, 1.0 }
  0xfa   :  { %v3881_v41 = vadd.f32 %v1191_v31, %v1149_v19  ;;  %v3884_v1 = vadd.f32 -2.0, %v3785_v16  ;;  %v3887_v3 = vstv %s3806_s2  ;;  %v1133_v4 = vmin.f32 %v1123_v49, 1.0  ;;  %s4312_s2 = sld [smem:[#allocation13 + $0x10]] }
  0xfb   :  { %v3889_v35 = vmul.f32 16.0, %v1103_v60  ;;  %v1125_v8 = vmax.f32 %v3878_v56, 0.0  ;;  %v1140_v23 = vmul.f32 %v3818_v25, %v1129_v15  ;;  %v1141_v28 = vmul.f32 %v3818_v25, %v1130_v58 }
  0xfc   :  { %v2671_v37 = vadd.f32 -1.0, %v3841_v52  ;;  %v2672_v6 = vadd.f32 -1.0, %v3853_v46  ;;  %v2673_v7 = vadd.f32 -1.0, %v3855_v39  ;;  %v1134_v11 = vmin.f32 %v1124_v61, 1.0 }
  0xfd   :  { %v1126_v38 = vmax.f32 %v3889_v35, 0.0  ;;  %v1135_v9 = vmin.f32 %v1125_v8, 1.0  ;;  %v1142_v12 = vmul.f32 %v3818_v25, %v1131_v18  ;;  %v2674_v10 = vadd.f32 -1.0, %v3857_v22 }
  0xfe   :  { %v2675_v26 = vadd.f32 -1.0, %v3863_v55  ;;  %v2676_v17 = vadd.f32 -1.0, %v3868_v34  ;;  %v2677_v21 = vadd.f32 -1.0, %v3878_v56  ;;  %v1143_v30 = vmul.f32 %v3818_v25, %v1132_v40 }
  0xff   :  { %v1136_v27 = vmin.f32 %v1126_v38, 1.0  ;;  %v1144_v42 = vmul.f32 %v3818_v25, %v1133_v4  ;;  %v2678_v29 = vadd.f32 -1.0, %v3889_v35  ;;  %v1171_v0 = vmax.f32 %v2671_v37, 0.0 }
 0x100   :  { %v1172_v63 = vmax.f32 %v2672_v6, 0.0  ;;  %v1173_v43 = vmax.f32 %v2673_v7, 0.0  ;;  %v1174_v51 = vmax.f32 %v2674_v10, 0.0  ;;  %v1145_v44 = vmul.f32 %v3818_v25, %v1134_v11 }
 0x101   :  { %v1146_v45 = vmul.f32 %v3818_v25, %v1135_v9  ;;  %v1175_v50 = vmax.f32 %v2675_v26, 0.0  ;;  %v1176_v24 = vmax.f32 %v2676_v17, 0.0  ;;  %v1147_v48 = vmul.f32 %v3818_v25, %v1136_v27 }
 0x102   :  { %v1177_v53 = vmax.f32 %v2677_v21, 0.0  ;;  %v1178_v54 = vmax.f32 %v2678_v29, 0.0  ;;  %v1181_v47 = vmin.f32 %v1171_v0, 1.0  ;;  %v1182_v13 = vmin.f32 %v1172_v63, 1.0 }
 0x103   :  { %v1183_v15 = vmin.f32 %v1173_v43, 1.0  ;;  %v1184_v19 = vmin.f32 %v1174_v51, 1.0  ;;  %v1185_v31 = vmin.f32 %v1175_v50, 1.0  ;;  %v1150_v32 = vadd.f32 %v1140_v23, %v3834_v62 }
 0x104   :  { %v1186_v33 = vmin.f32 %v1176_v24, 1.0  ;;  %v1187_v49 = vmin.f32 %v1177_v53, 1.0  ;;  %v1188_v58 = vmin.f32 %v1178_v54, 1.0  ;;  %v1151_v60 = vadd.f32 %v1141_v28, %v3834_v62 }
 0x105   :  { %v1152_v61 = vadd.f32 %v1142_v12, %v3834_v62  ;;  %v1153_v18 = vadd.f32 %v1143_v30, %v3834_v62  ;;  %v1154_v25 = vadd.f32 %v1144_v42, %v3834_v62  ;;  %v1155_v40 = vadd.f32 %v1145_v44, %v3834_v62 }
 0x106   :  { %v1156_v8 = vadd.f32 %v1146_v45, %v3834_v62  ;;  %v1157_v4 = vadd.f32 %v1147_v48, %v3834_v62  ;;  %v1192_v37 = vmul.f32 %v3838_v2, %v1181_v47  ;;  %v1193_v23 = vmul.f32 %v3838_v2, %v1182_v13 }
 0x107   :  { %v1194_v6 = vmul.f32 %v3838_v2, %v1183_v15  ;;  %v1195_v28 = vmul.f32 %v3838_v2, %v1184_v19  ;;  %v1196_v7 = vmul.f32 %v3838_v2, %v1185_v31  ;;  %v1197_v38 = vmul.f32 %v3838_v2, %v1186_v33 }
 0x108   :  { %v1198_v11 = vmul.f32 %v3838_v2, %v1187_v49  ;;  %v1199_v9 = vmul.f32 %v3838_v2, %v1188_v58  ;;  %v2681_v12 = vadd.f32 -2.0, %v3787_v36  ;;  %v2682_v62 = vadd.f32 -2.0, %v3841_v52 }
 0x109   :  { %v2683_v10 = vadd.f32 -2.0, %v3853_v46  ;;  %v2684_v26 = vadd.f32 -2.0, %v3855_v39  ;;  %v2685_v17 = vadd.f32 -2.0, %v3857_v22  ;;  %v2686_v21 = vadd.f32 -2.0, %v3863_v55 }
 0x10a   :  { %v2687_v27 = vadd.f32 -2.0, %v3868_v34  ;;  %v2688_v30 = vadd.f32 -2.0, %v3878_v56  ;;  %v2689_v42 = vadd.f32 -2.0, %v3889_v35  ;;  %v1221_v2 = vmax.f32 %v3884_v1, 0.0 }
 0x10b   :  { %v1222_v29 = vmax.f32 %v2681_v12, 0.0  ;;  %v1223_v0 = vmax.f32 %v2682_v62, 0.0  ;;  %v1224_v63 = vmax.f32 %v2683_v10, 0.0  ;;  %v1225_v43 = vmax.f32 %v2684_v26, 0.0 }
 0x10c   :  { %v1226_v51 = vmax.f32 %v2685_v17, 0.0  ;;  %v1227_v44 = vmax.f32 %v2686_v21, 0.0  ;;  %v1228_v45 = vmax.f32 %v2687_v27, 0.0  ;;  %v1229_v50 = vmax.f32 %v2688_v30, 0.0 }
 0x10d   :  { %v1230_v24 = vmax.f32 %v2689_v42, 0.0  ;;  %v1231_v48 = vmin.f32 %v1221_v2, 1.0  ;;  %v1232_v53 = vmin.f32 %v1222_v29, 1.0  ;;  %v1202_v54 = vadd.f32 %v1192_v37, %v1150_v32 }
 0x10e   :  { %v1203_v47 = vadd.f32 %v1193_v23, %v1151_v60  ;;  %v1233_v13 = vmin.f32 %v1223_v0, 1.0  ;;  %v1234_v15 = vmin.f32 %v1224_v63, 1.0  ;;  %v1235_v19 = vmin.f32 %v1225_v43, 1.0 }
 0x10f   :  { %v1236_v31 = vmin.f32 %v1226_v51, 1.0  ;;  %v1237_v33 = vmin.f32 %v1227_v44, 1.0  ;;  %v1238_v49 = vmin.f32 %v1228_v45, 1.0  ;;  %v1239_v1 = vmin.f32 %v1229_v50, 1.0 }
 0x110   :  { %v1240_v58 = vmin.f32 %v1230_v24, 1.0  ;;  %v1242_v12 = vmul.f32 %v3887_v3, %v1231_v48  ;;  %v1243_v62 = vmul.f32 %v3887_v3, %v1232_v53  ;;  %v1204_v10 = vadd.f32 %v1194_v6, %v1152_v61 }
 0x111   :  { %v1205_v26 = vadd.f32 %v1195_v28, %v1153_v18  ;;  %v1206_v17 = vadd.f32 %v1196_v7, %v1154_v25  ;;  %v1207_v21 = vadd.f32 %v1197_v38, %v1155_v40  ;;  %v1208_v27 = vadd.f32 %v1198_v11, %v1156_v8 }
 0x112   :  { %v1209_v30 = vadd.f32 %v1199_v9, %v1157_v4  ;;  %v1244_v32 = vmul.f32 %v3887_v3, %v1233_v13  ;;  %v1245_v60 = vmul.f32 %v3887_v3, %v1234_v15  ;;  %v1246_v37 = vmul.f32 %v3887_v3, %v1235_v19 }
 0x113   :  { %v1247_v23 = vmul.f32 %v3887_v3, %v1236_v31  ;;  %v1248_v42 = vmul.f32 %v3887_v3, %v1237_v33  ;;  %v1249_v2 = vmul.f32 %v3887_v3, %v1238_v49  ;;  %v1250_v29 = vmul.f32 %v3887_v3, %v1239_v1 }
 0x114   :  { %v1251_v61 = vmul.f32 %v3887_v3, %v1240_v58  ;;  %v1252_v18 = vadd.f32 %v1242_v12, %v3876_v59  ;;  %v1253_v25 = vadd.f32 %v1243_v62, %v3881_v41  ;;  %v2691_v40 = vadd.f32 -3.0, %v3785_v16 }
 0x115   :  { %v2692_v8 = vadd.f32 -3.0, %v3787_v36  ;;  %v2693_v4 = vadd.f32 -3.0, %v3841_v52  ;;  %v2694_v6 = vadd.f32 -3.0, %v3853_v46  ;;  %v2695_v28 = vadd.f32 -3.0, %v3855_v39 }
 0x116   :  { %v2696_v7 = vadd.f32 -3.0, %v3857_v22  ;;  %v2697_v3 = vadd.f32 -3.0, %v3863_v55  ;;  %v2698_v59 = vadd.f32 -3.0, %v3868_v34  ;;  %v2699_v41 = vadd.f32 -3.0, %v3878_v56 }
 0x117   :  { %v2700_v38 = vadd.f32 -3.0, %v3889_v35  ;;  %v1273_v11 = vmax.f32 %v2691_v40, 0.0  ;;  %v1274_v9 = vmax.f32 %v2692_v8, 0.0  ;;  %v1275_v0 = vmax.f32 %v2693_v4, 0.0 }
 0x118   :  { %v1276_v63 = vmax.f32 %v2694_v6, 0.0  ;;  %v1277_v43 = vmax.f32 %v2695_v28, 0.0  ;;  %v1278_v51 = vmax.f32 %v2696_v7, 0.0  ;;  %v1279_v44 = vmax.f32 %v2697_v3, 0.0 }
 0x119   :  { %v1280_v45 = vmax.f32 %v2698_v59, 0.0  ;;  %v1281_v50 = vmax.f32 %v2699_v41, 0.0  ;;  %v1282_v24 = vmax.f32 %v2700_v38, 0.0  ;;  %v1254_v48 = vadd.f32 %v1244_v32, %v1202_v54 }
 0x11a   :  { %v1255_v53 = vadd.f32 %v1245_v60, %v1203_v47  ;;  %v1283_v13 = vmin.f32 %v1273_v11, 1.0  ;;  %v1284_v15 = vmin.f32 %v1274_v9, 1.0  ;;  %v1256_v19 = vadd.f32 %v1246_v37, %v1204_v10 }
 0x11b   :  { %v1285_v31 = vmin.f32 %v1275_v0, 1.0  ;;  %v1286_v33 = vmin.f32 %v1276_v63, 1.0  ;;  %v1287_v49 = vmin.f32 %v1277_v43, 1.0  ;;  %v1288_v1 = vmin.f32 %v1278_v51, 1.0 }
 0x11c   :  { %v1289_v58 = vmin.f32 %v1279_v44, 1.0  ;;  %v1290_v12 = vmin.f32 %v1280_v45, 1.0  ;;  %v1293_v62 = vstv %s3947_s23  ;;  %v1291_v40 = vmin.f32 %v1281_v50, 1.0  ;;  %s4320_s23 = sld [smem:[#allocation13 + $0x56]] }
 0x11d   :  { %v1292_v8 = vmin.f32 %v1282_v24, 1.0  ;;  %v1294_v4 = vmul.f32 %v1293_v62, %v1283_v13  ;;  %v1295_v6 = vmul.f32 %v1293_v62, %v1284_v15  ;;  %v1257_v28 = vadd.f32 %v1247_v23, %v1205_v26 }
 0x11e   :  { %v1258_v7 = vadd.f32 %v1248_v42, %v1206_v17  ;;  %v1259_v3 = vadd.f32 %v1249_v2, %v1207_v21  ;;  %v1260_v59 = vadd.f32 %v1250_v29, %v1208_v27  ;;  %v1261_v54 = vadd.f32 %v1251_v61, %v1209_v30 }
 0x11f   :  { %v1296_v47 = vmul.f32 %v1293_v62, %v1285_v31  ;;  %v1297_v32 = vmul.f32 %v1293_v62, %v1286_v33  ;;  %v2702_v10 = vadd.f32 -4.0, %v3785_v16  ;;  %v1298_v60 = vmul.f32 %v1293_v62, %v1287_v49 }
 0x120   :  { %v1299_v37 = vmul.f32 %v1293_v62, %v1288_v1  ;;  %v1300_v41 = vmul.f32 %v1293_v62, %v1289_v58  ;;  %v1301_v38 = vmul.f32 %v1293_v62, %v1290_v12  ;;  %v1302_v11 = vmul.f32 %v1293_v62, %v1291_v40 }
 0x121   :  { %v1303_v9 = vmul.f32 %v1293_v62, %v1292_v8  ;;  %v1304_v0 = vadd.f32 %v1294_v4, %v1252_v18  ;;  %v1305_v63 = vadd.f32 %v1295_v6, %v1253_v25  ;;  %v2703_v26 = vadd.f32 -4.0, %v3787_v36 }
 0x122   :  { %v2704_v17 = vadd.f32 -4.0, %v3841_v52  ;;  %v2705_v21 = vadd.f32 -4.0, %v3853_v46  ;;  %v2706_v27 = vadd.f32 -4.0, %v3855_v39  ;;  %v2707_v30 = vadd.f32 -4.0, %v3857_v22 }
 0x123   :  { %v2708_v23 = vadd.f32 -4.0, %v3863_v55  ;;  %v2709_v42 = vadd.f32 -4.0, %v3868_v34  ;;  %v2710_v2 = vadd.f32 -4.0, %v3878_v56  ;;  %v2711_v29 = vadd.f32 -4.0, %v3889_v35 }
 0x124   :  { %v1325_v61 = vmax.f32 %v2702_v10, 0.0  ;;  %v1326_v18 = vmax.f32 %v2703_v26, 0.0  ;;  %v1327_v25 = vmax.f32 %v2704_v17, 0.0  ;;  %v1328_v43 = vmax.f32 %v2705_v21, 0.0 }
 0x125   :  { %v1329_v51 = vmax.f32 %v2706_v27, 0.0  ;;  %v1330_v44 = vmax.f32 %v2707_v30, 0.0  ;;  %v1331_v45 = vmax.f32 %v2708_v23, 0.0  ;;  %v1332_v50 = vmax.f32 %v2709_v42, 0.0 }
 0x126   :  { %v1333_v24 = vmax.f32 %v2710_v2, 0.0  ;;  %v1334_v13 = vmax.f32 %v2711_v29, 0.0  ;;  %v1335_v15 = vmin.f32 %v1325_v61, 1.0  ;;  %v1306_v31 = vadd.f32 %v1296_v47, %v1254_v48 }
 0x127   :  { %v1307_v33 = vadd.f32 %v1297_v32, %v1255_v53  ;;  %v1308_v49 = vadd.f32 %v1298_v60, %v1256_v19  ;;  %v1336_v1 = vmin.f32 %v1326_v18, 1.0  ;;  %v1309_v58 = vadd.f32 %v1299_v37, %v1257_v28 }
 0x128   :  { %v1337_v12 = vmin.f32 %v1327_v25, 1.0  ;;  %v1338_v62 = vmin.f32 %v1328_v43, 1.0  ;;  %v1339_v40 = vmin.f32 %v1329_v51, 1.0  ;;  %v1340_v8 = vmin.f32 %v1330_v44, 1.0 }
 0x129   :  { %v1341_v4 = vmin.f32 %v1331_v45, 1.0  ;;  %v1342_v6 = vmin.f32 %v1332_v50, 1.0  ;;  %v1345_v10 = vstv %s3961_s4  ;;  %v1343_v26 = vmin.f32 %v1333_v24, 1.0  ;;  %s4322_s4 = sld [smem:[#allocation13 + $0x55]] }
 0x12a   :  { %v1344_v17 = vmin.f32 %v1334_v13, 1.0  ;;  %v1346_v21 = vmul.f32 %v1345_v10, %v1335_v15  ;;  %v1347_v27 = vmul.f32 %v1345_v10, %v1336_v1  ;;  %v1310_v30 = vadd.f32 %v1300_v41, %v1258_v7 }
 0x12b   :  { %v1311_v23 = vadd.f32 %v1301_v38, %v1259_v3  ;;  %v1312_v42 = vadd.f32 %v1302_v11, %v1260_v59  ;;  %v1313_v2 = vadd.f32 %v1303_v9, %v1261_v54  ;;  %v1348_v48 = vmul.f32 %v1345_v10, %v1337_v12 }
 0x12c   :  { %v1349_v53 = vmul.f32 %v1345_v10, %v1338_v62  ;;  %v2713_v19 = vadd.f32 -5.0, %v3785_v16  ;;  %v2714_v28 = vadd.f32 -5.0, %v3787_v36  ;;  %v1350_v47 = vmul.f32 %v1345_v10, %v1339_v40 }
 0x12d   :  { %v1351_v32 = vmul.f32 %v1345_v10, %v1340_v8  ;;  %v1352_v60 = vmul.f32 %v1345_v10, %v1341_v4  ;;  %v1353_v37 = vmul.f32 %v1345_v10, %v1342_v6  ;;  %v1354_v29 = vmul.f32 %v1345_v10, %v1343_v26 }
 0x12e   :  { %v1355_v61 = vmul.f32 %v1345_v10, %v1344_v17  ;;  %v1356_v18 = vadd.f32 %v1346_v21, %v1304_v0  ;;  %v1357_v25 = vadd.f32 %v1347_v27, %v1305_v63  ;;  %v2715_v7 = vadd.f32 -5.0, %v3841_v52 }
 0x12f   :  { %v2716_v3 = vadd.f32 -5.0, %v3853_v46  ;;  %v2717_v59 = vadd.f32 -5.0, %v3855_v39  ;;  %v2718_v54 = vadd.f32 -5.0, %v3857_v22  ;;  %v2719_v41 = vadd.f32 -5.0, %v3863_v55 }
 0x130   :  { %v2720_v38 = vadd.f32 -5.0, %v3868_v34  ;;  %v2721_v11 = vadd.f32 -5.0, %v3878_v56  ;;  %v2722_v9 = vadd.f32 -5.0, %v3889_v35  ;;  %v1377_v0 = vmax.f32 %v2713_v19, 0.0 }
 0x131   :  { %v1378_v63 = vmax.f32 %v2714_v28, 0.0  ;;  %v1379_v43 = vmax.f32 %v2715_v7, 0.0  ;;  %v1380_v51 = vmax.f32 %v2716_v3, 0.0  ;;  %v1381_v44 = vmax.f32 %v2717_v59, 0.0 }
 0x132   :  { %v1382_v45 = vmax.f32 %v2718_v54, 0.0  ;;  %v1383_v50 = vmax.f32 %v2719_v41, 0.0  ;;  %v1384_v24 = vmax.f32 %v2720_v38, 0.0  ;;  %v1385_v13 = vmax.f32 %v2721_v11, 0.0 }
 0x133   :  { %v1386_v15 = vmax.f32 %v2722_v9, 0.0  ;;  %v1387_v1 = vmin.f32 %v1377_v0, 1.0  ;;  %v1388_v12 = vmin.f32 %v1378_v63, 1.0  ;;  %v1358_v62 = vadd.f32 %v1348_v48, %v1306_v31 }
 0x134   :  { %v1359_v40 = vadd.f32 %v1349_v53, %v1307_v33  ;;  %v3985_v8 = vadd.f32 %v1350_v47, %v1308_v49  ;;  %v3987_v4 = vadd.f32 %v1351_v32, %v1309_v58  ;;  %v3989_v6 = vadd.f32 %v1352_v60, %v1310_v30 }
 0x135   :  { %v1389_v10 = vmin.f32 %v1379_v43, 1.0  ;;  %v1390_v26 = vmin.f32 %v1380_v51, 1.0  ;;  %v1391_v17 = vmin.f32 %v1381_v44, 1.0  ;;  %v1392_v21 = vmin.f32 %v1382_v45, 1.0 }
 0x136   :  { %v1393_v27 = vmin.f32 %v1383_v50, 1.0  ;;  %v1394_v19 = vmin.f32 %v1384_v24, 1.0  ;;  %v1397_v28 = vstv %s3975_s5  ;;  %v1395_v7 = vmin.f32 %v1385_v13, 1.0  ;;  %s4326_s5 = sld [smem:[#allocation13 + $0x57]] }
 0x137   :  { %v1396_v3 = vmin.f32 %v1386_v15, 1.0  ;;  %v1398_v59 = vmul.f32 %v1397_v28, %v1387_v1  ;;  %v1399_v54 = vmul.f32 %v1397_v28, %v1388_v12  ;;  %v1363_v41 = vadd.f32 %v1353_v37, %v1311_v23 }
 0x138   :  { %v1364_v31 = vadd.f32 %v1354_v29, %v1312_v42  ;;  %v1365_v33 = vadd.f32 %v1355_v61, %v1313_v2  ;;  %v2724_v49 = vadd.f32 -6.0, %v3785_v16  ;;  %v1400_v58 = vmul.f32 %v1397_v28, %v1389_v10 }
 0x139   :  { %v1401_v48 = vmul.f32 %v1397_v28, %v1390_v26  ;;  %v2725_v30 = vadd.f32 -6.0, %v3787_v36  ;;  %v2726_v53 = vadd.f32 -6.0, %v3841_v52  ;;  %v1402_v47 = vmul.f32 %v1397_v28, %v1391_v17 }
 0x13a   :  { %v1403_v32 = vmul.f32 %v1397_v28, %v1392_v21  ;;  %v1404_v60 = vmul.f32 %v1397_v28, %v1393_v27  ;;  %v1405_v38 = vmul.f32 %v1397_v28, %v1394_v19  ;;  %v1406_v11 = vmul.f32 %v1397_v28, %v1395_v7 }
 0x13b   :  { %v1407_v9 = vmul.f32 %v1397_v28, %v1396_v3  ;;  %v1408_v0 = vadd.f32 %v1398_v59, %v1356_v18  ;;  %v1409_v23 = vadd.f32 %v1399_v54, %v1357_v25  ;;  %v2727_v42 = vadd.f32 -6.0, %v3853_v46 }
 0x13c   :  { %v2728_v2 = vadd.f32 -6.0, %v3855_v39  ;;  %v2729_v37 = vadd.f32 -6.0, %v3857_v22  ;;  %v2730_v29 = vadd.f32 -6.0, %v3863_v55  ;;  %v2731_v61 = vadd.f32 -6.0, %v3868_v34 }
 0x13d   :  { %v2732_v63 = vadd.f32 -6.0, %v3878_v56  ;;  %v2733_v43 = vadd.f32 -6.0, %v3889_v35  ;;  %v1429_v51 = vmax.f32 %v2724_v49, 0.0  ;;  %v1430_v44 = vmax.f32 %v2725_v30, 0.0 }
 0x13e   :  { %v1431_v45 = vmax.f32 %v2726_v53, 0.0  ;;  %v1432_v50 = vmax.f32 %v2727_v42, 0.0  ;;  %v1433_v18 = vmax.f32 %v2728_v2, 0.0  ;;  %v1434_v25 = vmax.f32 %v2729_v37, 0.0 }
 0x13f   :  { %v1435_v24 = vmax.f32 %v2730_v29, 0.0  ;;  %v1436_v13 = vmax.f32 %v2731_v61, 0.0  ;;  %v1437_v15 = vmax.f32 %v2732_v63, 0.0  ;;  %v1410_v1 = vadd.f32 %v1400_v58, %v1358_v62 }
 0x140   :  { %v1438_v12 = vmax.f32 %v2733_v43, 0.0  ;;  %v1439_v10 = vmin.f32 %v1429_v51, 1.0  ;;  %v1440_v26 = vmin.f32 %v1430_v44, 1.0  ;;  %v1411_v17 = vadd.f32 %v1401_v48, %v1359_v40 }
 0x141   :  { %v1441_v21 = vmin.f32 %v1431_v45, 1.0  ;;  %v1442_v27 = vmin.f32 %v1432_v50, 1.0  ;;  %v1443_v19 = vmin.f32 %v1433_v18, 1.0  ;;  %v1444_v28 = vmin.f32 %v1434_v25, 1.0 }
 0x142   :  { %v1445_v7 = vmin.f32 %v1435_v24, 1.0  ;;  %v1446_v3 = vmin.f32 %v1436_v13, 1.0  ;;  %v1449_v59 = vstv %s3995_s24  ;;  %v1447_v54 = vmin.f32 %v1437_v15, 1.0  ;;  %s4331_s24 = sld [smem:[#allocation13 + $0x58]] }
 0x143   :  { %v1448_v49 = vmin.f32 %v1438_v12, 1.0  ;;  %v1450_v30 = vmul.f32 %v1449_v59, %v1439_v10  ;;  %v1451_v53 = vmul.f32 %v1449_v59, %v1440_v26  ;;  %v1412_v42 = vadd.f32 %v1402_v47, %v3985_v8 }
 0x144   :  { %v1413_v2 = vadd.f32 %v1403_v32, %v3987_v4  ;;  %v1414_v62 = vadd.f32 %v1404_v60, %v3989_v6  ;;  %v1415_v58 = vadd.f32 %v1405_v38, %v1363_v41  ;;  %v1416_v37 = vadd.f32 %v1406_v11, %v1364_v31 }
 0x145   :  { %v1417_v40 = vadd.f32 %v1407_v9, %v1365_v33  ;;  %v1452_v48 = vmul.f32 %v1449_v59, %v1441_v21  ;;  %v1453_v29 = vmul.f32 %v1449_v59, %v1442_v27  ;;  %v1454_v61 = vmul.f32 %v1449_v59, %v1443_v19 }
 0x146   :  { %v1455_v63 = vmul.f32 %v1449_v59, %v1444_v28  ;;  %v1456_v43 = vmul.f32 %v1449_v59, %v1445_v7  ;;  %v1457_v51 = vmul.f32 %v1449_v59, %v1446_v3  ;;  %v1458_v44 = vmul.f32 %v1449_v59, %v1447_v54 }
 0x147   :  { %v1459_v45 = vmul.f32 %v1449_v59, %v1448_v49  ;;  %v1460_v50 = vadd.f32 %v1450_v30, %v1408_v0  ;;  %v1461_v18 = vadd.f32 %v1451_v53, %v1409_v23  ;;  %v2735_v8 = vadd.f32 -7.0, %v3785_v16 }
 0x148   :  { %v2736_v4 = vadd.f32 -7.0, %v3787_v36  ;;  %v2737_v6 = vadd.f32 -7.0, %v3841_v52  ;;  %v2738_v41 = vadd.f32 -7.0, %v3853_v46  ;;  %v2739_v31 = vadd.f32 -7.0, %v3855_v39 }
 0x149   :  { %v2740_v33 = vadd.f32 -7.0, %v3857_v22  ;;  %v2741_v47 = vadd.f32 -7.0, %v3863_v55  ;;  %v2742_v32 = vadd.f32 -7.0, %v3868_v34  ;;  %v2743_v60 = vadd.f32 -7.0, %v3878_v56 }
 0x14a   :  { %v2744_v38 = vadd.f32 -7.0, %v3889_v35  ;;  %v1481_v11 = vmax.f32 %v2735_v8, 0.0  ;;  %v1482_v9 = vmax.f32 %v2736_v4, 0.0  ;;  %v1483_v0 = vmax.f32 %v2737_v6, 0.0 }
 0x14b   :  { %v1484_v23 = vmax.f32 %v2738_v41, 0.0  ;;  %v1485_v25 = vmax.f32 %v2739_v31, 0.0  ;;  %v1486_v24 = vmax.f32 %v2740_v33, 0.0  ;;  %v1487_v13 = vmax.f32 %v2741_v47, 0.0 }
 0x14c   :  { %v1488_v15 = vmax.f32 %v2742_v32, 0.0  ;;  %v1489_v12 = vmax.f32 %v2743_v60, 0.0  ;;  %v1490_v10 = vmax.f32 %v2744_v38, 0.0  ;;  %v1462_v26 = vadd.f32 %v1452_v48, %v1410_v1 }
 0x14d   :  { %v1463_v21 = vadd.f32 %v1453_v29, %v1411_v17  ;;  %v1491_v27 = vmin.f32 %v1481_v11, 1.0  ;;  %v1492_v19 = vmin.f32 %v1482_v9, 1.0  ;;  %v1464_v28 = vadd.f32 %v1454_v61, %v1412_v42 }
 0x14e   :  { %v1493_v7 = vmin.f32 %v1483_v0, 1.0  ;;  %v1494_v3 = vmin.f32 %v1484_v23, 1.0  ;;  %v1495_v59 = vmin.f32 %v1485_v25, 1.0  ;;  %v1496_v54 = vmin.f32 %v1486_v24, 1.0 }
 0x14f   :  { %v1497_v49 = vmin.f32 %v1487_v13, 1.0  ;;  %v1498_v30 = vmin.f32 %v1488_v15, 1.0  ;;  %v1501_v53 = vstv %s4008_s25  ;;  %v1499_v8 = vmin.f32 %v1489_v12, 1.0  ;;  %s4334_s25 = sld [smem:[#allocation13 + $0x59]] }
 0x150   :  { %v1500_v4 = vmin.f32 %v1490_v10, 1.0  ;;  %v1502_v6 = vmul.f32 %v1501_v53, %v1491_v27  ;;  %v1503_v41 = vmul.f32 %v1501_v53, %v1492_v19  ;;  %v1465_v31 = vadd.f32 %v1455_v63, %v1413_v2 }
 0x151   :  { %v1466_v33 = vadd.f32 %v1456_v43, %v1414_v62  ;;  %v1467_v47 = vadd.f32 %v1457_v51, %v1415_v58  ;;  %v1468_v32 = vadd.f32 %v1458_v44, %v1416_v37  ;;  %v1469_v1 = vadd.f32 %v1459_v45, %v1417_v40 }
 0x152   :  { %v1504_v17 = vmul.f32 %v1501_v53, %v1493_v7  ;;  %v1505_v48 = vmul.f32 %v1501_v53, %v1494_v3  ;;  %v2746_v42 = vadd.f32 -8.0, %v3785_v16  ;;  %v1506_v29 = vmul.f32 %v1501_v53, %v1495_v59 }
 0x153   :  { %v1507_v61 = vmul.f32 %v1501_v53, %v1496_v54  ;;  %v1508_v60 = vmul.f32 %v1501_v53, %v1497_v49  ;;  %v1509_v38 = vmul.f32 %v1501_v53, %v1498_v30  ;;  %v1510_v11 = vmul.f32 %v1501_v53, %v1499_v8 }
 0x154   :  { %v1511_v9 = vmul.f32 %v1501_v53, %v1500_v4  ;;  %v1512_v0 = vadd.f32 %v1502_v6, %v1460_v50  ;;  %v1513_v23 = vadd.f32 %v1503_v41, %v1461_v18  ;;  %v2747_v2 = vadd.f32 -8.0, %v3787_v36 }
 0x155   :  { %v2748_v62 = vadd.f32 -8.0, %v3841_v52  ;;  %v2749_v58 = vadd.f32 -8.0, %v3853_v46  ;;  %v2750_v37 = vadd.f32 -8.0, %v3855_v39  ;;  %v2751_v40 = vadd.f32 -8.0, %v3857_v22 }
 0x156   :  { %v2752_v63 = vadd.f32 -8.0, %v3863_v55  ;;  %v2753_v43 = vadd.f32 -8.0, %v3868_v34  ;;  %v2754_v51 = vadd.f32 -8.0, %v3878_v56  ;;  %v2755_v44 = vadd.f32 -8.0, %v3889_v35 }
 0x157   :  { %v1533_v45 = vmax.f32 %v2746_v42, 0.0  ;;  %v1534_v50 = vmax.f32 %v2747_v2, 0.0  ;;  %v1535_v18 = vmax.f32 %v2748_v62, 0.0  ;;  %v1536_v25 = vmax.f32 %v2749_v58, 0.0 }
 0x158   :  { %v1537_v24 = vmax.f32 %v2750_v37, 0.0  ;;  %v1538_v13 = vmax.f32 %v2751_v40, 0.0  ;;  %v1539_v15 = vmax.f32 %v2752_v63, 0.0  ;;  %v1540_v12 = vmax.f32 %v2753_v43, 0.0 }
 0x159   :  { %v1541_v10 = vmax.f32 %v2754_v51, 0.0  ;;  %v1542_v27 = vmax.f32 %v2755_v44, 0.0  ;;  %v1543_v19 = vmin.f32 %v1533_v45, 1.0  ;;  %v1514_v7 = vadd.f32 %v1504_v17, %v1462_v26 }
 0x15a   :  { %v1515_v3 = vadd.f32 %v1505_v48, %v1463_v21  ;;  %v1516_v59 = vadd.f32 %v1506_v29, %v1464_v28  ;;  %v1544_v54 = vmin.f32 %v1534_v50, 1.0  ;;  %v1517_v49 = vadd.f32 %v1507_v61, %v1465_v31 }
 0x15b   :  { %v1545_v30 = vmin.f32 %v1535_v18, 1.0  ;;  %v1546_v53 = vmin.f32 %v1536_v25, 1.0  ;;  %v1547_v8 = vmin.f32 %v1537_v24, 1.0  ;;  %v1548_v4 = vmin.f32 %v1538_v13, 1.0 }
 0x15c   :  { %v1549_v6 = vmin.f32 %v1539_v15, 1.0  ;;  %v1550_v41 = vmin.f32 %v1540_v12, 1.0  ;;  %v1553_v42 = vstv %s4022_s26  ;;  %v1551_v2 = vmin.f32 %v1541_v10, 1.0  ;;  %s4339_s26 = sld [smem:[#allocation13 + $0x5a]] }
 0x15d   :  { %v1552_v62 = vmin.f32 %v1542_v27, 1.0  ;;  %v1554_v58 = vmul.f32 %v1553_v42, %v1543_v19  ;;  %v1555_v37 = vmul.f32 %v1553_v42, %v1544_v54  ;;  %v1518_v40 = vadd.f32 %v1508_v60, %v1466_v33 }
 0x15e   :  { %v1519_v63 = vadd.f32 %v1509_v38, %v1467_v47  ;;  %v1520_v43 = vadd.f32 %v1510_v11, %v1468_v32  ;;  %v1521_v51 = vadd.f32 %v1511_v9, %v1469_v1  ;;  %v1556_v26 = vmul.f32 %v1553_v42, %v1545_v30 }
 0x15f   :  { %v1557_v21 = vmul.f32 %v1553_v42, %v1546_v53  ;;  %v2757_v28 = vadd.f32 -9.0, %v3785_v16  ;;  %v2758_v31 = vadd.f32 -9.0, %v3787_v36  ;;  %v1558_v17 = vmul.f32 %v1553_v42, %v1547_v8 }
 0x160   :  { %v1559_v48 = vmul.f32 %v1553_v42, %v1548_v4  ;;  %v1560_v29 = vmul.f32 %v1553_v42, %v1549_v6  ;;  %v1561_v61 = vmul.f32 %v1553_v42, %v1550_v41  ;;  %v1562_v44 = vmul.f32 %v1553_v42, %v1551_v2 }
 0x161   :  { %v1563_v45 = vmul.f32 %v1553_v42, %v1552_v62  ;;  %v1564_v50 = vadd.f32 %v1554_v58, %v1512_v0  ;;  %v1565_v18 = vadd.f32 %v1555_v37, %v1513_v23  ;;  %v2759_v33 = vadd.f32 -9.0, %v3841_v52 }
 0x162   :  { %v2760_v47 = vadd.f32 -9.0, %v3853_v46  ;;  %v2761_v32 = vadd.f32 -9.0, %v3855_v39  ;;  %v2762_v1 = vadd.f32 -9.0, %v3857_v22  ;;  %v2763_v60 = vadd.f32 -9.0, %v3863_v55 }
 0x163   :  { %v2764_v38 = vadd.f32 -9.0, %v3868_v34  ;;  %v2765_v11 = vadd.f32 -9.0, %v3878_v56  ;;  %v2766_v9 = vadd.f32 -9.0, %v3889_v35  ;;  %v1585_v0 = vmax.f32 %v2757_v28, 0.0 }
 0x164   :  { %v1586_v23 = vmax.f32 %v2758_v31, 0.0  ;;  %v1587_v25 = vmax.f32 %v2759_v33, 0.0  ;;  %v1588_v24 = vmax.f32 %v2760_v47, 0.0  ;;  %v1589_v13 = vmax.f32 %v2761_v32, 0.0 }
 0x165   :  { %v1590_v15 = vmax.f32 %v2762_v1, 0.0  ;;  %v1591_v12 = vmax.f32 %v2763_v60, 0.0  ;;  %v1592_v10 = vmax.f32 %v2764_v38, 0.0  ;;  %v1593_v27 = vmax.f32 %v2765_v11, 0.0 }
 0x166   :  { %v1594_v19 = vmax.f32 %v2766_v9, 0.0  ;;  %v1595_v54 = vmin.f32 %v1585_v0, 1.0  ;;  %v1596_v30 = vmin.f32 %v1586_v23, 1.0  ;;  %v1566_v53 = vadd.f32 %v1556_v26, %v1514_v7 }
 0x167   :  { %v1567_v8 = vadd.f32 %v1557_v21, %v1515_v3  ;;  %v4046_v4 = vadd.f32 %v1558_v17, %v1516_v59  ;;  %v4048_v6 = vadd.f32 %v1559_v48, %v1517_v49  ;;  %v4050_v41 = vadd.f32 %v1560_v29, %v1518_v40 }
 0x168   :  { %v1597_v42 = vmin.f32 %v1587_v25, 1.0  ;;  %v1598_v2 = vmin.f32 %v1588_v24, 1.0  ;;  %v1599_v62 = vmin.f32 %v1589_v13, 1.0  ;;  %v1600_v58 = vmin.f32 %v1590_v15, 1.0 }
 0x169   :  { %v1601_v37 = vmin.f32 %v1591_v12, 1.0  ;;  %v1602_v28 = vmin.f32 %v1592_v10, 1.0  ;;  %v1605_v31 = vstv %s4036_s27  ;;  %v1603_v33 = vmin.f32 %v1593_v27, 1.0  ;;  %s4345_s27 = sld [smem:[#allocation13 + $0x5b]] }
 0x16a   :  { %v1604_v47 = vmin.f32 %v1594_v19, 1.0  ;;  %v1606_v32 = vmul.f32 %v1605_v31, %v1595_v54  ;;  %v1607_v1 = vmul.f32 %v1605_v31, %v1596_v30  ;;  %v1571_v60 = vadd.f32 %v1561_v61, %v1519_v63 }
 0x16b   :  { %v1572_v7 = vadd.f32 %v1562_v44, %v1520_v43  ;;  %v1573_v3 = vadd.f32 %v1563_v45, %v1521_v51  ;;  %v2768_v59 = vadd.f32 -10.0, %v3785_v16  ;;  %v1608_v49 = vmul.f32 %v1605_v31, %v1597_v42 }
 0x16c   :  { %v1609_v26 = vmul.f32 %v1605_v31, %v1598_v2  ;;  %v2769_v40 = vadd.f32 -10.0, %v3787_v36  ;;  %v2770_v21 = vadd.f32 -10.0, %v3841_v52  ;;  %v1610_v17 = vmul.f32 %v1605_v31, %v1599_v62 }
 0x16d   :  { %v1611_v48 = vmul.f32 %v1605_v31, %v1600_v58  ;;  %v1612_v29 = vmul.f32 %v1605_v31, %v1601_v37  ;;  %v1613_v38 = vmul.f32 %v1605_v31, %v1602_v28  ;;  %v1614_v11 = vmul.f32 %v1605_v31, %v1603_v33 }
 0x16e   :  { %v1615_v9 = vmul.f32 %v1605_v31, %v1604_v47  ;;  %v1616_v0 = vadd.f32 %v1606_v32, %v1564_v50  ;;  %v1617_v63 = vadd.f32 %v1607_v1, %v1565_v18  ;;  %v2771_v43 = vadd.f32 -10.0, %v3853_v46 }
 0x16f   :  { %v2772_v51 = vadd.f32 -10.0, %v3855_v39  ;;  %v2773_v61 = vadd.f32 -10.0, %v3857_v22  ;;  %v2774_v44 = vadd.f32 -10.0, %v3863_v55  ;;  %v2775_v45 = vadd.f32 -10.0, %v3868_v34 }
 0x170   :  { %v2776_v23 = vadd.f32 -10.0, %v3878_v56  ;;  %v2777_v25 = vadd.f32 -10.0, %v3889_v35  ;;  %v1637_v24 = vmax.f32 %v2768_v59, 0.0  ;;  %v1638_v13 = vmax.f32 %v2769_v40, 0.0 }
 0x171   :  { %v1639_v15 = vmax.f32 %v2770_v21, 0.0  ;;  %v1640_v12 = vmax.f32 %v2771_v43, 0.0  ;;  %v1641_v50 = vmax.f32 %v2772_v51, 0.0  ;;  %v1642_v18 = vmax.f32 %v2773_v61, 0.0 }
 0x172   :  { %v1643_v10 = vmax.f32 %v2774_v44, 0.0  ;;  %v1644_v27 = vmax.f32 %v2775_v45, 0.0  ;;  %v1645_v19 = vmax.f32 %v2776_v23, 0.0  ;;  %v1618_v54 = vadd.f32 %v1608_v49, %v1566_v53 }
 0x173   :  { %v1646_v30 = vmax.f32 %v2777_v25, 0.0  ;;  %v1647_v42 = vmin.f32 %v1637_v24, 1.0  ;;  %v1648_v2 = vmin.f32 %v1638_v13, 1.0  ;;  %v1619_v62 = vadd.f32 %v1609_v26, %v1567_v8 }
 0x174   :  { %v1649_v58 = vmin.f32 %v1639_v15, 1.0  ;;  %v1650_v37 = vmin.f32 %v1640_v12, 1.0  ;;  %v1651_v28 = vmin.f32 %v1641_v50, 1.0  ;;  %v1652_v31 = vmin.f32 %v1642_v18, 1.0 }
 0x175   :  { %v1653_v33 = vmin.f32 %v1643_v10, 1.0  ;;  %v1654_v47 = vmin.f32 %v1644_v27, 1.0  ;;  %v1657_v32 = vstv %s4056_s28  ;;  %v1655_v1 = vmin.f32 %v1645_v19, 1.0  ;;  %s4352_s28 = sld [smem:[#allocation13 + $0x5c]] }
 0x176   :  { %v1656_v59 = vmin.f32 %v1646_v30, 1.0  ;;  %v1658_v40 = vmul.f32 %v1657_v32, %v1647_v42  ;;  %v1659_v21 = vmul.f32 %v1657_v32, %v1648_v2  ;;  %v1620_v43 = vadd.f32 %v1610_v17, %v4046_v4 }
 0x177   :  { %v1621_v51 = vadd.f32 %v1611_v48, %v4048_v6  ;;  %v1622_v53 = vadd.f32 %v1612_v29, %v4050_v41  ;;  %v1623_v49 = vadd.f32 %v1613_v38, %v1571_v60  ;;  %v1624_v61 = vadd.f32 %v1614_v11, %v1572_v7 }
 0x178   :  { %v1625_v8 = vadd.f32 %v1615_v9, %v1573_v3  ;;  %v1660_v26 = vmul.f32 %v1657_v32, %v1649_v58  ;;  %v1661_v44 = vmul.f32 %v1657_v32, %v1650_v37  ;;  %v1662_v45 = vmul.f32 %v1657_v32, %v1651_v28 }
 0x179   :  { %v1663_v23 = vmul.f32 %v1657_v32, %v1652_v31  ;;  %v1664_v25 = vmul.f32 %v1657_v32, %v1653_v33  ;;  %v1665_v24 = vmul.f32 %v1657_v32, %v1654_v47  ;;  %v1666_v13 = vmul.f32 %v1657_v32, %v1655_v1 }
 0x17a   :  { %v1667_v15 = vmul.f32 %v1657_v32, %v1656_v59  ;;  %v1668_v12 = vadd.f32 %v1658_v40, %v1616_v0  ;;  %v1669_v50 = vadd.f32 %v1659_v21, %v1617_v63  ;;  %v2779_v4 = vadd.f32 -11.0, %v3785_v16 }
 0x17b   :  { %v2780_v6 = vadd.f32 -11.0, %v3787_v36  ;;  %v2781_v41 = vadd.f32 -11.0, %v3841_v52  ;;  %v2782_v60 = vadd.f32 -11.0, %v3853_v46  ;;  %v2783_v7 = vadd.f32 -11.0, %v3855_v39 }
 0x17c   :  { %v2784_v3 = vadd.f32 -11.0, %v3857_v22  ;;  %v2785_v17 = vadd.f32 -11.0, %v3863_v55  ;;  %v2786_v48 = vadd.f32 -11.0, %v3868_v34  ;;  %v2787_v29 = vadd.f32 -11.0, %v3878_v56 }
 0x17d   :  { %v2788_v38 = vadd.f32 -11.0, %v3889_v35  ;;  %v1689_v11 = vmax.f32 %v2779_v4, 0.0  ;;  %v1690_v9 = vmax.f32 %v2780_v6, 0.0  ;;  %v1691_v0 = vmax.f32 %v2781_v41, 0.0 }
 0x17e   :  { %v1692_v63 = vmax.f32 %v2782_v60, 0.0  ;;  %v1693_v18 = vmax.f32 %v2783_v7, 0.0  ;;  %v1694_v10 = vmax.f32 %v2784_v3, 0.0  ;;  %v1695_v27 = vmax.f32 %v2785_v17, 0.0 }
 0x17f   :  { %v1696_v19 = vmax.f32 %v2786_v48, 0.0  ;;  %v1697_v30 = vmax.f32 %v2787_v29, 0.0  ;;  %v1698_v42 = vmax.f32 %v2788_v38, 0.0  ;;  %v1670_v2 = vadd.f32 %v1660_v26, %v1618_v54 }
 0x180   :  { %v1671_v58 = vadd.f32 %v1661_v44, %v1619_v62  ;;  %v1699_v37 = vmin.f32 %v1689_v11, 1.0  ;;  %v1700_v28 = vmin.f32 %v1690_v9, 1.0  ;;  %v1672_v31 = vadd.f32 %v1662_v45, %v1620_v43 }
 0x181   :  { %v1701_v33 = vmin.f32 %v1691_v0, 1.0  ;;  %v1702_v47 = vmin.f32 %v1692_v63, 1.0  ;;  %v1703_v32 = vmin.f32 %v1693_v18, 1.0  ;;  %v1704_v1 = vmin.f32 %v1694_v10, 1.0 }
 0x182   :  { %v1705_v59 = vmin.f32 %v1695_v27, 1.0  ;;  %v1706_v40 = vmin.f32 %v1696_v19, 1.0  ;;  %v1709_v21 = vstv %s4069_s29  ;;  %v1707_v4 = vmin.f32 %v1697_v30, 1.0  ;;  %s4358_s29 = sld [smem:[#allocation13 + $0x5d]] }
 0x183   :  { %v1708_v6 = vmin.f32 %v1698_v42, 1.0  ;;  %v1710_v41 = vmul.f32 %v1709_v21, %v1699_v37  ;;  %v1711_v60 = vmul.f32 %v1709_v21, %v1700_v28  ;;  %v1673_v7 = vadd.f32 %v1663_v23, %v1621_v51 }
 0x184   :  { %v1674_v3 = vadd.f32 %v1664_v25, %v1622_v53  ;;  %v1675_v17 = vadd.f32 %v1665_v24, %v1623_v49  ;;  %v1676_v48 = vadd.f32 %v1666_v13, %v1624_v61  ;;  %v1677_v54 = vadd.f32 %v1667_v15, %v1625_v8 }
 0x185   :  { %v1712_v62 = vmul.f32 %v1709_v21, %v1701_v33  ;;  %v1713_v26 = vmul.f32 %v1709_v21, %v1702_v47  ;;  %v2790_v43 = vadd.f32 -12.0, %v3785_v16  ;;  %v1714_v44 = vmul.f32 %v1709_v21, %v1703_v32 }
 0x186   :  { %v1715_v45 = vmul.f32 %v1709_v21, %v1704_v1  ;;  %v1716_v29 = vmul.f32 %v1709_v21, %v1705_v59  ;;  %v1717_v38 = vmul.f32 %v1709_v21, %v1706_v40  ;;  %v1718_v11 = vmul.f32 %v1709_v21, %v1707_v4 }
 0x187   :  { %v1719_v9 = vmul.f32 %v1709_v21, %v1708_v6  ;;  %v1720_v0 = vadd.f32 %v1710_v41, %v1668_v12  ;;  %v1721_v63 = vadd.f32 %v1711_v60, %v1669_v50  ;;  %v2791_v51 = vadd.f32 -12.0, %v3787_v36 }
 0x188   :  { %v2792_v53 = vadd.f32 -12.0, %v3841_v52  ;;  %v2793_v49 = vadd.f32 -12.0, %v3853_v46  ;;  %v2794_v61 = vadd.f32 -12.0, %v3855_v39  ;;  %v2795_v8 = vadd.f32 -12.0, %v3857_v22 }
 0x189   :  { %v2796_v23 = vadd.f32 -12.0, %v3863_v55  ;;  %v2797_v25 = vadd.f32 -12.0, %v3868_v34  ;;  %v2798_v24 = vadd.f32 -12.0, %v3878_v56  ;;  %v2799_v13 = vadd.f32 -12.0, %v3889_v35 }
 0x18a   :  { %v1741_v15 = vmax.f32 %v2790_v43, 0.0  ;;  %v1742_v12 = vmax.f32 %v2791_v51, 0.0  ;;  %v1743_v50 = vmax.f32 %v2792_v53, 0.0  ;;  %v1744_v18 = vmax.f32 %v2793_v49, 0.0 }
 0x18b   :  { %v1745_v10 = vmax.f32 %v2794_v61, 0.0  ;;  %v1746_v27 = vmax.f32 %v2795_v8, 0.0  ;;  %v1747_v19 = vmax.f32 %v2796_v23, 0.0  ;;  %v1748_v30 = vmax.f32 %v2797_v25, 0.0 }
 0x18c   :  { %v1749_v42 = vmax.f32 %v2798_v24, 0.0  ;;  %v1750_v37 = vmax.f32 %v2799_v13, 0.0  ;;  %v1751_v28 = vmin.f32 %v1741_v15, 1.0  ;;  %v1722_v33 = vadd.f32 %v1712_v62, %v1670_v2 }
 0x18d   :  { %v1723_v47 = vadd.f32 %v1713_v26, %v1671_v58  ;;  %v1724_v32 = vadd.f32 %v1714_v44, %v1672_v31  ;;  %v1752_v1 = vmin.f32 %v1742_v12, 1.0  ;;  %v1725_v59 = vadd.f32 %v1715_v45, %v1673_v7 }
 0x18e   :  { %v1753_v40 = vmin.f32 %v1743_v50, 1.0  ;;  %v1754_v21 = vmin.f32 %v1744_v18, 1.0  ;;  %v1755_v4 = vmin.f32 %v1745_v10, 1.0  ;;  %v1756_v6 = vmin.f32 %v1746_v27, 1.0 }
 0x18f   :  { %v1757_v41 = vmin.f32 %v1747_v19, 1.0  ;;  %v1758_v60 = vmin.f32 %v1748_v30, 1.0  ;;  %v1761_v43 = vstv %s4083_s30  ;;  %v1759_v51 = vmin.f32 %v1749_v42, 1.0  ;;  %s4361_s30 = sld [smem:[#allocation13 + $0x5e]] }
 0x190   :  { %v1760_v53 = vmin.f32 %v1750_v37, 1.0  ;;  %v1762_v49 = vmul.f32 %v1761_v43, %v1751_v28  ;;  %v1763_v61 = vmul.f32 %v1761_v43, %v1752_v1  ;;  %v1726_v8 = vadd.f32 %v1716_v29, %v1674_v3 }
 0x191   :  { %v1727_v23 = vadd.f32 %v1717_v38, %v1675_v17  ;;  %v1728_v25 = vadd.f32 %v1718_v11, %v1676_v48  ;;  %v1729_v24 = vadd.f32 %v1719_v9, %v1677_v54  ;;  %v1764_v2 = vmul.f32 %v1761_v43, %v1753_v40 }
 0x192   :  { %v1765_v58 = vmul.f32 %v1761_v43, %v1754_v21  ;;  %v2801_v31 = vadd.f32 -13.0, %v3785_v16  ;;  %v2802_v7 = vadd.f32 -13.0, %v3787_v36  ;;  %v1766_v62 = vmul.f32 %v1761_v43, %v1755_v4 }
 0x193   :  { %v1767_v26 = vmul.f32 %v1761_v43, %v1756_v6  ;;  %v1768_v44 = vmul.f32 %v1761_v43, %v1757_v41  ;;  %v1769_v45 = vmul.f32 %v1761_v43, %v1758_v60  ;;  %v1770_v13 = vmul.f32 %v1761_v43, %v1759_v51 }
 0x194   :  { %v1771_v15 = vmul.f32 %v1761_v43, %v1760_v53  ;;  %v1772_v12 = vadd.f32 %v1762_v49, %v1720_v0  ;;  %v1773_v50 = vadd.f32 %v1763_v61, %v1721_v63  ;;  %v2803_v3 = vadd.f32 -13.0, %v3841_v52 }
 0x195   :  { %v2804_v17 = vadd.f32 -13.0, %v3853_v46  ;;  %v2805_v48 = vadd.f32 -13.0, %v3855_v39  ;;  %v2806_v54 = vadd.f32 -13.0, %v3857_v22  ;;  %v2807_v29 = vadd.f32 -13.0, %v3863_v55 }
 0x196   :  { %v2808_v38 = vadd.f32 -13.0, %v3868_v34  ;;  %v2809_v11 = vadd.f32 -13.0, %v3878_v56  ;;  %v2810_v9 = vadd.f32 -13.0, %v3889_v35  ;;  %v1793_v0 = vmax.f32 %v2801_v31, 0.0 }
 0x197   :  { %v1794_v63 = vmax.f32 %v2802_v7, 0.0  ;;  %v1795_v18 = vmax.f32 %v2803_v3, 0.0  ;;  %v1796_v10 = vmax.f32 %v2804_v17, 0.0  ;;  %v1797_v27 = vmax.f32 %v2805_v48, 0.0 }
 0x198   :  { %v1798_v19 = vmax.f32 %v2806_v54, 0.0  ;;  %v1799_v30 = vmax.f32 %v2807_v29, 0.0  ;;  %v1800_v42 = vmax.f32 %v2808_v38, 0.0  ;;  %v1801_v37 = vmax.f32 %v2809_v11, 0.0 }
 0x199   :  { %v1802_v28 = vmax.f32 %v2810_v9, 0.0  ;;  %v1803_v1 = vmin.f32 %v1793_v0, 1.0  ;;  %v1804_v40 = vmin.f32 %v1794_v63, 1.0  ;;  %v1774_v21 = vadd.f32 %v1764_v2, %v1722_v33 }
 0x19a   :  { %v1775_v4 = vadd.f32 %v1765_v58, %v1723_v47  ;;  %v4107_v6 = vadd.f32 %v1766_v62, %v1724_v32  ;;  %v4109_v41 = vadd.f32 %v1767_v26, %v1725_v59  ;;  %v4111_v60 = vadd.f32 %v1768_v44, %v1726_v8 }
 0x19b   :  { %v1805_v43 = vmin.f32 %v1795_v18, 1.0  ;;  %v1806_v51 = vmin.f32 %v1796_v10, 1.0  ;;  %v1807_v53 = vmin.f32 %v1797_v27, 1.0  ;;  %v1808_v49 = vmin.f32 %v1798_v19, 1.0 }
 0x19c   :  { %v1809_v61 = vmin.f32 %v1799_v30, 1.0  ;;  %v1810_v31 = vmin.f32 %v1800_v42, 1.0  ;;  %v1813_v7 = vstv %s4097_s7  ;;  %v1811_v3 = vmin.f32 %v1801_v37, 1.0  ;;  %s4366_s7 = sld [smem:[#allocation13 + $0x5f]] }
 0x19d   :  { %v1812_v17 = vmin.f32 %v1802_v28, 1.0  ;;  %v1814_v48 = vmul.f32 %v1813_v7, %v1803_v1  ;;  %v1815_v54 = vmul.f32 %v1813_v7, %v1804_v40  ;;  %v1779_v29 = vadd.f32 %v1769_v45, %v1727_v23 }
 0x19e   :  { %v1780_v33 = vadd.f32 %v1770_v13, %v1728_v25  ;;  %v1781_v47 = vadd.f32 %v1771_v15, %v1729_v24  ;;  %v2812_v32 = vadd.f32 -14.0, %v3785_v16  ;;  %v1816_v59 = vmul.f32 %v1813_v7, %v1805_v43 }
 0x19f   :  { %v1817_v2 = vmul.f32 %v1813_v7, %v1806_v51  ;;  %v2813_v8 = vadd.f32 -14.0, %v3787_v36  ;;  %v2814_v58 = vadd.f32 -14.0, %v3841_v52  ;;  %v1818_v62 = vmul.f32 %v1813_v7, %v1807_v53 }
 0x1a0   :  { %v1819_v26 = vmul.f32 %v1813_v7, %v1808_v49  ;;  %v1820_v44 = vmul.f32 %v1813_v7, %v1809_v61  ;;  %v1821_v38 = vmul.f32 %v1813_v7, %v1810_v31  ;;  %v1822_v11 = vmul.f32 %v1813_v7, %v1811_v3 }
 0x1a1   :  { %v1823_v9 = vmul.f32 %v1813_v7, %v1812_v17  ;;  %v1824_v0 = vadd.f32 %v1814_v48, %v1772_v12  ;;  %v1825_v23 = vadd.f32 %v1815_v54, %v1773_v50  ;;  %v2815_v25 = vadd.f32 -14.0, %v3853_v46 }
 0x1a2   :  { %v2816_v24 = vadd.f32 -14.0, %v3855_v39  ;;  %v2817_v45 = vadd.f32 -14.0, %v3857_v22  ;;  %v2818_v13 = vadd.f32 -14.0, %v3863_v55  ;;  %v2819_v15 = vadd.f32 -14.0, %v3868_v34 }
 0x1a3   :  { %v2820_v63 = vadd.f32 -14.0, %v3878_v56  ;;  %v2821_v18 = vadd.f32 -14.0, %v3889_v35  ;;  %v1845_v10 = vmax.f32 %v2812_v32, 0.0  ;;  %v1846_v27 = vmax.f32 %v2813_v8, 0.0 }
 0x1a4   :  { %v1847_v19 = vmax.f32 %v2814_v58, 0.0  ;;  %v1848_v30 = vmax.f32 %v2815_v25, 0.0  ;;  %v1849_v12 = vmax.f32 %v2816_v24, 0.0  ;;  %v1850_v50 = vmax.f32 %v2817_v45, 0.0 }
 0x1a5   :  { %v1851_v42 = vmax.f32 %v2818_v13, 0.0  ;;  %v1852_v37 = vmax.f32 %v2819_v15, 0.0  ;;  %v1853_v28 = vmax.f32 %v2820_v63, 0.0  ;;  %v1826_v1 = vadd.f32 %v1816_v59, %v1774_v21 }
 0x1a6   :  { %v1854_v40 = vmax.f32 %v2821_v18, 0.0  ;;  %v1855_v43 = vmin.f32 %v1845_v10, 1.0  ;;  %v1856_v51 = vmin.f32 %v1846_v27, 1.0  ;;  %v1827_v53 = vadd.f32 %v1817_v2, %v1775_v4 }
 0x1a7   :  { %v1857_v49 = vmin.f32 %v1847_v19, 1.0  ;;  %v1858_v61 = vmin.f32 %v1848_v30, 1.0  ;;  %v1859_v31 = vmin.f32 %v1849_v12, 1.0  ;;  %v1860_v7 = vmin.f32 %v1850_v50, 1.0 }
 0x1a8   :  { %v1861_v3 = vmin.f32 %v1851_v42, 1.0  ;;  %v1862_v17 = vmin.f32 %v1852_v37, 1.0  ;;  %v1865_v48 = vstv %s4117_s8  ;;  %v1863_v54 = vmin.f32 %v1853_v28, 1.0  ;;  %s4370_s8 = sld [smem:[#allocation13 + $0x60]] }
 0x1a9   :  { %v1864_v32 = vmin.f32 %v1854_v40, 1.0  ;;  %v1866_v8 = vmul.f32 %v1865_v48, %v1855_v43  ;;  %v1867_v58 = vmul.f32 %v1865_v48, %v1856_v51  ;;  %v1828_v25 = vadd.f32 %v1818_v62, %v4107_v6 }
 0x1aa   :  { %v1829_v24 = vadd.f32 %v1819_v26, %v4109_v41  ;;  %v1830_v21 = vadd.f32 %v1820_v44, %v4111_v60  ;;  %v1831_v59 = vadd.f32 %v1821_v38, %v1779_v29  ;;  %v1832_v45 = vadd.f32 %v1822_v11, %v1780_v33 }
 0x1ab   :  { %v1833_v4 = vadd.f32 %v1823_v9, %v1781_v47  ;;  %v1868_v2 = vmul.f32 %v1865_v48, %v1857_v49  ;;  %v1869_v13 = vmul.f32 %v1865_v48, %v1858_v61  ;;  %v1870_v15 = vmul.f32 %v1865_v48, %v1859_v31 }
 0x1ac   :  { %v1871_v63 = vmul.f32 %v1865_v48, %v1860_v7  ;;  %v1872_v18 = vmul.f32 %v1865_v48, %v1861_v3  ;;  %v1873_v10 = vmul.f32 %v1865_v48, %v1862_v17  ;;  %v1874_v27 = vmul.f32 %v1865_v48, %v1863_v54 }
 0x1ad   :  { %v1875_v19 = vmul.f32 %v1865_v48, %v1864_v32  ;;  %v1876_v30 = vadd.f32 %v1866_v8, %v1824_v0  ;;  %v1877_v12 = vadd.f32 %v1867_v58, %v1825_v23  ;;  %v2823_v6 = vadd.f32 -15.0, %v3785_v16 }
 0x1ae   :  { %v2824_v41 = vadd.f32 -15.0, %v3787_v36  ;;  %v2825_v60 = vadd.f32 -15.0, %v3841_v52  ;;  %v2826_v29 = vadd.f32 -15.0, %v3853_v46  ;;  %v2827_v33 = vadd.f32 -15.0, %v3855_v39 }
 0x1af   :  { %v2828_v47 = vadd.f32 -15.0, %v3857_v22  ;;  %v2829_v62 = vadd.f32 -15.0, %v3863_v55  ;;  %v2830_v26 = vadd.f32 -15.0, %v3868_v34  ;;  %v2831_v44 = vadd.f32 -15.0, %v3878_v56 }
 0x1b0   :  { %v2832_v38 = vadd.f32 -15.0, %v3889_v35  ;;  %v1897_v11 = vmax.f32 %v2823_v6, 0.0  ;;  %v1898_v16 = vmax.f32 %v2824_v41, 0.0  ;;  %v1899_v9 = vmax.f32 %v2825_v60, 0.0 }
 0x1b1   :  { %v1900_v36 = vmax.f32 %v2826_v29, 0.0  ;;  %v1901_v0 = vmax.f32 %v2827_v33, 0.0  ;;  %v1902_v52 = vmax.f32 %v2828_v47, 0.0  ;;  %v1878_v46 = vadd.f32 %v1868_v2, %v1826_v1 }
 0x1b2   :  { %v1903_v23 = vmax.f32 %v2829_v62, 0.0  ;;  %v1904_v39 = vmax.f32 %v2830_v26, 0.0  ;;  %v1905_v50 = vmax.f32 %v2831_v44, 0.0  ;;  %v1907_v22 = vmin.f32 %v1897_v11, 1.0 }
 0x1b3   :  { %v1908_v42 = vmin.f32 %v1898_v16, 1.0  ;;  %v1909_v55 = vmin.f32 %v1899_v9, 1.0  ;;  %v1910_v37 = vmin.f32 %v1900_v36, 1.0  ;;  %v1879_v34 = vadd.f32 %v1869_v13, %v1827_v53 }
 0x1b4   :  { %v1880_v28 = vadd.f32 %v1870_v15, %v1828_v25  ;;  %v1906_v56 = vmax.f32 %v2832_v38, 0.0  ;;  %v1911_v40 = vmin.f32 %v1901_v0, 1.0  ;;  %v1881_v35 = vadd.f32 %v1871_v63, %v1829_v24 }
 0x1b5   :  { %v1882_v43 = vadd.f32 %v1872_v18, %v1830_v21  ;;  %v1912_v51 = vmin.f32 %v1902_v52, 1.0  ;;  %v1917_v49 = vstv %s4130_s9  ;;  %v1913_v61 = vmin.f32 %v1903_v23, 1.0  ;;  %s4375_s9 = sld [smem:[#allocation13 + $0x61]] }
 0x1b6   :  { %v1914_v31 = vmin.f32 %v1904_v39, 1.0  ;;  %v1918_v7 = vmul.f32 %v1917_v49, %v1907_v22  ;;  %v1919_v3 = vmul.f32 %v1917_v49, %v1908_v42  ;;  %v1883_v1 = vadd.f32 %v1873_v10, %v1831_v59 }
 0x1b7   :  { %v1915_v17 = vmin.f32 %v1905_v50, 1.0  ;;  %v1920_v48 = vmul.f32 %v1917_v49, %v1909_v55  ;;  %v1921_v54 = vmul.f32 %v1917_v49, %v1910_v37  ;;  %v1916_v32 = vmin.f32 %v1906_v56, 1.0 }
 0x1b8   :  { %v1922_v8 = vmul.f32 %v1917_v49, %v1911_v40  ;;  %v1928_v58 = vadd.f32 %v1918_v7, %v1876_v30  ;;  %v1929_v2 = vadd.f32 %v1919_v3, %v1877_v12  ;;  %v1884_v53 = vadd.f32 %v1874_v27, %v1832_v45 }
 0x1b9   :  { %v1923_v25 = vmul.f32 %v1917_v49, %v1912_v51  ;;  %v1930_v13 = vadd.f32 %v1920_v48, %v1878_v46  ;;  %v1931_v15 = vadd.f32 %v1921_v54, %v1879_v34  ;;  %v1885_v24 = vadd.f32 %v1875_v19, %v1833_v4 }
 0x1ba   :  { %v1924_v21 = vmul.f32 %v1917_v49, %v1913_v61  ;;  %v1925_v63 = vmul.f32 %v1917_v49, %v1914_v31  ;;  %v1932_v18 = vadd.f32 %v1922_v8, %v1880_v28  ;;  %v2095_v10 = vmul.f32 %v3874_v57, %v3874_v57 }
 0x1bb   :  { %v1933_v6 = vadd.f32 %v1923_v25, %v1881_v35  ;;  %v1938_v41 = vmul.f32 %v1930_v13, %v1928_v58  ;;  %v1939_v59 = vmul.f32 %v1931_v15, %v1929_v2  ;;  %v1926_v30 = vmul.f32 %v1917_v49, %v1915_v17 }
 0x1bc   :  { %v1927_v12 = vmul.f32 %v1917_v49, %v1916_v32  ;;  %v1934_v45 = vadd.f32 %v1924_v21, %v1882_v43  ;;  %v1935_v27 = vadd.f32 %v1925_v63, %v1883_v1  ;;  %v4151_v60 = vmul.f32 16.0, %v2095_v10 }
 0x1bd   :  { %v1940_v4 = vmul.f32 %v1938_v41, %v1932_v18  ;;  %v1941_v19 = vmul.f32 %v1939_v59, %v1933_v6  ;;  %v1936_v29 = vadd.f32 %v1926_v30, %v1884_v53  ;;  %v2102_v0 = vstv %s4143_s10  ;;  %s4378_s10 = sld [smem:[#allocation13 + $0x62]] }
 0x1be   :  { %v1937_v33 = vadd.f32 %v1927_v12, %v1885_v24  ;;  %v2099_v26 = vmax.f32 %v4151_v60, 0.0  ;;  %v2834_v44 = vadd.f32 -1.0, %v4151_v60  ;;  %v2836_v38 = vadd.f32 -2.0, %v4151_v60 }
 0x1bf   :  { %v1942_v47 = vmul.f32 %v1940_v4, %v1934_v45  ;;  %v1943_v62 = vmul.f32 %v1941_v19, %v1935_v27  ;;  %v2838_v36 = vadd.f32 -3.0, %v4151_v60  ;;  %v2098_v37 = vstv %s4147_s11  ;;  %s4383_s11 = sld [smem:[#allocation13 + $0x63]] }
 0x1c0   :  { %v2100_v9 = vmin.f32 %v2099_v26, 1.0  ;;  %v2106_v52 = vmax.f32 %v2834_v44, 0.0  ;;  %v2113_v46 = vmax.f32 %v2836_v38, 0.0  ;;  %v2109_v34 = vstv %s4149_s1  ;;  %s4387_s1 = sld [smem:[#allocation13 + $0x64]] }
 0x1c1   :  { %v1944_v11 = vmul.f32 %v1942_v47, %v1936_v29  ;;  %v1945_v16 = vmul.f32 %v1943_v62, %v1937_v33  ;;  %v2120_v35 = vmax.f32 %v2838_v36, 0.0  ;;  %v2116_v1 = vstv %s4154_s12  ;;  %s2897_s12 = sld [smem:[#allocation13 + $0x65]] }
 0x1c2   :  { %v2103_v40 = vmul.f32 %v2102_v0, %v2100_v9  ;;  %v2107_v7 = vmin.f32 %v2106_v52, 1.0  ;;  %v2114_v3 = vmin.f32 %v2113_v46, 1.0  ;;  %v2840_v21 = vadd.f32 -4.0, %v4151_v60 }
 0x1c3   :  { %v1946_v23 = vsel %vm4490_vm8, %v1944_v11, 0.0  ;;  %v1969_v39 = vrot.slane %v1944_v11, 4  ;;  %v1993_v50 = vsel %vm4490_vm8, %v1945_v16, 0.0  ;;  %v2016_v22 = vrot.slane %v1945_v16, 4 }
 0x1c4   :  { %v1947_v42 = vrot.slane %v1946_v23, 4  ;;  %v1994_v55 = vrot.slane %v1993_v50, 4  ;;  %v2104_v31 = vadd.f32 %v2103_v40, %v2098_v37  ;;  %v2110_v8 = vmul.f32 %v2109_v34, %v2107_v7 }
 0x1c5   :  { %v1971_v28 = vsel %vm4490_vm8, %v1969_v39, 0.0  ;;  %v2018_v56 = vsel %vm4490_vm8, %v2016_v22, 0.0  ;;  %v2117_v15 = vmul.f32 %v2116_v1, %v2114_v3  ;;  %v2121_v24 = vmin.f32 %v2120_v35, 1.0 }
 0x1c6   :  { %v1948_v43 = vadd.f32 %v1947_v42, %v1946_v23  ;;  %v1972_v51 = vrot.slane %v1971_v28, 4  ;;  %v1995_v49 = vadd.f32 %v1994_v55, %v1993_v50  ;;  %v2019_v61 = vrot.slane %v2018_v56, 4 }
 0x1c7   :  { %v2111_v13 = vadd.f32 %v2110_v8, %v2104_v31  ;;  %v2123_v59 = vstv %s4166_s13  ;;  %v2127_v10 = vmax.f32 %v2840_v21, 0.0  ;;  %v2842_v30 = vadd.f32 -5.0, %v4151_v60  ;;  %s4398_s13 = sld [smem:[#allocation13 + $0x78]] }
 0x1c8   :  { %v1949_v17 = vrot.slane %v1948_v43, 2  ;;  %v1973_v48 = vadd.f32 %v1972_v51, %v1971_v28  ;;  %v1996_v54 = vrot.slane %v1995_v49, 2  ;;  %v2020_v32 = vadd.f32 %v2019_v61, %v2018_v56 }
 0x1c9   :  { %v2118_v29 = vadd.f32 %v2117_v15, %v2111_v13  ;;  %v2124_v33 = vmul.f32 %v2123_v59, %v2121_v24  ;;  %v2128_v62 = vmin.f32 %v2127_v10, 1.0  ;;  %v2130_v26 = vstv %s4169_s14  ;;  %s4400_s14 = sld [smem:[#allocation13 + $0x77]] }
 0x1ca   :  { %v1950_v58 = vadd.f32 %v1949_v17, %v1948_v43  ;;  %v1974_v2 = vrot.slane %v1973_v48, 2  ;;  %v1997_v53 = vadd.f32 %v1996_v54, %v1995_v49  ;;  %v2021_v25 = vrot.slane %v2020_v32, 2 }
 0x1cb   :  { %v2134_v11 = vmax.f32 %v2842_v30, 0.0  ;;  %v2844_v16 = vadd.f32 -6.0, %v4151_v60  ;;  %v2137_v0 = vstv %s4172_s15  ;;  %v2125_v23 = vadd.f32 %v2124_v33, %v2118_v29  ;;  %s4404_s15 = sld [smem:[#allocation13 + $0x79]] }
 0x1cc   :  { %v1951_v63 = vrot.slane %v1950_v58, 1  ;;  %v1975_v18 = vadd.f32 %v1974_v2, %v1973_v48  ;;  %v1998_v6 = vrot.slane %v1997_v53, 1  ;;  %v2022_v41 = vadd.f32 %v2021_v25, %v2020_v32 }
 0x1cd   :  { %v2131_v34 = vmul.f32 %v2130_v26, %v2128_v62  ;;  %v2135_v28 = vmin.f32 %v2134_v11, 1.0  ;;  %v2141_v56 = vmax.f32 %v2844_v16, 0.0  ;;  %v2144_v49 = vstv %s4180_s3  ;;  %s4406_s3 = sld [smem:[#allocation13 + $0x7a]] }
 0x1ce   :  { %v4176_v12 = vadd.f32 %v1951_v63, %v1950_v58  ;;  %v1976_v45 = vrot.slane %v1975_v18, 1  ;;  %v4178_v27 = vadd.f32 %v1998_v6, %v1997_v53  ;;  %v2023_v4 = vrot.slane %v2022_v41, 1 }
 0x1cf   :  { %v2132_v7 = vadd.f32 %v2131_v34, %v2125_v23  ;;  %v2138_v3 = vmul.f32 %v2137_v0, %v2135_v28  ;;  %v2142_v48 = vmin.f32 %v2141_v56, 1.0  ;;  %v2846_v54 = vadd.f32 -7.0, %v4151_v60 }
 0x1d0   :  { %2983 = vrcp.f32 %v4176_v12  ;;  %v1964_v19 = vand.u32 2147483648, %v4176_v12  ;;  %v4184_v47 = vadd.f32 %v1976_v45, %v1975_v18  ;;  %v2011_v44 = vand.u32 2147483648, %v4178_v27 }
 0x1d1   :  { %2985 = vrcp.f32 %v4178_v27  ;;  %v4191_v38 = vadd.f32 %v2023_v4, %v2022_v41  ;;  %v1962_v9 = vand.u32 2147483647, %v4176_v12  ;;  %v2009_v46 = vand.u32 2147483647, %v4178_v27 }
 0x1d2   :  { %2987 = vrcp.f32 %v4184_v47  ;;  %v1989_v36 = vand.u32 2147483648, %v4184_v47  ;;  %v4198_v52 = vor.u32 1.1754944e-38, %v1964_v19  ;;  %vm1958_vm13 = vweird.f32 %v4176_v12 }
 0x1d3   :  { %2989 = vrcp.f32 %v4191_v38  ;;  %v1987_v39 = vand.u32 2147483647, %v4184_v47  ;;  %v4208_v22 = vor.u32 1.1754944e-38, %v2011_v44  ;;  %v2036_v42 = vand.u32 2147483648, %v4191_v38 }
 0x1d4   :  { %v4206_v50 = vor.u32 1.1754944e-38, %v1989_v36  ;;  %vm2005_vm14 = vweird.f32 %v4178_v27  ;;  %v2034_v37 = vand.u32 2147483647, %v4191_v38  ;;  %vm4214_vm0 = vcmp.eq.f32.partialorder %v1962_v9, 8.507059e+37 }
 0x1d5   :  { %v4218_v51 = vor.u32 1.1754944e-38, %v2036_v42  ;;  %vm1983_vm1 = vweird.f32 %v4184_v47  ;;  %vm4225_vm3 = vcmp.eq.f32.partialorder %v2009_v46, 8.507059e+37  ;;  %vm2030_vm4 = vweird.f32 %v4191_v38 }
 0x1d6   :  { %v2984_v55 = vpop.eup %2983  ;;  %v2151_v32 = vstv %s4188_s16  ;;  %vm4233_vm6 = vcmp.eq.f32.partialorder %v1987_v39, 8.507059e+37  ;;  %v2139_v25 = vadd.f32 %v2138_v3, %v2132_v7  ;;  %vm4240_vm11 = vcmp.eq.f32.partialorder %v2034_v37, 8.507059e+37  ;;  %s4409_s16 = sld [smem:[#allocation13 + $0x7b]] }
 0x1d7   :  { %v2986_v40 = vpop.eup %2985  ;;  %v1954_v35 = vmul.f32 %v2984_v55, %v4176_v12  ;;  %vm1959_vm15 = vweird.f32 %v2984_v55  ;;  %v2145_v21 = vmul.f32 %v2144_v49, %v2142_v48  ;;  %v2148_v6 = vmax.f32 %v2846_v54, 0.0 }
 0x1d8   :  { %v2001_v61 = vmul.f32 %v2986_v40, %v4178_v27  ;;  %vm2006_vm2 = vweird.f32 %v2986_v40  ;;  %v2988_v1 = vpop.eup %2987  ;;  %v2848_v41 = vadd.f32 -8.0, %v4151_v60  ;;  %v2158_v45 = vstv %s4202_s17  ;;  %vm1960_vm8 = vmor %vm1958_vm13, %vm1959_vm15  ;;  %s4418_s17 = sld [smem:[#allocation13 + $0x7c]] }
 0x1d9   :  { %v1955_v17 = vsub.f32 1.0, %v1954_v35  ;;  %v2990_v8 = vpop.eup %2989  ;;  %v1979_v58 = vmul.f32 %v2988_v1, %v4184_v47  ;;  %vm1984_vm5 = vweird.f32 %v2988_v1  ;;  %v2146_v30 = vadd.f32 %v2145_v21, %v2139_v25  ;;  %vm2007_vm12 = vmor %vm2005_vm14, %vm2006_vm2 }
 0x1da   :  { %v2002_v53 = vsub.f32 1.0, %v2001_v61  ;;  %v2026_v15 = vmul.f32 %v2990_v8, %v4191_v38  ;;  %vm2031_vm10 = vweird.f32 %v2990_v8  ;;  %v2149_v29 = vmin.f32 %v2148_v6, 1.0 }
 0x1db   :  { %v1956_v13 = vmul.f32 %v2984_v55, %v1955_v17  ;;  %v1980_v63 = vsub.f32 1.0, %v1979_v58  ;;  %v2155_v33 = vmax.f32 %v2848_v41, 0.0  ;;  %v2850_v44 = vadd.f32 -9.0, %v4151_v60  ;;  %vm2032_vm13 = vmor %vm2030_vm4, %vm2031_vm10 }
 0x1dc   :  { %v2003_v18 = vmul.f32 %v2986_v40, %v2002_v53  ;;  %v2027_v10 = vsub.f32 1.0, %v2026_v15  ;;  %v2165_v11 = vstv %s4221_s18  ;;  %v2152_v36 = vmul.f32 %v2151_v32, %v2149_v29  ;;  %s4424_s18 = sld [smem:[#allocation13 + $0x7d]] }
 0x1dd   :  { %v1957_v59 = vadd.f32 %v2984_v55, %v1956_v13  ;;  %v1981_v4 = vmul.f32 %v2988_v1, %v1980_v63  ;;  %v2156_v46 = vmin.f32 %v2155_v33, 1.0  ;;  %v2162_v23 = vmax.f32 %v2850_v44, 0.0 }
 0x1de   :  { %v2004_v19 = vadd.f32 %v2986_v40, %v2003_v18  ;;  %v2028_v26 = vmul.f32 %v2990_v8, %v2027_v10  ;;  %v2852_v42 = vadd.f32 -10.0, %v4151_v60  ;;  %v2179_v49 = vstv %s4246_s0  ;;  %s4434_s0 = sld [smem:[#allocation13 + $0x7f]] }
 0x1df   :  { %v1961_v62 = vsel %vm1960_vm8, %v2984_v55, %v1957_v59  ;;  %v1982_v12 = vadd.f32 %v2988_v1, %v1981_v4  ;;  %vm1985_vm8 = vmor %vm1983_vm1, %vm1984_vm5  ;;  %v2172_v55 = vstv %s4237_s19  ;;  %v2159_v37 = vmul.f32 %v2158_v45, %v2156_v46  ;;  %s4430_s19 = sld [smem:[#allocation13 + $0x7e]] }
 0x1e0   :  { %v4259_v16 = vsel %vm4214_vm0, %v4198_v52, %v1961_v62  ;;  %v2008_v9 = vsel %vm2007_vm12, %v2986_v40, %v2004_v19  ;;  %v2029_v0 = vadd.f32 %v2990_v8, %v2028_v26  ;;  %v2153_v52 = vadd.f32 %v2152_v36, %v2146_v30 }
 0x1e1   :  { %v4269_v27 = vsel %vm4225_vm3, %v4208_v22, %v2008_v9  ;;  %v1986_v39 = vsel %vm1985_vm8, %v2988_v1, %v1982_v12  ;;  %v2163_v34 = vmin.f32 %v2162_v23, 1.0  ;;  %v2169_v56 = vmax.f32 %v2852_v42, 0.0 }
 0x1e2   :  { %v4279_v47 = vsel %vm4233_vm6, %v4206_v50, %v1986_v39  ;;  %v2033_v22 = vsel %vm2032_vm13, %v2990_v8, %v2029_v0  ;;  %v2854_v40 = vadd.f32 -11.0, %v4151_v60  ;;  %v2160_v35 = vadd.f32 %v2159_v37, %v2153_v52 }
 0x1e3   :  { %v4284_v28 = vsel %vm4240_vm11, %v4218_v51, %v2033_v22  ;;  %v2041_v38 = vsel %vm2040_vm7, %v4259_v16, %v4279_v47  ;;  %v2166_v43 = vmul.f32 %v2165_v11, %v2163_v34  ;;  %vm4521_vm14 = vcmask 1042432  }
 0x1e4   :  { %v2043_v50 = vsel %vm2042_vm9, %v2041_v38, %v4269_v27  ;;  %v2170_v61 = vmin.f32 %v2169_v56, 1.0  ;;  %v2176_v31 = vmax.f32 %v2854_v40, 0.0  ;;  %v2856_v7 = vadd.f32 -12.0, %v4151_v60 }
 0x1e5   :  { %v4297_v51 = vsel %vm4521_vm14, %v2043_v50, %v4284_v28  ;;  %v2167_v48 = vadd.f32 %v2166_v43, %v2160_v35  ;;  %v2186_v58 = vstv %s4261_s20  ;;  %vm4522_vm15 = vcmask 1043456   ;;  %s4439_s20 = sld [smem:[#allocation13 + $0x80]] }
 0x1e6   :  { %v2046_v3 = vmul.f32 %v4297_v51, %v3778_v14  ;;  %v2057_v1 = vrot.slane %v4297_v51, 4  ;;  %v2072_v17 = vmul.f32 %v4297_v51, %v3781_v20  ;;  %v2173_v54 = vmul.f32 %v2172_v55, %v2170_v61  ;;  %vm4523_vm0 = vmmov %vm4522_vm15 }
 0x1e7   :  { %v2177_v32 = vmin.f32 %v2176_v31, 1.0  ;;  %v2183_v8 = vmax.f32 %v2856_v7, 0.0  ;;  %v2858_v59 = vadd.f32 -13.0, %v4151_v60  ;;  %vm4524_vm1 = vmmov %vm4523_vm0  ;;  %v2860_v9 = vadd.f32 -14.0, %v4151_v60 }
 0x1e8   :  { %v2047_v2 = vsel %vm4522_vm15, %v2046_v3, 0.0  ;;  %v2059_v53 = vmul.f32 %v2057_v1, %v3778_v14  ;;  %v2073_v25 = vsel %vm4523_vm0, %v2072_v17, 0.0  ;;  %v2082_v13 = vmul.f32 %v2057_v1, %v3781_v20  ;;  %vm4525_vm2 = vmmov %vm4523_vm0 }
 0x1e9   :  { %v2048_v15 = vrot.slane %v2047_v2, 4  ;;  %v2074_v24 = vrot.slane %v2073_v25, 4  ;;  %v2174_v21 = vadd.f32 %v2173_v54, %v2167_v48  ;;  %v2180_v63 = vmul.f32 %v2179_v49, %v2177_v32  ;;  %vm4526_vm3 = vmmov %vm4523_vm0 }
 0x1ea   :  { %v2061_v18 = vrot.slane %v2059_v53, 4  ;;  %v2084_v6 = vrot.slane %v2082_v13, 4  ;;  %v2184_v41 = vmin.f32 %v2183_v8, 1.0  ;;  %v2193_v14 = vstv %s4290_s21  ;;  %vm4527_vm7 = vmmov %vm4523_vm0  ;;  %s4445_s21 = sld [smem:[#allocation13 + $0x81]] }
 0x1eb   :  { %v2049_v10 = vadd.f32 %v2048_v15, %v2047_v2  ;;  %v2075_v30 = vadd.f32 %v2074_v24, %v2073_v25  ;;  %v2181_v45 = vadd.f32 %v2180_v63, %v2174_v21  ;;  %v2190_v29 = vmax.f32 %v2858_v59, 0.0 }
 0x1ec   :  { %v2063_v4 = vsel %vm4524_vm1, %v2061_v18, 0.0  ;;  %v2086_v20 = vsel %vm4525_vm2, %v2084_v6, 0.0  ;;  %v2187_v19 = vmul.f32 %v2186_v58, %v2184_v41  ;;  %v2200_v36 = vstv %s4305_s22  ;;  %s4449_s22 = sld [smem:[#allocation13 + $0x82]] }
 0x1ed   :  { %v2050_v33 = vrot.slane %v2049_v10, 2  ;;  %v2064_v62 = vrot.slane %v2063_v4, 4  ;;  %v2076_v26 = vrot.slane %v2075_v30, 2  ;;  %v2087_v44 = vrot.slane %v2086_v20, 4 }
 0x1ee   :  { %v2188_v11 = vadd.f32 %v2187_v19, %v2181_v45  ;;  %v2191_v12 = vmin.f32 %v2190_v29, 1.0  ;;  %v2197_v42 = vmax.f32 %v2860_v9, 0.0  ;;  %v2862_v55 = vadd.f32 -15.0, %v4151_v60 }
 0x1ef   :  { %v2051_v0 = vadd.f32 %v2050_v33, %v2049_v10  ;;  %v2065_v46 = vadd.f32 %v2064_v62, %v2063_v4  ;;  %v2077_v23 = vadd.f32 %v2076_v26, %v2075_v30  ;;  %v2088_v39 = vadd.f32 %v2087_v44, %v2086_v20 }
 0x1f0   :  { %v2194_v52 = vmul.f32 %v2193_v14, %v2191_v12  ;;  %v2207_v22 = vstv %s4312_s2  ;;  %v2198_v50 = vmin.f32 %v2197_v42, 1.0  ;;  %v2204_v35 = vmax.f32 %v2862_v55, 0.0  ;;  %s4453_s2 = sld [smem:[#allocation13 + $0x83]] }
 0x1f1   :  { %v2052_v37 = vrot.slane %v2051_v0, 1  ;;  %v2066_v34 = vrot.slane %v2065_v46, 2  ;;  %v2078_v38 = vrot.slane %v2077_v23, 1  ;;  %v2089_v56 = vrot.slane %v2088_v39, 2 }
 0x1f2   :  { %v2195_v40 = vadd.f32 %v2194_v52, %v2188_v11  ;;  %v4329_v43 = vmul.f32 16.0, %v3874_v57  ;;  %v2201_v7 = vmul.f32 %v2200_v36, %v2198_v50  ;;  %v2205_v3 = vmin.f32 %v2204_v35, 1.0 }
 0x1f3   :  { %v2053_v49 = vadd.f32 %v2052_v37, %v2051_v0  ;;  %v2067_v61 = vadd.f32 %v2066_v34, %v2065_v46  ;;  %v2079_v31 = vadd.f32 %v2078_v38, %v2077_v23  ;;  %v2090_v60 = vadd.f32 %v2089_v56, %v2088_v39 }
 0x1f4   :  { %v2257_v1 = vmax.f32 %v4329_v43, 0.0  ;;  %v2202_v32 = vadd.f32 %v2201_v7, %v2195_v40  ;;  %v2208_v8 = vmul.f32 %v2207_v22, %v2205_v3  ;;  %v2260_v2 = vstv %s4320_s23  ;;  %s4457_s23 = sld [smem:[#allocation13 + $0x84]] }
 0x1f5   :  { %v2054_v17 = vmul.f32 %v2053_v49, %v4259_v16  ;;  %v2068_v48 = vrot.slane %v2067_v61, 1  ;;  %v2080_v57 = vmul.f32 %v2079_v31, %v4269_v27  ;;  %v2091_v54 = vrot.slane %v2090_v60, 1 }
 0x1f6   :  { %v2258_v58 = vmin.f32 %v2257_v1, 1.0  ;;  %v2256_v13 = vstv %s4322_s4  ;;  %v2868_v15 = vadd.f32 -1.0, %v4329_v43  ;;  %v2209_v24 = vadd.f32 %v2208_v8, %v2202_v32  ;;  %s4461_s4 = sld [smem:[#allocation13 + $0x85]] }
 0x1f7   :  { %v2069_v53 = vadd.f32 %v2068_v48, %v2067_v61  ;;  %v2092_v25 = vadd.f32 %v2091_v54, %v2090_v60  ;;  %v2267_v63 = vstv %s4326_s5  ;;  %v2870_v16 = vadd.f32 -2.0, %v4329_v43  ;;  %s4466_s5 = sld [smem:[#allocation13 + $0x86]] }
 0x1f8   :  { %v2261_v21 = vmul.f32 %v2260_v2, %v2258_v58  ;;  %v2264_v6 = vmax.f32 %v2868_v15, 0.0  ;;  %v2872_v41 = vadd.f32 -3.0, %v4329_v43  ;;  %v2210_v59 = vmul.f32 %v2209_v24, %v4297_v51 }
 0x1f9   :  { %v2070_v27 = vmul.f32 %v2069_v53, %v4279_v47  ;;  %v2093_v18 = vmul.f32 %v2092_v25, %v4284_v28  ;;  %v2271_v30 = vmax.f32 %v2870_v16, 0.0  ;;  %v2274_v45 = vstv %s4331_s24  ;;  %s4470_s24 = sld [smem:[#allocation13 + $0x87]] }
 0x1fa   :  { %v2262_v10 = vadd.f32 %v2261_v21, %v2256_v13  ;;  %v2265_v4 = vmin.f32 %v2264_v6, 1.0  ;;  %v2278_v20 = vmax.f32 %v2872_v41, 0.0  ;;  %v2874_v19 = vadd.f32 -4.0, %v4329_v43 }
 0x1fb   :  { %v2071_v14 = vadd.f32 %v2070_v27, %v2054_v17  ;;  %v2211_v47 = vsel %vm4526_vm3, %v2210_v59, 0.0  ;;  %v2272_v29 = vmin.f32 %v2271_v30, 1.0  ;;  %v2281_v28 = vstv %s4334_s25  ;;  %s3168_s25 = smov [#allocation14]  }
 0x1fc   :  { %v2876_v33 = vadd.f32 -5.0, %v4329_v43  ;;  %v2212_v62 = vrot.slane %v2211_v47, 4  ;;  %v2268_v26 = vmul.f32 %v2267_v63, %v2265_v4  ;;  %v2279_v44 = vmin.f32 %v2278_v20, 1.0 }
 0x1fd   :  { %v2081_v51 = vadd.f32 %v2080_v57, %v2071_v14  ;;  %v2275_v11 = vmul.f32 %v2274_v45, %v2272_v29  ;;  %v2285_v12 = vmax.f32 %v2874_v19, 0.0  ;;  %v2288_v9 = vstv %s4339_s26  ;;  %s2500_s26 = sshll.u32 %s3168_s25, 4  ;;  %s2501_s26 = int_to_ptr.vmem [resolvable:$true] %s2500_s26 }
 0x1fe   :  { %v2292_v36 = vmax.f32 %v2876_v33, 0.0  ;;  %v2213_v46 = vadd.f32 %v2212_v62, %v2211_v47  ;;  %v2269_v23 = vadd.f32 %v2268_v26, %v2262_v10  ;;  %v2282_v39 = vmul.f32 %v2281_v28, %v2279_v44 }
 0x1ff   :  { %v2094_v0 = vadd.f32 %v2093_v18, %v2081_v51  ;;  %v2286_v52 = vmin.f32 %v2285_v12, 1.0  ;;  %v2295_v55 = vstv %s4345_s27  ;;  %v2878_v22 = vadd.f32 -6.0, %v4329_v43 }
 0x200   :  { %v2293_v42 = vmin.f32 %v2292_v36, 1.0  ;;  %v2214_v37 = vrot.slane %v2213_v46, 2  ;;  %v2276_v34 = vadd.f32 %v2275_v11, %v2269_v23  ;;  %v2880_v38 = vadd.f32 -7.0, %v4329_v43 }
 0x201   :  { %v2289_v56 = vmul.f32 %v2288_v9, %v2286_v52  ;;  %v2299_v40 = vmax.f32 %v2878_v22, 0.0  ;;  %v2302_v50 = vstv %s4352_s28  ;;  %v2882_v35 = vadd.f32 -8.0, %v4329_v43 }
 0x202   :  { %v2215_v49 = vadd.f32 %v2214_v37, %v2213_v46  ;;  %v2283_v61 = vadd.f32 %v2282_v39, %v2276_v34  ;;  %v2296_v31 = vmul.f32 %v2295_v55, %v2293_v42  ;;  %v2306_v60 = vmax.f32 %v2880_v38, 0.0 }
 0x203   :  { %v2300_v7 = vmin.f32 %v2299_v40, 1.0  ;;  %v2309_v3 = vstv %s4358_s29  ;;  %v2313_v1 = vmax.f32 %v2882_v35, 0.0  ;;  %v2884_v17 = vadd.f32 -9.0, %v4329_v43  ;;  %s2502_s29 = sshll.u32 %s4489_s6, 4  ;;  %s2503_s29 = int_to_ptr.hbm [resolvable:$true] %s2502_s29 }
 0x204   :  { %v2216_v48 = vrot.slane %v2215_v49, 1  ;;  %v2290_v57 = vadd.f32 %v2289_v56, %v2283_v61  ;;  %v2307_v54 = vmin.f32 %v2306_v60, 1.0  ;;  %v2886_v32 = vadd.f32 -10.0, %v4329_v43 }
 0x205   :  { %v2303_v8 = vmul.f32 %v2302_v50, %v2300_v7  ;;  %v2314_v58 = vmin.f32 %v2313_v1, 1.0  ;;  %v2316_v2 = vstv %s4361_s30  ;;  %v2320_v53 = vmax.f32 %v2884_v17, 0.0 }
 0x206   :  { %v2217_v25 = vadd.f32 %v2216_v48, %v2215_v49  ;;  %v2297_v13 = vadd.f32 %v2296_v31, %v2290_v57  ;;  %v2310_v15 = vmul.f32 %v2309_v3, %v2307_v54  ;;  %v2327_v24 = vmax.f32 %v2886_v32, 0.0 }
 0x207   :  { %v2321_v21 = vmin.f32 %v2320_v53, 1.0  ;;  %v2888_v63 = vadd.f32 -11.0, %v4329_v43  ;;  %v2323_v18 = vstv %s4366_s7  ;;  %v2890_v6 = vadd.f32 -12.0, %v4329_v43 }
 0x208   :  { %v2218_v16 = vadd.f32 %v2217_v25, %v2094_v0  ;;  %v2304_v27 = vadd.f32 %v2303_v8, %v2297_v13  ;;  %v2317_v41 = vmul.f32 %v2316_v2, %v2314_v58  ;;  %v2328_v59 = vmin.f32 %v2327_v24, 1.0 }
 0x209   :  { %v2334_v10 = vmax.f32 %v2888_v63, 0.0  ;;  %v2892_v30 = vadd.f32 -13.0, %v4329_v43  ;;  %v2330_v4 = vstv %s4370_s8  ;;  %v2341_v20 = vmax.f32 %v2890_v6, 0.0 }
 0x20a   :  { %v2219_v45 = vadd.f32 1e-20, %v2218_v16  ;;  %v2311_v14 = vadd.f32 %v2310_v15, %v2304_v27  ;;  %v2324_v19 = vmul.f32 %v2323_v18, %v2321_v21  ;;  %v2894_v28 = vadd.f32 -14.0, %v4329_v43 }
 0x20b   :  { %v2335_v47 = vmin.f32 %v2334_v10, 1.0  ;;  %v2348_v29 = vmax.f32 %v2892_v30, 0.0  ;;  %v2337_v33 = vstv %s4375_s9  ;;  %v2331_v62 = vmul.f32 %v2330_v4, %v2328_v59 }
 0x20c   :  { %2991 = vrsqrt.f32 %v2219_v45  ;;  %v2318_v51 = vadd.f32 %v2317_v41, %v2311_v14  ;;  %v2342_v26 = vmin.f32 %v2341_v20, 1.0  ;;  %v2344_v44 = vstv %s4378_s10 }
 0x20d   :  { %v2355_v11 = vmax.f32 %v2894_v28, 0.0  ;;  %v2338_v9 = vmul.f32 %v2337_v33, %v2335_v47  ;;  %v2349_v36 = vmin.f32 %v2348_v29, 1.0  ;;  %v2896_v0 = vadd.f32 -15.0, %v4329_v43 }
 0x20e   :  { %v2325_v12 = vadd.f32 %v2324_v19, %v2318_v51  ;;  %v2351_v46 = vstv %s4383_s11  ;;  %v2345_v39 = vmul.f32 %v2344_v44, %v2342_v26  ;;  %v2358_v22 = vstv %s4387_s1 }
 0x20f   :  { %v2356_v52 = vmin.f32 %v2355_v11, 1.0  ;;  %v2362_v42 = vmax.f32 %v2896_v0, 0.0  ;;  %v2352_v38 = vmul.f32 %v2351_v46, %v2349_v36  ;;  %v1004_v40 = vrot.slane %v3792_v5, 4 }
 0x210   :  { %v2332_v23 = vadd.f32 %v2331_v62, %v2325_v12  ;;  %v2365_v50 = vstv %s2897_s12  ;;  %vm2227_vm4 = vcmp.eq.f32.partialorder %v2219_v45, inf  ;;  %v2230_v25 = vand.u32 2147483648, %v2219_v45 }
 0x211   :  { %v2363_v56 = vmin.f32 %v2362_v42, 1.0  ;;  %v2359_v61 = vmul.f32 %v2358_v22, %v2356_v52  ;;  %v1005_v7 = vadd.f32 %v1004_v40, %v3792_v5  ;;  %vm2229_vm5 = vcmp.eq.f32.partialorder %v2219_v45, 0.0 }
 0x212   :  { %v2992_v55 = vpop.eup %2991  ;;  %v2339_v34 = vadd.f32 %v2338_v9, %v2332_v23  ;;  %v2381_v20 = vstv %s4400_s14  ;;  %v2385_v19 = vstv %s4398_s13  ;;  %v2392_v47 = vstv %s4404_s15 }
 0x213   :  { %v2221_v37 = vmul.f32 %v2992_v55, %v2219_v45  ;;  %v2366_v43 = vmul.f32 %v2365_v50, %v2363_v56  ;;  %v1006_v57 = vrot.slane %v1005_v7, 2  ;;  %v2399_v62 = vstv %s4406_s3 }
 0x214   :  { %v2346_v49 = vadd.f32 %v2345_v39, %v2339_v34 }
 0x215   :  { %v2222_v35 = vmul.f32 %v2992_v55, %v2221_v37  ;;  %v1007_v58 = vadd.f32 %v1006_v57, %v1005_v7  ;;  %v2406_v37 = vstv %s4409_s16 }
 0x216   :  { %v2353_v60 = vadd.f32 %v2352_v38, %v2346_v49  ;;  %v2413_v49 = vstv %s4418_s17 }
 0x217   :  { %v2223_v31 = vmul.f32 0.5, %v2222_v35  ;;  %v1008_v15 = vrot.slane %v1007_v58, 1 }
 0x218   :  { %v2360_v1 = vadd.f32 %v2359_v61, %v2353_v60 }
 0x219   :  { %v2224_v3 = vsub.f32 1.5, %v2223_v31  ;;  %v1009_v16 = vadd.f32 %v1008_v15, %v1007_v58 }
 0x21a   :  { %v2367_v48 = vadd.f32 %v2366_v43, %v2360_v1  ;;  %v2420_v1 = vstv %s4424_s18 }
 0x21b   :  { %v2225_v17 = vmul.f32 %v2992_v55, %v2224_v3  ;;  %v1010_v41 = vmul.f32 0.0625, %v1009_v16 }
 0x21c   :  { %v2898_v32 = vadd.f32 -0.5, %v2367_v48  ;;  %v2427_v48 = vstv %s4430_s19 }
 0x21d   :  { %v2226_v54 = vmul.f32 %v2225_v17, %v2219_v45 }
 0x21e   :  { %v2369_v8 = vand.u32 2147483647, %v2898_v32 }
 0x21f   :  { %v2228_v2 = vsel %vm2227_vm4, %v2219_v45, %v2226_v54 }
 0x220   :  { %v2370_v53 = vsel %vm4527_vm7, %v2369_v8, 0.0  ;;  %v2231_v24 = vsel %vm2229_vm5, %v2230_v25, %v2228_v2 }
 0x221   :  { %v2371_v13 = vrot.slane %v2370_v53, 4  ;;  %v2232_v63 = vmax.f32 %v2231_v24, 0.0 }
 0x223   :  { %v2372_v21 = vadd.f32 %v2371_v13, %v2370_v53  ;;  %v4402_v6 = vmin.f32 %v2232_v63, 4.0 }
 0x225   :  { %v2373_v5 = vrot.slane %v2372_v21, 2  ;;  %v2234_v30 = vfloor.f32 %v4402_v6 }
 0x227   :  { %v2374_v27 = vadd.f32 %v2373_v5, %v2372_v21  ;;  %v2932_v4 = vcvt.f32.s32 %v2234_v30  ;;  %v2434_v21 = vstv %s4434_s0 }
 0x229   :  { %v2375_v18 = vrot.slane %v2374_v27, 1  ;;  %vm2237_vm6 = vcmp.lt.s32.totalorder %v2932_v4, 4 }
 0x22a   :  { %v4436_v35 = vsel %vm2237_vm6, %v2932_v4, 4 }
 0x22b   :  { %v2376_v59 = vadd.f32 %v2375_v18, %v2374_v27  ;;  %v2239_v58 = vadd.s32 1, %v4436_v35  ;;  %v2441_v18 = vstv %s4439_s20 }
 0x22d   :  { %v2377_v10 = vmul.f32 0.25, %v2376_v59  ;;  %vm2240_vm9 = vcmp.lt.s32.totalorder %v2239_v58, 4 }
 0x22f   :  { %v2378_v45 = vadd.f32 %v2377_v10, %v1010_v41 }
 0x231   :  { %v4411_v14 = vmul.f32 16.0, %v2378_v45 }
 0x233   :  { %v2382_v29 = vmax.f32 %v4411_v14, 0.0  ;;  %v2901_v28 = vadd.f32 -1.0, %v4411_v14  ;;  %v2903_v33 = vadd.f32 -2.0, %v4411_v14  ;;  %v2905_v51 = vadd.f32 -3.0, %v4411_v14 }
 0x234   :  { %v2907_v26 = vadd.f32 -4.0, %v4411_v14  ;;  %v2909_v44 = vadd.f32 -5.0, %v4411_v14  ;;  %v2911_v11 = vadd.f32 -6.0, %v4411_v14  ;;  %v2913_v39 = vadd.f32 -7.0, %v4411_v14 }
 0x235   :  { %v2383_v12 = vmin.f32 %v2382_v29, 1.0  ;;  %v2389_v9 = vmax.f32 %v2901_v28, 0.0  ;;  %v2396_v36 = vmax.f32 %v2903_v33, 0.0  ;;  %v2403_v0 = vmax.f32 %v2905_v51, 0.0 }
 0x236   :  { %v2410_v46 = vmax.f32 %v2907_v26, 0.0  ;;  %v2417_v23 = vmax.f32 %v2909_v44, 0.0  ;;  %v2424_v34 = vmax.f32 %v2911_v11, 0.0  ;;  %v2431_v31 = vmax.f32 %v2913_v39, 0.0 }
 0x237   :  { %v2386_v52 = vmul.f32 %v2385_v19, %v2383_v12  ;;  %v2390_v42 = vmin.f32 %v2389_v9, 1.0  ;;  %v2397_v55 = vmin.f32 %v2396_v36, 1.0  ;;  %v2404_v22 = vmin.f32 %v2403_v0, 1.0 }
 0x238   :  { %v2411_v50 = vmin.f32 %v2410_v46, 1.0  ;;  %v2418_v61 = vmin.f32 %v2417_v23, 1.0  ;;  %v2915_v7 = vadd.f32 -8.0, %v4411_v14  ;;  %v2917_v3 = vadd.f32 -9.0, %v4411_v14 }
 0x239   :  { %v2387_v38 = vadd.f32 %v2386_v52, %v2381_v20  ;;  %v2393_v56 = vmul.f32 %v2392_v47, %v2390_v42  ;;  %v2400_v40 = vmul.f32 %v2399_v62, %v2397_v55  ;;  %v2407_v43 = vmul.f32 %v2406_v37, %v2404_v22 }
 0x23a   :  { %v2425_v17 = vmin.f32 %v2424_v34, 1.0  ;;  %v2414_v54 = vmul.f32 %v2413_v49, %v2411_v50  ;;  %v2438_v32 = vmax.f32 %v2915_v7, 0.0  ;;  %v2919_v8 = vadd.f32 -10.0, %v4411_v14 }
 0x23b   :  { %v2394_v60 = vadd.f32 %v2393_v56, %v2387_v38  ;;  %v2432_v2 = vmin.f32 %v2431_v31, 1.0  ;;  %v2421_v25 = vmul.f32 %v2420_v1, %v2418_v61  ;;  %v2445_v13 = vmax.f32 %v2917_v3, 0.0 }
 0x23c   :  { %v2921_v15 = vadd.f32 -11.0, %v4411_v14  ;;  %v2428_v24 = vmul.f32 %v2427_v48, %v2425_v17  ;;  %v2439_v63 = vmin.f32 %v2438_v32, 1.0  ;;  %v2452_v16 = vmax.f32 %v2919_v8, 0.0 }
 0x23d   :  { %v2401_v57 = vadd.f32 %v2400_v40, %v2394_v60  ;;  %v2923_v27 = vadd.f32 -12.0, %v4411_v14  ;;  %v2925_v41 = vadd.f32 -13.0, %v4411_v14  ;;  %v2435_v10 = vmul.f32 %v2434_v21, %v2432_v2 }
 0x23e   :  { %v2446_v45 = vmin.f32 %v2445_v13, 1.0  ;;  %v2459_v4 = vmax.f32 %v2921_v15, 0.0  ;;  %v2242_v20 = vlaneseq  ;;  %v2448_v19 = vstv %s4445_s21 }
 0x23f   :  { %v2408_v53 = vadd.f32 %v2407_v43, %v2401_v57  ;;  %v2927_v47 = vadd.f32 -14.0, %v4411_v14  ;;  %v2442_v28 = vmul.f32 %v2441_v18, %v2439_v63  ;;  %v2453_v33 = vmin.f32 %v2452_v16, 1.0 }
 0x240   :  { %v2466_v51 = vmax.f32 %v2923_v27, 0.0  ;;  %v2241_v62 = vsel %vm2240_vm9, %v2239_v58, 4  ;;  %v2455_v26 = vstv %s4449_s22  ;;  %v2473_v44 = vmax.f32 %v2925_v41, 0.0 }
 0x241   :  { %v2415_v5 = vadd.f32 %v2414_v54, %v2408_v53  ;;  %v2449_v12 = vmul.f32 %v2448_v19, %v2446_v45  ;;  %v2460_v9 = vmin.f32 %v2459_v4, 1.0  ;;  %v2929_v36 = vadd.f32 -15.0, %v4411_v14 }
 0x242   :  { %v2243_v0 = vshrl.u32 %v2242_v20, 7  ;;  %v2462_v46 = vstv %s4453_s2  ;;  %v2456_v39 = vmul.f32 %v2455_v26, %v2453_v33  ;;  %v2467_v52 = vmin.f32 %v2466_v51, 1.0 }
 0x243   :  { %v2422_v59 = vadd.f32 %v2421_v25, %v2415_v5  ;;  %v2480_v42 = vmax.f32 %v2927_v47, 0.0  ;;  %v2469_v55 = vstv %s4457_s23  ;;  %v2463_v37 = vmul.f32 %v2462_v46, %v2460_v9 }
 0x244   :  { %vm2249_vm10 = vcmp.eq.s32.totalorder %v2243_v0, %v2241_v62  ;;  %v2474_v34 = vmin.f32 %v2473_v44, 1.0  ;;  %v2487_v38 = vmax.f32 %v2929_v36, 0.0  ;;  %v2235_v14 = vsub.f32 %v4402_v6, %v2234_v30 }
 0x245   :  { %v2429_v29 = vadd.f32 %v2428_v24, %v2422_v59  ;;  %v2476_v56 = vstv %s4461_s4  ;;  %vm2245_vm11 = vcmp.eq.s32.totalorder %v2243_v0, %v4436_v35  ;;  %v2470_v50 = vmul.f32 %v2469_v55, %v2467_v52 }
 0x246   :  { %v2481_v49 = vmin.f32 %v2480_v42, 1.0  ;;  %v3167_v61 = vmov 0.0   ;;  %v2483_v60 = vstv %s4466_s5  ;;  %v2477_v7 = vmul.f32 %v2476_v56, %v2474_v34 }
 0x247   :  { %v2436_v11 = vadd.f32 %v2435_v10, %v2429_v29  ;;  %v2865_v31 = vsel %vm2249_vm10, 1.0, %v3167_v61  ;;  %v2488_v3 = vmin.f32 %v2487_v38, 1.0  ;;  %v2864_v1 = vsel %vm2245_vm11, 1.0, %v3167_v61 }
 0x248   :  { %v2490_v17 = vstv %s4470_s24  ;;  %v2244_v48 = vsub.f32 1.0, %v2235_v14  ;;  %v2252_v57 = vmul.f32 %v2865_v31, %v2235_v14  ;;  %v2484_v32 = vmul.f32 %v2483_v60, %v2481_v49 }
 0x249   :  { %v2443_v23 = vadd.f32 %v2442_v28, %v2436_v11  ;;  %v2491_v30 = vmul.f32 %v2490_v17, %v2488_v3 }
 0x24a   :  { %v2248_v8 = vmul.f32 %v2864_v1, %v2244_v48 }
 0x24b   :  { %v2450_v22 = vadd.f32 %v2449_v12, %v2443_v23 }
 0x24c   :  { %v2253_v58 = vadd.f32 %v2252_v57, %v2248_v8 }
 0x24d   :  { %v2457_v40 = vadd.f32 %v2456_v39, %v2450_v22 }
 0x24f   :  { %v2464_v43 = vadd.f32 %v2463_v37, %v2457_v40 }
 0x251   :  { %v2471_v54 = vadd.f32 %v2470_v50, %v2464_v43 }
 0x253   :  { %v2478_v6 = vadd.f32 %v2477_v7, %v2471_v54 }
 0x255   :  { %v2485_v35 = vadd.f32 %v2484_v32, %v2478_v6 }
 0x257   :  { %v2492_v2 = vadd.f32 %v2491_v30, %v2485_v35 }
 0x259   :  { %v2493_v53 = vmul.f32 %v2492_v2, %v2253_v58 }
 0x25b   :  { %2494 = vst [vmem:[#allocation14] sm:$0x1f] %v2493_v53 }
 0x25c   :  { %2505 = dma.vmem_to_hbm [thread:$0]  %s2501_s26, 128, %s2503_s29, [#allocation5]  }
 0x25d   :  { %3157 = dma.done.wait [#allocation5], 128  }
 0x25e   :  { %3158 = vsyncadd [#allocation5], 4294967168 }
 0x25f   :  { %2510 = vsyncpa [#allocation4], 1 }
 0x260   :  { %2511 = vsyncpa [#allocation8], 1 }
 0x261   :  { %2512 = vsyncpa [#allocation11], 1 }
 0x262   :  { %2513 = vsyncpa [#allocation5], 1 }
 0x263   :  { %2514 = vsyncpa [#allocation6], 1 }

</bundles_post_ra>
